<compile_context>
chip_gen: v5e
topology: v5e:2x2
jax: 0.10.0
libtpu: 0.0.40
codegen_flags: <defaults>
</compile_context>

<pallas_src>
import functools

import jax
import jax.numpy as jnp
from jax.experimental import pallas as pl
from jax.experimental.pallas import tpu as pltpu

# Scaled-down VGG16 feature config (real one is 64,64,M,128,128,M,256x3,M,512x3,M,512x3,M)
CFG = [4, 4, 'M', 8, 8, 'M', 16, 16, 16, 'M', 16, 16, 16, 'M', 16, 16, 16, 'M']
HIDDEN = 32  # scaled stand-in for the 4096-wide classifier layers

# Tile caps sized for v7x's 64 MiB physical VMEM (double-buffered bf16 inputs
# + f32 accumulator stay well under the scoped budget); the raised vmem limit
# below leaves headroom on v5e/v6e to grow them.
TM_CAP = 256
TN_CAP = 256
TK_CAP = 512
VMEM_LIMIT_BYTES = 48 * 1024 * 1024


def _choose_tile(dim, cap):
    """Largest tile: the cap when it divides dim, else the full (small) dim."""
    if dim >= cap and dim % cap == 0:
        return cap
    return dim


# --------------------------- conv (+pool) kernel ----------------------------

def _conv_pool_kernel(w_ref, p_ref, b_ref, o_ref, acc_ref, mx_ref, *, n_q):
    """out[i,j] = max_q relu( sum_k W[i,k] @ P[q,k,j] + b[i] ).

    Grid = (Cout tiles, M tiles, q, K tiles); k innermost.  acc_ref holds the
    f32 K-accumulation, mx_ref the running max over the 2x2 pool quads.
    """
    k = pl.program_id(3)
    nk = pl.num_programs(3)

    @pl.when(k == 0)
    def _():
        acc_ref[...] = jnp.zeros_like(acc_ref)

    acc_ref[...] += jnp.dot(w_ref[...], p_ref[...],
                            preferred_element_type=jnp.float32)

    if n_q == 1:
        # No pool after this conv: bias + ReLU epilogue straight to the output.
        @pl.when(k == nk - 1)
        def _():
            o_ref[...] = jnp.maximum(acc_ref[...] + b_ref[...],
                                     0.0).astype(o_ref.dtype)
    else:
        q = pl.program_id(2)
        last_k = k == nk - 1

        @pl.when(last_k & (q == 0))
        def _():
            mx_ref[...] = jnp.maximum(acc_ref[...] + b_ref[...], 0.0)

        @pl.when(last_k & (q > 0))
        def _():
            mx_ref[...] = jnp.maximum(
                mx_ref[...], jnp.maximum(acc_ref[...] + b_ref[...], 0.0))

        @pl.when(last_k & (q == n_q - 1))
        def _():
            o_ref[...] = mx_ref[...].astype(o_ref.dtype)


def conv_matmul(wmat, patches, bias, cout, m):
    """(Cout, K) @ (q, K, M) -> (Cout, M) with fused bias/ReLU/2x2-max."""
    n_q, kdim, _ = patches.shape
    tm = _choose_tile(cout, TM_CAP)
    tn = _choose_tile(m, TN_CAP)
    tk = _choose_tile(kdim, TK_CAP)
    grid = (cout // tm, m // tn, n_q, kdim // tk)
    return pl.pallas_call(
        functools.partial(_conv_pool_kernel, n_q=n_q),
        out_shape=jax.ShapeDtypeStruct((cout, m), jnp.float32),
        grid=grid,
        in_specs=[
            pl.BlockSpec((tm, tk), lambda i, j, q, k: (i, k)),
            pl.BlockSpec((None, tk, tn), lambda i, j, q, k: (q, k, j)),
            pl.BlockSpec((tm, 1), lambda i, j, q, k: (i, 0)),
        ],
        out_specs=pl.BlockSpec((tm, tn), lambda i, j, q, k: (i, j)),
        scratch_shapes=[pltpu.VMEM((tm, tn), jnp.float32),
                        pltpu.VMEM((tm, tn), jnp.float32)],
        compiler_params=pltpu.CompilerParams(
            dimension_semantics=("parallel", "parallel",
                                 "arbitrary", "arbitrary"),
            vmem_limit_bytes=VMEM_LIMIT_BYTES),
    )(wmat, patches, bias)


# ------------------------------ patch builders ------------------------------

def _patches_plain(x):
    """(C, N, H, W) -> (1, 9*C, N*H*W); k ordered (kh, kw, ci)."""
    c, n, h, w = x.shape
    xp = jnp.pad(x, ((0, 0), (0, 0), (1, 1), (1, 1)))
    taps = [xp[:, :, kh:kh + h, kw:kw + w]
            for kh in range(3) for kw in range(3)]
    return jnp.stack(taps, axis=0).reshape(1, 9 * c, n * h * w)


def _patches_pooled(x):
    """(C, N, H, W) -> (4, 9*C, N*(H//2)*(W//2)); leading axis = pool quad."""
    c, n, h, w = x.shape
    hp, wp = h // 2, w // 2
    xp = jnp.pad(x, ((0, 0), (0, 0), (1, 1), (1, 1)))
    quads = []
    for qi in range(2):
        for qj in range(2):
            taps = [xp[:, :,
                       qi + kh: qi + kh + 2 * hp: 2,
                       qj + kw: qj + kw + 2 * wp: 2]
                    for kh in range(3) for kw in range(3)]
            quads.append(jnp.stack(taps, axis=0).reshape(9 * c, n * hp * wp))
    return jnp.stack(quads, axis=0)


def conv3x3_relu(x, wmat, bias, *, pool):
    """3x3/s1/p1 conv + ReLU (+ fused 2x2 maxpool) on a (C, N, H, W) map."""
    _, n, h, w = x.shape
    cout = wmat.shape[0]
    if pool:
        patches = _patches_pooled(x)
        ho, wo = h // 2, w // 2
    else:
        patches = _patches_plain(x)
        ho, wo = h, w
    patches = patches.astype(jnp.bfloat16)  # halve DMA bytes of the big operand
    out = conv_matmul(wmat, patches, bias, cout, n * ho * wo)
    return out.reshape(cout, n, ho, wo)


# ------------------------------ classifier head -----------------------------

def _fc_head_kernel(f_ref, w1_ref, b1_ref, w2_ref, b2_ref, o_ref):
    y = jnp.dot(f_ref[...], w1_ref[...], preferred_element_type=jnp.float32)
    y = jnp.maximum(y + b1_ref[...], 0.0)
    # TODO(synk): nn.Dropout between the Linears is identity under inference
    # semantics; training-mode stochastic mask not modeled.
    y = jnp.dot(y.astype(jnp.bfloat16), w2_ref[...],
                preferred_element_type=jnp.float32)
    o_ref[...] = jnp.maximum(y + b2_ref[...], 0.0)


def fc_head(f, fc_params):
    """Fused Linear->ReLU->(Dropout)->Linear->ReLU in one pallas_call."""
    (w1t, b1), (w2t, b2) = fc_params
    bsz, feat = f.shape
    h1, h2 = w1t.shape[1], w2t.shape[1]
    return pl.pallas_call(
        _fc_head_kernel,
        out_shape=jax.ShapeDtypeStruct((bsz, h2), jnp.float32),
        in_specs=[pl.BlockSpec((bsz, feat), lambda: (0, 0)),
                  pl.BlockSpec((feat, h1), lambda: (0, 0)),
                  pl.BlockSpec((1, h1), lambda: (0, 0)),
                  pl.BlockSpec((h1, h2), lambda: (0, 0)),
                  pl.BlockSpec((1, h2), lambda: (0, 0))],
        out_specs=pl.BlockSpec((bsz, h2), lambda: (0, 0)),
    )(f.astype(jnp.bfloat16), w1t, b1, w2t, b2)


# ------------------------------- parameters ---------------------------------

def init_params(key, in_ch=3, spatial=32, hidden=HIDDEN):
    """Synthetic params in PyTorch layouts: conv (Cout,Cin,3,3), linear (out,in)."""
    params = {'convs': [], 'fc': []}
    c = in_ch
    for v in CFG:
        if v == 'M':
            continue
        key, k1, k2 = jax.random.split(key, 3)
        w = jax.random.normal(k1, (v, c, 3, 3), jnp.float32) / jnp.sqrt(9.0 * c)
        b = jax.random.normal(k2, (v,), jnp.float32) * 0.01
        params['convs'].append((w, b))
        c = v
    s = spatial // (2 ** CFG.count('M'))
    feat = c * s * s
    key, k1, k2, k3, k4 = jax.random.split(key, 5)
    w1 = jax.random.normal(k1, (hidden, feat), jnp.float32) / jnp.sqrt(float(feat))
    b1 = jax.random.normal(k2, (hidden,), jnp.float32) * 0.01
    w2 = jax.random.normal(k3, (hidden, hidden), jnp.float32) / jnp.sqrt(float(hidden))
    b2 = jax.random.normal(k4, (hidden,), jnp.float32) * 0.01
    params['fc'] = [(w1, b1), (w2, b2)]
    return params


def prepare_params(params):
    """One-time static preprocessing: pre-transposed, bf16 matmul operands."""
    prepped = {'convs': [], 'fc': []}
    for w, b in params['convs']:
        cout, cin = w.shape[0], w.shape[1]
        # (Cout,Cin,3,3) -> (Cout,kh,kw,Cin) -> (Cout, 9*Cin); k order (kh,kw,ci)
        wmat = jnp.transpose(w, (0, 2, 3, 1)).reshape(cout, 9 * cin)
        prepped['convs'].append((wmat.astype(jnp.bfloat16),
                                 b.reshape(cout, 1).astype(jnp.float32)))
    for w, b in params['fc']:
        prepped['fc'].append((jnp.transpose(w).astype(jnp.bfloat16),
                              b.reshape(1, -1).astype(jnp.float32)))
    return prepped


# --------------------------------- forward ----------------------------------

def vgg16_forward(params, x_nchw):
    # NCHW -> CHW-major (C, N, H, W); done once at the boundary.
    x = jnp.transpose(x_nchw.astype(jnp.float32), (1, 0, 2, 3))
    ci = 0
    i = 0
    while i < len(CFG):
        pool = (i + 1 < len(CFG)) and CFG[i + 1] == 'M'
        wmat, bias = params['convs'][ci]
        ci += 1
        x = conv3x3_relu(x, wmat, bias, pool=pool)
        i += 2 if pool else 1
    # f = f.view(N, -1): flatten per sample in PyTorch's (C, H, W) order.
    c, n = x.shape[0], x.shape[1]
    f = jnp.transpose(x.reshape(c, n, -1), (1, 0, 2)).reshape(n, -1)
    pad_b = (-n) % 8                         # pad batch to a full sublane group
    f = jnp.pad(f, ((0, pad_b), (0, 0)))
    y = fc_head(f, params['fc'])
    return y[:n]


if __name__ == "__main__":
    key = jax.random.PRNGKey(0)
    kp, kx = jax.random.split(key)
    params = prepare_params(init_params(kp, in_ch=3, spatial=32, hidden=HIDDEN))
    x = jax.random.normal(kx, (2, 3, 32, 32), jnp.float32)  # NCHW like PyTorch
    fwd = jax.jit(vgg16_forward)
    y = jax.block_until_ready(fwd(params, x))
    assert y.shape == (2, HIDDEN), y.shape
    assert bool(jnp.all(jnp.isfinite(y)))
    print("KERNEL_OK")
</pallas_src>

<mosaic_0001>
module attributes {stable_mosaic.version = 11 : i64} {
  func.func @_conv_pool_kernel(%arg0: i32, %arg1: i32, %arg2: i32, %arg3: i32, %arg4: memref<4x27xbf16, #tpu.memory_space<vmem>>, %arg5: memref<1x27x256xbf16, #tpu.memory_space<vmem>>, %arg6: memref<4x1xf32, #tpu.memory_space<vmem>>, %arg7: memref<4x256xf32, #tpu.memory_space<vmem>>, %arg8: memref<4x256xf32, #tpu.memory_space<vmem>>, %arg9: memref<4x256xf32, #tpu.memory_space<vmem>>) attributes {dimension_semantics = [#tpu.dimension_semantics<parallel>, #tpu.dimension_semantics<parallel>, #tpu.dimension_semantics<arbitrary>, #tpu.dimension_semantics<arbitrary>], iteration_bounds = array<i64: 1, 8, 1, 1>, scalar_prefetch = 0 : i64, scratch_operands = 2 : i64, tpu.core_type = #tpu.core_type<tc>, window_params = [{transform_indices = @transform_0, window_bounds = array<i64: 4, 27>}, {transform_indices = @transform_1, window_bounds = array<i64: 1, 27, 256>}, {transform_indices = @transform_2, window_bounds = array<i64: 4, 1>}, {transform_indices = @transform_3, window_bounds = array<i64: 4, 256>}]} {
    %c0_i32 = arith.constant 0 : i32
    %0 = arith.cmpi eq, %arg3, %c0_i32 : i32
    %1 = arith.extui %0 : i1 to i32
    %c0_i32_0 = arith.constant 0 : i32
    %2 = arith.cmpi ne, %1, %c0_i32_0 : i32
    scf.if %2 {
      %cst_11 = arith.constant 0.000000e+00 : f32
      %13 = vector.broadcast %cst_11 : f32 to vector<4x256xf32>
      %c0_12 = arith.constant 0 : index
      %c0_13 = arith.constant 0 : index
      %14 = vector.load %arg8[%c0_12, %c0_13] : memref<4x256xf32, #tpu.memory_space<vmem>>, vector<4x256xf32>
      tpu.vector_store %arg8[%c0_12, %c0_13], %13 {strides = array<i32>} : memref<4x256xf32, #tpu.memory_space<vmem>>, vector<4x256xf32>,
    } else {
    }
    %c0 = arith.constant 0 : index
    %c0_1 = arith.constant 0 : index
    %3 = vector.load %arg8[%c0, %c0_1] : memref<4x256xf32, #tpu.memory_space<vmem>>, vector<4x256xf32>
    %c0_2 = arith.constant 0 : index
    %c0_3 = arith.constant 0 : index
    %4 = vector.load %arg4[%c0_2, %c0_3] : memref<4x27xbf16, #tpu.memory_space<vmem>>, vector<4x27xbf16>
    %c0_4 = arith.constant 0 : index
    %c0_5 = arith.constant 0 : index
    %c0_6 = arith.constant 0 : index
    %5 = vector.load %arg5[%c0_4, %c0_5, %c0_6] : memref<1x27x256xbf16, #tpu.memory_space<vmem>>, vector<1x27x256xbf16>
    %6 = vector.shape_cast %5 : vector<1x27x256xbf16> to vector<27x256xbf16>
    %cst = arith.constant dense<0.000000e+00> : vector<4x256xf32>
    %7 = tpu.matmul %4, %6, %cst {dimension_numbers = #tpu.dot_dimension_numbers<[1], [0], [0], [1], [0, 0, 1, 1], [], []>} : vector<4x27xbf16>, vector<27x256xbf16>, vector<4x256xf32> -> vector<4x256xf32>
    %8 = arith.addf %3, %7 : vector<4x256xf32>
    %c0_7 = arith.constant 0 : index
    %c0_8 = arith.constant 0 : index
    %9 = vector.load %arg8[%c0_7, %c0_8] : memref<4x256xf32, #tpu.memory_space<vmem>>, vector<4x256xf32>
    tpu.vector_store %arg8[%c0_7, %c0_8], %8 {strides = array<i32>} : memref<4x256xf32, #tpu.memory_space<vmem>>, vector<4x256xf32>,
    %c0_i32_9 = arith.constant 0 : i32
    %10 = arith.cmpi eq, %arg3, %c0_i32_9 : i32
    %11 = arith.extui %10 : i1 to i32
    %c0_i32_10 = arith.constant 0 : i32
    %12 = arith.cmpi ne, %11, %c0_i32_10 : i32
    scf.if %12 {
      %c0_11 = arith.constant 0 : index
      %c0_12 = arith.constant 0 : index
      %13 = vector.load %arg8[%c0_11, %c0_12] : memref<4x256xf32, #tpu.memory_space<vmem>>, vector<4x256xf32>
      %c0_13 = arith.constant 0 : index
      %c0_14 = arith.constant 0 : index
      %14 = vector.load %arg6[%c0_13, %c0_14] : memref<4x1xf32, #tpu.memory_space<vmem>>, vector<4x1xf32>
      %15 = vector.broadcast %14 : vector<4x1xf32> to vector<4x256xf32>
      %16 = arith.addf %13, %15 : vector<4x256xf32>
      %cst_15 = arith.constant 0.000000e+00 : f32
      %17 = vector.broadcast %cst_15 : f32 to vector<4x256xf32>
      %18 = arith.maximumf %16, %17 : vector<4x256xf32>
      %c0_16 = arith.constant 0 : index
      %c0_17 = arith.constant 0 : index
      %19 = vector.load %arg7[%c0_16, %c0_17] : memref<4x256xf32, #tpu.memory_space<vmem>>, vector<4x256xf32>
      tpu.vector_store %arg7[%c0_16, %c0_17], %18 {strides = array<i32>} : memref<4x256xf32, #tpu.memory_space<vmem>>, vector<4x256xf32>,
    } else {
    }
    return
  }
  func.func @transform_0(%arg0: i32, %arg1: i32, %arg2: i32, %arg3: i32) -> (i32, i32) {
    %c0_i32 = arith.constant 0 : i32
    return %arg0, %arg3 : i32, i32
  }
  func.func @transform_1(%arg0: i32, %arg1: i32, %arg2: i32, %arg3: i32) -> (i32, i32, i32) {
    %c0_i32 = arith.constant 0 : i32
    return %arg2, %arg3, %arg1 : i32, i32, i32
  }
  func.func @transform_2(%arg0: i32, %arg1: i32, %arg2: i32, %arg3: i32) -> (i32, i32) {
    %c0_i32 = arith.constant 0 : i32
    %c0_i32_0 = arith.constant 0 : i32
    return %arg0, %c0_i32 : i32, i32
  }
  func.func @transform_3(%arg0: i32, %arg1: i32, %arg2: i32, %arg3: i32) -> (i32, i32) {
    %c0_i32 = arith.constant 0 : i32
    return %arg0, %arg1 : i32, i32
  }
}

module attributes {stable_mosaic.version = 11 : i64} {
  func.func @_conv_pool_kernel(%arg0: i32, %arg1: i32, %arg2: i32, %arg3: i32, %arg4: memref<4x36xbf16, #tpu.memory_space<vmem>>, %arg5: memref<1x36x256xbf16, #tpu.memory_space<vmem>>, %arg6: memref<4x1xf32, #tpu.memory_space<vmem>>, %arg7: memref<4x256xf32, #tpu.memory_space<vmem>>, %arg8: memref<4x256xf32, #tpu.memory_space<vmem>>, %arg9: memref<4x256xf32, #tpu.memory_space<vmem>>) attributes {dimension_semantics = [#tpu.dimension_semantics<parallel>, #tpu.dimension_semantics<parallel>, #tpu.dimension_semantics<arbitrary>, #tpu.dimension_semantics<arbitrary>], iteration_bounds = array<i64: 1, 2, 4, 1>, scalar_prefetch = 0 : i64, scratch_operands = 2 : i64, tpu.core_type = #tpu.core_type<tc>, window_params = [{transform_indices = @transform_0, window_bounds = array<i64: 4, 36>}, {transform_indices = @transform_1, window_bounds = array<i64: 1, 36, 256>}, {transform_indices = @transform_2, window_bounds = array<i64: 4, 1>}, {transform_indices = @transform_3, window_bounds = array<i64: 4, 256>}]} {
    %c0_i32 = arith.constant 0 : i32
    %0 = arith.cmpi eq, %arg3, %c0_i32 : i32
    %1 = arith.extui %0 : i1 to i32
    %c0_i32_0 = arith.constant 0 : i32
    %2 = arith.cmpi ne, %1, %c0_i32_0 : i32
    scf.if %2 {
      %cst_15 = arith.constant 0.000000e+00 : f32
      %23 = vector.broadcast %cst_15 : f32 to vector<4x256xf32>
      %c0_16 = arith.constant 0 : index
      %c0_17 = arith.constant 0 : index
      %24 = vector.load %arg8[%c0_16, %c0_17] : memref<4x256xf32, #tpu.memory_space<vmem>>, vector<4x256xf32>
      tpu.vector_store %arg8[%c0_16, %c0_17], %23 {strides = array<i32>} : memref<4x256xf32, #tpu.memory_space<vmem>>, vector<4x256xf32>,
    } else {
    }
    %c0 = arith.constant 0 : index
    %c0_1 = arith.constant 0 : index
    %3 = vector.load %arg8[%c0, %c0_1] : memref<4x256xf32, #tpu.memory_space<vmem>>, vector<4x256xf32>
    %c0_2 = arith.constant 0 : index
    %c0_3 = arith.constant 0 : index
    %4 = vector.load %arg4[%c0_2, %c0_3] : memref<4x36xbf16, #tpu.memory_space<vmem>>, vector<4x36xbf16>
    %c0_4 = arith.constant 0 : index
    %c0_5 = arith.constant 0 : index
    %c0_6 = arith.constant 0 : index
    %5 = vector.load %arg5[%c0_4, %c0_5, %c0_6] : memref<1x36x256xbf16, #tpu.memory_space<vmem>>, vector<1x36x256xbf16>
    %6 = vector.shape_cast %5 : vector<1x36x256xbf16> to vector<36x256xbf16>
    %cst = arith.constant dense<0.000000e+00> : vector<4x256xf32>
    %7 = tpu.matmul %4, %6, %cst {dimension_numbers = #tpu.dot_dimension_numbers<[1], [0], [0], [1], [0, 0, 1, 1], [], []>} : vector<4x36xbf16>, vector<36x256xbf16>, vector<4x256xf32> -> vector<4x256xf32>
    %8 = arith.addf %3, %7 : vector<4x256xf32>
    %c0_7 = arith.constant 0 : index
    %c0_8 = arith.constant 0 : index
    %9 = vector.load %arg8[%c0_7, %c0_8] : memref<4x256xf32, #tpu.memory_space<vmem>>, vector<4x256xf32>
    tpu.vector_store %arg8[%c0_7, %c0_8], %8 {strides = array<i32>} : memref<4x256xf32, #tpu.memory_space<vmem>>, vector<4x256xf32>,
    %c0_i32_9 = arith.constant 0 : i32
    %10 = arith.cmpi eq, %arg3, %c0_i32_9 : i32
    %c0_i32_10 = arith.constant 0 : i32
    %11 = arith.cmpi eq, %arg2, %c0_i32_10 : i32
    %12 = arith.andi %10, %11 : i1
    %13 = arith.extui %12 : i1 to i32
    %c0_i32_11 = arith.constant 0 : i32
    %14 = arith.cmpi ne, %13, %c0_i32_11 : i32
    scf.if %14 {
      %c0_15 = arith.constant 0 : index
      %c0_16 = arith.constant 0 : index
      %23 = vector.load %arg8[%c0_15, %c0_16] : memref<4x256xf32, #tpu.memory_space<vmem>>, vector<4x256xf32>
      %c0_17 = arith.constant 0 : index
      %c0_18 = arith.constant 0 : index
      %24 = vector.load %arg6[%c0_17, %c0_18] : memref<4x1xf32, #tpu.memory_space<vmem>>, vector<4x1xf32>
      %25 = vector.broadcast %24 : vector<4x1xf32> to vector<4x256xf32>
      %26 = arith.addf %23, %25 : vector<4x256xf32>
      %cst_19 = arith.constant 0.000000e+00 : f32
      %27 = vector.broadcast %cst_19 : f32 to vector<4x256xf32>
      %28 = arith.maximumf %26, %27 : vector<4x256xf32>
      %c0_20 = arith.constant 0 : index
      %c0_21 = arith.constant 0 : index
      %29 = vector.load %arg9[%c0_20, %c0_21] : memref<4x256xf32, #tpu.memory_space<vmem>>, vector<4x256xf32>
      tpu.vector_store %arg9[%c0_20, %c0_21], %28 {strides = array<i32>} : memref<4x256xf32, #tpu.memory_space<vmem>>, vector<4x256xf32>,
    } else {
    }
    %c0_i32_12 = arith.constant 0 : i32
    %15 = arith.cmpi sgt, %arg2, %c0_i32_12 : i32
    %16 = arith.andi %10, %15 : i1
    %17 = arith.extui %16 : i1 to i32
    %c0_i32_13 = arith.constant 0 : i32
    %18 = arith.cmpi ne, %17, %c0_i32_13 : i32
    scf.if %18 {
      %c0_15 = arith.constant 0 : index
      %c0_16 = arith.constant 0 : index
      %23 = vector.load %arg9[%c0_15, %c0_16] : memref<4x256xf32, #tpu.memory_space<vmem>>, vector<4x256xf32>
      %c0_17 = arith.constant 0 : index
      %c0_18 = arith.constant 0 : index
      %24 = vector.load %arg8[%c0_17, %c0_18] : memref<4x256xf32, #tpu.memory_space<vmem>>, vector<4x256xf32>
      %c0_19 = arith.constant 0 : index
      %c0_20 = arith.constant 0 : index
      %25 = vector.load %arg6[%c0_19, %c0_20] : memref<4x1xf32, #tpu.memory_space<vmem>>, vector<4x1xf32>
      %26 = vector.broadcast %25 : vector<4x1xf32> to vector<4x256xf32>
      %27 = arith.addf %24, %26 : vector<4x256xf32>
      %cst_21 = arith.constant 0.000000e+00 : f32
      %28 = vector.broadcast %cst_21 : f32 to vector<4x256xf32>
      %29 = arith.maximumf %27, %28 : vector<4x256xf32>
      %30 = arith.maximumf %23, %29 : vector<4x256xf32>
      %c0_22 = arith.constant 0 : index
      %c0_23 = arith.constant 0 : index
      %31 = vector.load %arg9[%c0_22, %c0_23] : memref<4x256xf32, #tpu.memory_space<vmem>>, vector<4x256xf32>
      tpu.vector_store %arg9[%c0_22, %c0_23], %30 {strides = array<i32>} : memref<4x256xf32, #tpu.memory_space<vmem>>, vector<4x256xf32>,
    } else {
    }
    %c3_i32 = arith.constant 3 : i32
    %19 = arith.cmpi eq, %arg2, %c3_i32 : i32
    %20 = arith.andi %10, %19 : i1
    %21 = arith.extui %20 : i1 to i32
    %c0_i32_14 = arith.constant 0 : i32
    %22 = arith.cmpi ne, %21, %c0_i32_14 : i32
    scf.if %22 {
      %c0_15 = arith.constant 0 : index
      %c0_16 = arith.constant 0 : index
      %23 = vector.load %arg9[%c0_15, %c0_16] : memref<4x256xf32, #tpu.memory_space<vmem>>, vector<4x256xf32>
      %c0_17 = arith.constant 0 : index
      %c0_18 = arith.constant 0 : index
      %24 = vector.load %arg7[%c0_17, %c0_18] : memref<4x256xf32, #tpu.memory_space<vmem>>, vector<4x256xf32>
      tpu.vector_store %arg7[%c0_17, %c0_18], %23 {strides = array<i32>} : memref<4x256xf32, #tpu.memory_space<vmem>>, vector<4x256xf32>,
    } else {
    }
    return
  }
  func.func @transform_0(%arg0: i32, %arg1: i32, %arg2: i32, %arg3: i32) -> (i32, i32) {
    %c0_i32 = arith.constant 0 : i32
    return %arg0, %arg3 : i32, i32
  }
  func.func @transform_1(%arg0: i32, %arg1: i32, %arg2: i32, %arg3: i32) -> (i32, i32, i32) {
    %c0_i32 = arith.constant 0 : i32
    return %arg2, %arg3, %arg1 : i32, i32, i32
  }
  func.func @transform_2(%arg0: i32, %arg1: i32, %arg2: i32, %arg3: i32) -> (i32, i32) {
    %c0_i32 = arith.constant 0 : i32
    %c0_i32_0 = arith.constant 0 : i32
    return %arg0, %c0_i32 : i32, i32
  }
  func.func @transform_3(%arg0: i32, %arg1: i32, %arg2: i32, %arg3: i32) -> (i32, i32) {
    %c0_i32 = arith.constant 0 : i32
    return %arg0, %arg1 : i32, i32
  }
}

module attributes {stable_mosaic.version = 11 : i64} {
  func.func @_conv_pool_kernel(%arg0: i32, %arg1: i32, %arg2: i32, %arg3: i32, %arg4: memref<8x36xbf16, #tpu.memory_space<vmem>>, %arg5: memref<1x36x256xbf16, #tpu.memory_space<vmem>>, %arg6: memref<8x1xf32, #tpu.memory_space<vmem>>, %arg7: memref<8x256xf32, #tpu.memory_space<vmem>>, %arg8: memref<8x256xf32, #tpu.memory_space<vmem>>, %arg9: memref<8x256xf32, #tpu.memory_space<vmem>>) attributes {dimension_semantics = [#tpu.dimension_semantics<parallel>, #tpu.dimension_semantics<parallel>, #tpu.dimension_semantics<arbitrary>, #tpu.dimension_semantics<arbitrary>], iteration_bounds = array<i64: 1, 2, 1, 1>, scalar_prefetch = 0 : i64, scratch_operands = 2 : i64, tpu.core_type = #tpu.core_type<tc>, window_params = [{transform_indices = @transform_0, window_bounds = array<i64: 8, 36>}, {transform_indices = @transform_1, window_bounds = array<i64: 1, 36, 256>}, {transform_indices = @transform_2, window_bounds = array<i64: 8, 1>}, {transform_indices = @transform_3, window_bounds = array<i64: 8, 256>}]} {
    %c0_i32 = arith.constant 0 : i32
    %0 = arith.cmpi eq, %arg3, %c0_i32 : i32
    %1 = arith.extui %0 : i1 to i32
    %c0_i32_0 = arith.constant 0 : i32
    %2 = arith.cmpi ne, %1, %c0_i32_0 : i32
    scf.if %2 {
      %cst_11 = arith.constant 0.000000e+00 : f32
      %13 = vector.broadcast %cst_11 : f32 to vector<8x256xf32>
      %c0_12 = arith.constant 0 : index
      %c0_13 = arith.constant 0 : index
      %14 = vector.load %arg8[%c0_12, %c0_13] : memref<8x256xf32, #tpu.memory_space<vmem>>, vector<8x256xf32>
      tpu.vector_store %arg8[%c0_12, %c0_13], %13 {strides = array<i32>} : memref<8x256xf32, #tpu.memory_space<vmem>>, vector<8x256xf32>,
    } else {
    }
    %c0 = arith.constant 0 : index
    %c0_1 = arith.constant 0 : index
    %3 = vector.load %arg8[%c0, %c0_1] : memref<8x256xf32, #tpu.memory_space<vmem>>, vector<8x256xf32>
    %c0_2 = arith.constant 0 : index
    %c0_3 = arith.constant 0 : index
    %4 = vector.load %arg4[%c0_2, %c0_3] : memref<8x36xbf16, #tpu.memory_space<vmem>>, vector<8x36xbf16>
    %c0_4 = arith.constant 0 : index
    %c0_5 = arith.constant 0 : index
    %c0_6 = arith.constant 0 : index
    %5 = vector.load %arg5[%c0_4, %c0_5, %c0_6] : memref<1x36x256xbf16, #tpu.memory_space<vmem>>, vector<1x36x256xbf16>
    %6 = vector.shape_cast %5 : vector<1x36x256xbf16> to vector<36x256xbf16>
    %cst = arith.constant dense<0.000000e+00> : vector<8x256xf32>
    %7 = tpu.matmul %4, %6, %cst {dimension_numbers = #tpu.dot_dimension_numbers<[1], [0], [0], [1], [0, 0, 1, 1], [], []>} : vector<8x36xbf16>, vector<36x256xbf16>, vector<8x256xf32> -> vector<8x256xf32>
    %8 = arith.addf %3, %7 : vector<8x256xf32>
    %c0_7 = arith.constant 0 : index
    %c0_8 = arith.constant 0 : index
    %9 = vector.load %arg8[%c0_7, %c0_8] : memref<8x256xf32, #tpu.memory_space<vmem>>, vector<8x256xf32>
    tpu.vector_store %arg8[%c0_7, %c0_8], %8 {strides = array<i32>} : memref<8x256xf32, #tpu.memory_space<vmem>>, vector<8x256xf32>,
    %c0_i32_9 = arith.constant 0 : i32
    %10 = arith.cmpi eq, %arg3, %c0_i32_9 : i32
    %11 = arith.extui %10 : i1 to i32
    %c0_i32_10 = arith.constant 0 : i32
    %12 = arith.cmpi ne, %11, %c0_i32_10 : i32
    scf.if %12 {
      %c0_11 = arith.constant 0 : index
      %c0_12 = arith.constant 0 : index
      %13 = vector.load %arg8[%c0_11, %c0_12] : memref<8x256xf32, #tpu.memory_space<vmem>>, vector<8x256xf32>
      %c0_13 = arith.constant 0 : index
      %c0_14 = arith.constant 0 : index
      %14 = vector.load %arg6[%c0_13, %c0_14] : memref<8x1xf32, #tpu.memory_space<vmem>>, vector<8x1xf32>
      %15 = vector.broadcast %14 : vector<8x1xf32> to vector<8x256xf32>
      %16 = arith.addf %13, %15 : vector<8x256xf32>
      %cst_15 = arith.constant 0.000000e+00 : f32
      %17 = vector.broadcast %cst_15 : f32 to vector<8x256xf32>
      %18 = arith.maximumf %16, %17 : vector<8x256xf32>
      %c0_16 = arith.constant 0 : index
      %c0_17 = arith.constant 0 : index
      %19 = vector.load %arg7[%c0_16, %c0_17] : memref<8x256xf32, #tpu.memory_space<vmem>>, vector<8x256xf32>
      tpu.vector_store %arg7[%c0_16, %c0_17], %18 {strides = array<i32>} : memref<8x256xf32, #tpu.memory_space<vmem>>, vector<8x256xf32>,
    } else {
    }
    return
  }
  func.func @transform_0(%arg0: i32, %arg1: i32, %arg2: i32, %arg3: i32) -> (i32, i32) {
    %c0_i32 = arith.constant 0 : i32
    return %arg0, %arg3 : i32, i32
  }
  func.func @transform_1(%arg0: i32, %arg1: i32, %arg2: i32, %arg3: i32) -> (i32, i32, i32) {
    %c0_i32 = arith.constant 0 : i32
    return %arg2, %arg3, %arg1 : i32, i32, i32
  }
  func.func @transform_2(%arg0: i32, %arg1: i32, %arg2: i32, %arg3: i32) -> (i32, i32) {
    %c0_i32 = arith.constant 0 : i32
    %c0_i32_0 = arith.constant 0 : i32
    return %arg0, %c0_i32 : i32, i32
  }
  func.func @transform_3(%arg0: i32, %arg1: i32, %arg2: i32, %arg3: i32) -> (i32, i32) {
    %c0_i32 = arith.constant 0 : i32
    return %arg0, %arg1 : i32, i32
  }
}

module attributes {stable_mosaic.version = 11 : i64} {
  func.func @_conv_pool_kernel(%arg0: i32, %arg1: i32, %arg2: i32, %arg3: i32, %arg4: memref<8x72xbf16, #tpu.memory_space<vmem>>, %arg5: memref<1x72x128xbf16, #tpu.memory_space<vmem>>, %arg6: memref<8x1xf32, #tpu.memory_space<vmem>>, %arg7: memref<8x128xf32, #tpu.memory_space<vmem>>, %arg8: memref<8x128xf32, #tpu.memory_space<vmem>>, %arg9: memref<8x128xf32, #tpu.memory_space<vmem>>) attributes {dimension_semantics = [#tpu.dimension_semantics<parallel>, #tpu.dimension_semantics<parallel>, #tpu.dimension_semantics<arbitrary>, #tpu.dimension_semantics<arbitrary>], iteration_bounds = array<i64: 1, 1, 4, 1>, scalar_prefetch = 0 : i64, scratch_operands = 2 : i64, tpu.core_type = #tpu.core_type<tc>, window_params = [{transform_indices = @transform_0, window_bounds = array<i64: 8, 72>}, {transform_indices = @transform_1, window_bounds = array<i64: 1, 72, 128>}, {transform_indices = @transform_2, window_bounds = array<i64: 8, 1>}, {transform_indices = @transform_3, window_bounds = array<i64: 8, 128>}]} {
    %c0_i32 = arith.constant 0 : i32
    %0 = arith.cmpi eq, %arg3, %c0_i32 : i32
    %1 = arith.extui %0 : i1 to i32
    %c0_i32_0 = arith.constant 0 : i32
    %2 = arith.cmpi ne, %1, %c0_i32_0 : i32
    scf.if %2 {
      %cst_15 = arith.constant 0.000000e+00 : f32
      %23 = vector.broadcast %cst_15 : f32 to vector<8x128xf32>
      %c0_16 = arith.constant 0 : index
      %c0_17 = arith.constant 0 : index
      %24 = vector.load %arg8[%c0_16, %c0_17] : memref<8x128xf32, #tpu.memory_space<vmem>>, vector<8x128xf32>
      tpu.vector_store %arg8[%c0_16, %c0_17], %23 {strides = array<i32>} : memref<8x128xf32, #tpu.memory_space<vmem>>, vector<8x128xf32>,
    } else {
    }
    %c0 = arith.constant 0 : index
    %c0_1 = arith.constant 0 : index
    %3 = vector.load %arg8[%c0, %c0_1] : memref<8x128xf32, #tpu.memory_space<vmem>>, vector<8x128xf32>
    %c0_2 = arith.constant 0 : index
    %c0_3 = arith.constant 0 : index
    %4 = vector.load %arg4[%c0_2, %c0_3] : memref<8x72xbf16, #tpu.memory_space<vmem>>, vector<8x72xbf16>
    %c0_4 = arith.constant 0 : index
    %c0_5 = arith.constant 0 : index
    %c0_6 = arith.constant 0 : index
    %5 = vector.load %arg5[%c0_4, %c0_5, %c0_6] : memref<1x72x128xbf16, #tpu.memory_space<vmem>>, vector<1x72x128xbf16>
    %6 = vector.shape_cast %5 : vector<1x72x128xbf16> to vector<72x128xbf16>
    %cst = arith.constant dense<0.000000e+00> : vector<8x128xf32>
    %7 = tpu.matmul %4, %6, %cst {dimension_numbers = #tpu.dot_dimension_numbers<[1], [0], [0], [1], [0, 0, 1, 1], [], []>} : vector<8x72xbf16>, vector<72x128xbf16>, vector<8x128xf32> -> vector<8x128xf32>
    %8 = arith.addf %3, %7 : vector<8x128xf32>
    %c0_7 = arith.constant 0 : index
    %c0_8 = arith.constant 0 : index
    %9 = vector.load %arg8[%c0_7, %c0_8] : memref<8x128xf32, #tpu.memory_space<vmem>>, vector<8x128xf32>
    tpu.vector_store %arg8[%c0_7, %c0_8], %8 {strides = array<i32>} : memref<8x128xf32, #tpu.memory_space<vmem>>, vector<8x128xf32>,
    %c0_i32_9 = arith.constant 0 : i32
    %10 = arith.cmpi eq, %arg3, %c0_i32_9 : i32
    %c0_i32_10 = arith.constant 0 : i32
    %11 = arith.cmpi eq, %arg2, %c0_i32_10 : i32
    %12 = arith.andi %10, %11 : i1
    %13 = arith.extui %12 : i1 to i32
    %c0_i32_11 = arith.constant 0 : i32
    %14 = arith.cmpi ne, %13, %c0_i32_11 : i32
    scf.if %14 {
      %c0_15 = arith.constant 0 : index
      %c0_16 = arith.constant 0 : index
      %23 = vector.load %arg8[%c0_15, %c0_16] : memref<8x128xf32, #tpu.memory_space<vmem>>, vector<8x128xf32>
      %c0_17 = arith.constant 0 : index
      %c0_18 = arith.constant 0 : index
      %24 = vector.load %arg6[%c0_17, %c0_18] : memref<8x1xf32, #tpu.memory_space<vmem>>, vector<8x1xf32>
      %25 = vector.broadcast %24 : vector<8x1xf32> to vector<8x128xf32>
      %26 = arith.addf %23, %25 : vector<8x128xf32>
      %cst_19 = arith.constant 0.000000e+00 : f32
      %27 = vector.broadcast %cst_19 : f32 to vector<8x128xf32>
      %28 = arith.maximumf %26, %27 : vector<8x128xf32>
      %c0_20 = arith.constant 0 : index
      %c0_21 = arith.constant 0 : index
      %29 = vector.load %arg9[%c0_20, %c0_21] : memref<8x128xf32, #tpu.memory_space<vmem>>, vector<8x128xf32>
      tpu.vector_store %arg9[%c0_20, %c0_21], %28 {strides = array<i32>} : memref<8x128xf32, #tpu.memory_space<vmem>>, vector<8x128xf32>,
    } else {
    }
    %c0_i32_12 = arith.constant 0 : i32
    %15 = arith.cmpi sgt, %arg2, %c0_i32_12 : i32
    %16 = arith.andi %10, %15 : i1
    %17 = arith.extui %16 : i1 to i32
    %c0_i32_13 = arith.constant 0 : i32
    %18 = arith.cmpi ne, %17, %c0_i32_13 : i32
    scf.if %18 {
      %c0_15 = arith.constant 0 : index
      %c0_16 = arith.constant 0 : index
      %23 = vector.load %arg9[%c0_15, %c0_16] : memref<8x128xf32, #tpu.memory_space<vmem>>, vector<8x128xf32>
      %c0_17 = arith.constant 0 : index
      %c0_18 = arith.constant 0 : index
      %24 = vector.load %arg8[%c0_17, %c0_18] : memref<8x128xf32, #tpu.memory_space<vmem>>, vector<8x128xf32>
      %c0_19 = arith.constant 0 : index
      %c0_20 = arith.constant 0 : index
      %25 = vector.load %arg6[%c0_19, %c0_20] : memref<8x1xf32, #tpu.memory_space<vmem>>, vector<8x1xf32>
      %26 = vector.broadcast %25 : vector<8x1xf32> to vector<8x128xf32>
      %27 = arith.addf %24, %26 : vector<8x128xf32>
      %cst_21 = arith.constant 0.000000e+00 : f32
      %28 = vector.broadcast %cst_21 : f32 to vector<8x128xf32>
      %29 = arith.maximumf %27, %28 : vector<8x128xf32>
      %30 = arith.maximumf %23, %29 : vector<8x128xf32>
      %c0_22 = arith.constant 0 : index
      %c0_23 = arith.constant 0 : index
      %31 = vector.load %arg9[%c0_22, %c0_23] : memref<8x128xf32, #tpu.memory_space<vmem>>, vector<8x128xf32>
      tpu.vector_store %arg9[%c0_22, %c0_23], %30 {strides = array<i32>} : memref<8x128xf32, #tpu.memory_space<vmem>>, vector<8x128xf32>,
    } else {
    }
    %c3_i32 = arith.constant 3 : i32
    %19 = arith.cmpi eq, %arg2, %c3_i32 : i32
    %20 = arith.andi %10, %19 : i1
    %21 = arith.extui %20 : i1 to i32
    %c0_i32_14 = arith.constant 0 : i32
    %22 = arith.cmpi ne, %21, %c0_i32_14 : i32
    scf.if %22 {
      %c0_15 = arith.constant 0 : index
      %c0_16 = arith.constant 0 : index
      %23 = vector.load %arg9[%c0_15, %c0_16] : memref<8x128xf32, #tpu.memory_space<vmem>>, vector<8x128xf32>
      %c0_17 = arith.constant 0 : index
      %c0_18 = arith.constant 0 : index
      %24 = vector.load %arg7[%c0_17, %c0_18] : memref<8x128xf32, #tpu.memory_space<vmem>>, vector<8x128xf32>
      tpu.vector_store %arg7[%c0_17, %c0_18], %23 {strides = array<i32>} : memref<8x128xf32, #tpu.memory_space<vmem>>, vector<8x128xf32>,
    } else {
    }
    return
  }
  func.func @transform_0(%arg0: i32, %arg1: i32, %arg2: i32, %arg3: i32) -> (i32, i32) {
    %c0_i32 = arith.constant 0 : i32
    return %arg0, %arg3 : i32, i32
  }
  func.func @transform_1(%arg0: i32, %arg1: i32, %arg2: i32, %arg3: i32) -> (i32, i32, i32) {
    %c0_i32 = arith.constant 0 : i32
    return %arg2, %arg3, %arg1 : i32, i32, i32
  }
  func.func @transform_2(%arg0: i32, %arg1: i32, %arg2: i32, %arg3: i32) -> (i32, i32) {
    %c0_i32 = arith.constant 0 : i32
    %c0_i32_0 = arith.constant 0 : i32
    return %arg0, %c0_i32 : i32, i32
  }
  func.func @transform_3(%arg0: i32, %arg1: i32, %arg2: i32, %arg3: i32) -> (i32, i32) {
    %c0_i32 = arith.constant 0 : i32
    return %arg0, %arg1 : i32, i32
  }
}

module attributes {stable_mosaic.version = 11 : i64} {
  func.func @_conv_pool_kernel(%arg0: i32, %arg1: i32, %arg2: i32, %arg3: i32, %arg4: memref<16x72xbf16, #tpu.memory_space<vmem>>, %arg5: memref<1x72x128xbf16, #tpu.memory_space<vmem>>, %arg6: memref<16x1xf32, #tpu.memory_space<vmem>>, %arg7: memref<16x128xf32, #tpu.memory_space<vmem>>, %arg8: memref<16x128xf32, #tpu.memory_space<vmem>>, %arg9: memref<16x128xf32, #tpu.memory_space<vmem>>) attributes {dimension_semantics = [#tpu.dimension_semantics<parallel>, #tpu.dimension_semantics<parallel>, #tpu.dimension_semantics<arbitrary>, #tpu.dimension_semantics<arbitrary>], iteration_bounds = array<i64: 1, 1, 1, 1>, scalar_prefetch = 0 : i64, scratch_operands = 2 : i64, tpu.core_type = #tpu.core_type<tc>, window_params = [{transform_indices = @transform_0, window_bounds = array<i64: 16, 72>}, {transform_indices = @transform_1, window_bounds = array<i64: 1, 72, 128>}, {transform_indices = @transform_2, window_bounds = array<i64: 16, 1>}, {transform_indices = @transform_3, window_bounds = array<i64: 16, 128>}]} {
    %c0_i32 = arith.constant 0 : i32
    %0 = arith.cmpi eq, %arg3, %c0_i32 : i32
    %1 = arith.extui %0 : i1 to i32
    %c0_i32_0 = arith.constant 0 : i32
    %2 = arith.cmpi ne, %1, %c0_i32_0 : i32
    scf.if %2 {
      %cst_11 = arith.constant 0.000000e+00 : f32
      %13 = vector.broadcast %cst_11 : f32 to vector<16x128xf32>
      %c0_12 = arith.constant 0 : index
      %c0_13 = arith.constant 0 : index
      %14 = vector.load %arg8[%c0_12, %c0_13] : memref<16x128xf32, #tpu.memory_space<vmem>>, vector<16x128xf32>
      tpu.vector_store %arg8[%c0_12, %c0_13], %13 {strides = array<i32>} : memref<16x128xf32, #tpu.memory_space<vmem>>, vector<16x128xf32>,
    } else {
    }
    %c0 = arith.constant 0 : index
    %c0_1 = arith.constant 0 : index
    %3 = vector.load %arg8[%c0, %c0_1] : memref<16x128xf32, #tpu.memory_space<vmem>>, vector<16x128xf32>
    %c0_2 = arith.constant 0 : index
    %c0_3 = arith.constant 0 : index
    %4 = vector.load %arg4[%c0_2, %c0_3] : memref<16x72xbf16, #tpu.memory_space<vmem>>, vector<16x72xbf16>
    %c0_4 = arith.constant 0 : index
    %c0_5 = arith.constant 0 : index
    %c0_6 = arith.constant 0 : index
    %5 = vector.load %arg5[%c0_4, %c0_5, %c0_6] : memref<1x72x128xbf16, #tpu.memory_space<vmem>>, vector<1x72x128xbf16>
    %6 = vector.shape_cast %5 : vector<1x72x128xbf16> to vector<72x128xbf16>
    %cst = arith.constant dense<0.000000e+00> : vector<16x128xf32>
    %7 = tpu.matmul %4, %6, %cst {dimension_numbers = #tpu.dot_dimension_numbers<[1], [0], [0], [1], [0, 0, 1, 1], [], []>} : vector<16x72xbf16>, vector<72x128xbf16>, vector<16x128xf32> -> vector<16x128xf32>
    %8 = arith.addf %3, %7 : vector<16x128xf32>
    %c0_7 = arith.constant 0 : index
    %c0_8 = arith.constant 0 : index
    %9 = vector.load %arg8[%c0_7, %c0_8] : memref<16x128xf32, #tpu.memory_space<vmem>>, vector<16x128xf32>
    tpu.vector_store %arg8[%c0_7, %c0_8], %8 {strides = array<i32>} : memref<16x128xf32, #tpu.memory_space<vmem>>, vector<16x128xf32>,
    %c0_i32_9 = arith.constant 0 : i32
    %10 = arith.cmpi eq, %arg3, %c0_i32_9 : i32
    %11 = arith.extui %10 : i1 to i32
    %c0_i32_10 = arith.constant 0 : i32
    %12 = arith.cmpi ne, %11, %c0_i32_10 : i32
    scf.if %12 {
      %c0_11 = arith.constant 0 : index
      %c0_12 = arith.constant 0 : index
      %13 = vector.load %arg8[%c0_11, %c0_12] : memref<16x128xf32, #tpu.memory_space<vmem>>, vector<16x128xf32>
      %c0_13 = arith.constant 0 : index
      %c0_14 = arith.constant 0 : index
      %14 = vector.load %arg6[%c0_13, %c0_14] : memref<16x1xf32, #tpu.memory_space<vmem>>, vector<16x1xf32>
      %15 = vector.broadcast %14 : vector<16x1xf32> to vector<16x128xf32>
      %16 = arith.addf %13, %15 : vector<16x128xf32>
      %cst_15 = arith.constant 0.000000e+00 : f32
      %17 = vector.broadcast %cst_15 : f32 to vector<16x128xf32>
      %18 = arith.maximumf %16, %17 : vector<16x128xf32>
      %c0_16 = arith.constant 0 : index
      %c0_17 = arith.constant 0 : index
      %19 = vector.load %arg7[%c0_16, %c0_17] : memref<16x128xf32, #tpu.memory_space<vmem>>, vector<16x128xf32>
      tpu.vector_store %arg7[%c0_16, %c0_17], %18 {strides = array<i32>} : memref<16x128xf32, #tpu.memory_space<vmem>>, vector<16x128xf32>,
    } else {
    }
    return
  }
  func.func @transform_0(%arg0: i32, %arg1: i32, %arg2: i32, %arg3: i32) -> (i32, i32) {
    %c0_i32 = arith.constant 0 : i32
    return %arg0, %arg3 : i32, i32
  }
  func.func @transform_1(%arg0: i32, %arg1: i32, %arg2: i32, %arg3: i32) -> (i32, i32, i32) {
    %c0_i32 = arith.constant 0 : i32
    return %arg2, %arg3, %arg1 : i32, i32, i32
  }
  func.func @transform_2(%arg0: i32, %arg1: i32, %arg2: i32, %arg3: i32) -> (i32, i32) {
    %c0_i32 = arith.constant 0 : i32
    %c0_i32_0 = arith.constant 0 : i32
    return %arg0, %c0_i32 : i32, i32
  }
  func.func @transform_3(%arg0: i32, %arg1: i32, %arg2: i32, %arg3: i32) -> (i32, i32) {
    %c0_i32 = arith.constant 0 : i32
    return %arg0, %arg1 : i32, i32
  }
}

module attributes {stable_mosaic.version = 11 : i64} {
  func.func @_conv_pool_kernel(%arg0: i32, %arg1: i32, %arg2: i32, %arg3: i32, %arg4: memref<16x144xbf16, #tpu.memory_space<vmem>>, %arg5: memref<1x144x128xbf16, #tpu.memory_space<vmem>>, %arg6: memref<16x1xf32, #tpu.memory_space<vmem>>, %arg7: memref<16x128xf32, #tpu.memory_space<vmem>>, %arg8: memref<16x128xf32, #tpu.memory_space<vmem>>, %arg9: memref<16x128xf32, #tpu.memory_space<vmem>>) attributes {dimension_semantics = [#tpu.dimension_semantics<parallel>, #tpu.dimension_semantics<parallel>, #tpu.dimension_semantics<arbitrary>, #tpu.dimension_semantics<arbitrary>], iteration_bounds = array<i64: 1, 1, 1, 1>, scalar_prefetch = 0 : i64, scratch_operands = 2 : i64, tpu.core_type = #tpu.core_type<tc>, window_params = [{transform_indices = @transform_0, window_bounds = array<i64: 16, 144>}, {transform_indices = @transform_1, window_bounds = array<i64: 1, 144, 128>}, {transform_indices = @transform_2, window_bounds = array<i64: 16, 1>}, {transform_indices = @transform_3, window_bounds = array<i64: 16, 128>}]} {
    %c0_i32 = arith.constant 0 : i32
    %0 = arith.cmpi eq, %arg3, %c0_i32 : i32
    %1 = arith.extui %0 : i1 to i32
    %c0_i32_0 = arith.constant 0 : i32
    %2 = arith.cmpi ne, %1, %c0_i32_0 : i32
    scf.if %2 {
      %cst_11 = arith.constant 0.000000e+00 : f32
      %13 = vector.broadcast %cst_11 : f32 to vector<16x128xf32>
      %c0_12 = arith.constant 0 : index
      %c0_13 = arith.constant 0 : index
      %14 = vector.load %arg8[%c0_12, %c0_13] : memref<16x128xf32, #tpu.memory_space<vmem>>, vector<16x128xf32>
      tpu.vector_store %arg8[%c0_12, %c0_13], %13 {strides = array<i32>} : memref<16x128xf32, #tpu.memory_space<vmem>>, vector<16x128xf32>,
    } else {
    }
    %c0 = arith.constant 0 : index
    %c0_1 = arith.constant 0 : index
    %3 = vector.load %arg8[%c0, %c0_1] : memref<16x128xf32, #tpu.memory_space<vmem>>, vector<16x128xf32>
    %c0_2 = arith.constant 0 : index
    %c0_3 = arith.constant 0 : index
    %4 = vector.load %arg4[%c0_2, %c0_3] : memref<16x144xbf16, #tpu.memory_space<vmem>>, vector<16x144xbf16>
    %c0_4 = arith.constant 0 : index
    %c0_5 = arith.constant 0 : index
    %c0_6 = arith.constant 0 : index
    %5 = vector.load %arg5[%c0_4, %c0_5, %c0_6] : memref<1x144x128xbf16, #tpu.memory_space<vmem>>, vector<1x144x128xbf16>
    %6 = vector.shape_cast %5 : vector<1x144x128xbf16> to vector<144x128xbf16>
    %cst = arith.constant dense<0.000000e+00> : vector<16x128xf32>
    %7 = tpu.matmul %4, %6, %cst {dimension_numbers = #tpu.dot_dimension_numbers<[1], [0], [0], [1], [0, 0, 1, 1], [], []>} : vector<16x144xbf16>, vector<144x128xbf16>, vector<16x128xf32> -> vector<16x128xf32>
    %8 = arith.addf %3, %7 : vector<16x128xf32>
    %c0_7 = arith.constant 0 : index
    %c0_8 = arith.constant 0 : index
    %9 = vector.load %arg8[%c0_7, %c0_8] : memref<16x128xf32, #tpu.memory_space<vmem>>, vector<16x128xf32>
    tpu.vector_store %arg8[%c0_7, %c0_8], %8 {strides = array<i32>} : memref<16x128xf32, #tpu.memory_space<vmem>>, vector<16x128xf32>,
    %c0_i32_9 = arith.constant 0 : i32
    %10 = arith.cmpi eq, %arg3, %c0_i32_9 : i32
    %11 = arith.extui %10 : i1 to i32
    %c0_i32_10 = arith.constant 0 : i32
    %12 = arith.cmpi ne, %11, %c0_i32_10 : i32
    scf.if %12 {
      %c0_11 = arith.constant 0 : index
      %c0_12 = arith.constant 0 : index
      %13 = vector.load %arg8[%c0_11, %c0_12] : memref<16x128xf32, #tpu.memory_space<vmem>>, vector<16x128xf32>
      %c0_13 = arith.constant 0 : index
      %c0_14 = arith.constant 0 : index
      %14 = vector.load %arg6[%c0_13, %c0_14] : memref<16x1xf32, #tpu.memory_space<vmem>>, vector<16x1xf32>
      %15 = vector.broadcast %14 : vector<16x1xf32> to vector<16x128xf32>
      %16 = arith.addf %13, %15 : vector<16x128xf32>
      %cst_15 = arith.constant 0.000000e+00 : f32
      %17 = vector.broadcast %cst_15 : f32 to vector<16x128xf32>
      %18 = arith.maximumf %16, %17 : vector<16x128xf32>
      %c0_16 = arith.constant 0 : index
      %c0_17 = arith.constant 0 : index
      %19 = vector.load %arg7[%c0_16, %c0_17] : memref<16x128xf32, #tpu.memory_space<vmem>>, vector<16x128xf32>
      tpu.vector_store %arg7[%c0_16, %c0_17], %18 {strides = array<i32>} : memref<16x128xf32, #tpu.memory_space<vmem>>, vector<16x128xf32>,
    } else {
    }
    return
  }
  func.func @transform_0(%arg0: i32, %arg1: i32, %arg2: i32, %arg3: i32) -> (i32, i32) {
    %c0_i32 = arith.constant 0 : i32
    return %arg0, %arg3 : i32, i32
  }
  func.func @transform_1(%arg0: i32, %arg1: i32, %arg2: i32, %arg3: i32) -> (i32, i32, i32) {
    %c0_i32 = arith.constant 0 : i32
    return %arg2, %arg3, %arg1 : i32, i32, i32
  }
  func.func @transform_2(%arg0: i32, %arg1: i32, %arg2: i32, %arg3: i32) -> (i32, i32) {
    %c0_i32 = arith.constant 0 : i32
    %c0_i32_0 = arith.constant 0 : i32
    return %arg0, %c0_i32 : i32, i32
  }
  func.func @transform_3(%arg0: i32, %arg1: i32, %arg2: i32, %arg3: i32) -> (i32, i32) {
    %c0_i32 = arith.constant 0 : i32
    return %arg0, %arg1 : i32, i32
  }
}

module attributes {stable_mosaic.version = 11 : i64} {
  func.func @_conv_pool_kernel(%arg0: i32, %arg1: i32, %arg2: i32, %arg3: i32, %arg4: memref<16x144xbf16, #tpu.memory_space<vmem>>, %arg5: memref<1x144x32xbf16, #tpu.memory_space<vmem>>, %arg6: memref<16x1xf32, #tpu.memory_space<vmem>>, %arg7: memref<16x32xf32, #tpu.memory_space<vmem>>, %arg8: memref<16x32xf32, #tpu.memory_space<vmem>>, %arg9: memref<16x32xf32, #tpu.memory_space<vmem>>) attributes {dimension_semantics = [#tpu.dimension_semantics<parallel>, #tpu.dimension_semantics<parallel>, #tpu.dimension_semantics<arbitrary>, #tpu.dimension_semantics<arbitrary>], iteration_bounds = array<i64: 1, 1, 4, 1>, scalar_prefetch = 0 : i64, scratch_operands = 2 : i64, tpu.core_type = #tpu.core_type<tc>, window_params = [{transform_indices = @transform_0, window_bounds = array<i64: 16, 144>}, {transform_indices = @transform_1, window_bounds = array<i64: 1, 144, 32>}, {transform_indices = @transform_2, window_bounds = array<i64: 16, 1>}, {transform_indices = @transform_3, window_bounds = array<i64: 16, 32>}]} {
    %c0_i32 = arith.constant 0 : i32
    %0 = arith.cmpi eq, %arg3, %c0_i32 : i32
    %1 = arith.extui %0 : i1 to i32
    %c0_i32_0 = arith.constant 0 : i32
    %2 = arith.cmpi ne, %1, %c0_i32_0 : i32
    scf.if %2 {
      %cst_15 = arith.constant 0.000000e+00 : f32
      %23 = vector.broadcast %cst_15 : f32 to vector<16x32xf32>
      %c0_16 = arith.constant 0 : index
      %c0_17 = arith.constant 0 : index
      %24 = vector.load %arg8[%c0_16, %c0_17] : memref<16x32xf32, #tpu.memory_space<vmem>>, vector<16x32xf32>
      tpu.vector_store %arg8[%c0_16, %c0_17], %23 {strides = array<i32>} : memref<16x32xf32, #tpu.memory_space<vmem>>, vector<16x32xf32>,
    } else {
    }
    %c0 = arith.constant 0 : index
    %c0_1 = arith.constant 0 : index
    %3 = vector.load %arg8[%c0, %c0_1] : memref<16x32xf32, #tpu.memory_space<vmem>>, vector<16x32xf32>
    %c0_2 = arith.constant 0 : index
    %c0_3 = arith.constant 0 : index
    %4 = vector.load %arg4[%c0_2, %c0_3] : memref<16x144xbf16, #tpu.memory_space<vmem>>, vector<16x144xbf16>
    %c0_4 = arith.constant 0 : index
    %c0_5 = arith.constant 0 : index
    %c0_6 = arith.constant 0 : index
    %5 = vector.load %arg5[%c0_4, %c0_5, %c0_6] : memref<1x144x32xbf16, #tpu.memory_space<vmem>>, vector<1x144x32xbf16>
    %6 = vector.shape_cast %5 : vector<1x144x32xbf16> to vector<144x32xbf16>
    %cst = arith.constant dense<0.000000e+00> : vector<16x32xf32>
    %7 = tpu.matmul %4, %6, %cst {dimension_numbers = #tpu.dot_dimension_numbers<[1], [0], [0], [1], [0, 0, 1, 1], [], []>} : vector<16x144xbf16>, vector<144x32xbf16>, vector<16x32xf32> -> vector<16x32xf32>
    %8 = arith.addf %3, %7 : vector<16x32xf32>
    %c0_7 = arith.constant 0 : index
    %c0_8 = arith.constant 0 : index
    %9 = vector.load %arg8[%c0_7, %c0_8] : memref<16x32xf32, #tpu.memory_space<vmem>>, vector<16x32xf32>
    tpu.vector_store %arg8[%c0_7, %c0_8], %8 {strides = array<i32>} : memref<16x32xf32, #tpu.memory_space<vmem>>, vector<16x32xf32>,
    %c0_i32_9 = arith.constant 0 : i32
    %10 = arith.cmpi eq, %arg3, %c0_i32_9 : i32
    %c0_i32_10 = arith.constant 0 : i32
    %11 = arith.cmpi eq, %arg2, %c0_i32_10 : i32
    %12 = arith.andi %10, %11 : i1
    %13 = arith.extui %12 : i1 to i32
    %c0_i32_11 = arith.constant 0 : i32
    %14 = arith.cmpi ne, %13, %c0_i32_11 : i32
    scf.if %14 {
      %c0_15 = arith.constant 0 : index
      %c0_16 = arith.constant 0 : index
      %23 = vector.load %arg8[%c0_15, %c0_16] : memref<16x32xf32, #tpu.memory_space<vmem>>, vector<16x32xf32>
      %c0_17 = arith.constant 0 : index
      %c0_18 = arith.constant 0 : index
      %24 = vector.load %arg6[%c0_17, %c0_18] : memref<16x1xf32, #tpu.memory_space<vmem>>, vector<16x1xf32>
      %25 = vector.broadcast %24 : vector<16x1xf32> to vector<16x32xf32>
      %26 = arith.addf %23, %25 : vector<16x32xf32>
      %cst_19 = arith.constant 0.000000e+00 : f32
      %27 = vector.broadcast %cst_19 : f32 to vector<16x32xf32>
      %28 = arith.maximumf %26, %27 : vector<16x32xf32>
      %c0_20 = arith.constant 0 : index
      %c0_21 = arith.constant 0 : index
      %29 = vector.load %arg9[%c0_20, %c0_21] : memref<16x32xf32, #tpu.memory_space<vmem>>, vector<16x32xf32>
      tpu.vector_store %arg9[%c0_20, %c0_21], %28 {strides = array<i32>} : memref<16x32xf32, #tpu.memory_space<vmem>>, vector<16x32xf32>,
    } else {
    }
    %c0_i32_12 = arith.constant 0 : i32
    %15 = arith.cmpi sgt, %arg2, %c0_i32_12 : i32
    %16 = arith.andi %10, %15 : i1
    %17 = arith.extui %16 : i1 to i32
    %c0_i32_13 = arith.constant 0 : i32
    %18 = arith.cmpi ne, %17, %c0_i32_13 : i32
    scf.if %18 {
      %c0_15 = arith.constant 0 : index
      %c0_16 = arith.constant 0 : index
      %23 = vector.load %arg9[%c0_15, %c0_16] : memref<16x32xf32, #tpu.memory_space<vmem>>, vector<16x32xf32>
      %c0_17 = arith.constant 0 : index
      %c0_18 = arith.constant 0 : index
      %24 = vector.load %arg8[%c0_17, %c0_18] : memref<16x32xf32, #tpu.memory_space<vmem>>, vector<16x32xf32>
      %c0_19 = arith.constant 0 : index
      %c0_20 = arith.constant 0 : index
      %25 = vector.load %arg6[%c0_19, %c0_20] : memref<16x1xf32, #tpu.memory_space<vmem>>, vector<16x1xf32>
      %26 = vector.broadcast %25 : vector<16x1xf32> to vector<16x32xf32>
      %27 = arith.addf %24, %26 : vector<16x32xf32>
      %cst_21 = arith.constant 0.000000e+00 : f32
      %28 = vector.broadcast %cst_21 : f32 to vector<16x32xf32>
      %29 = arith.maximumf %27, %28 : vector<16x32xf32>
      %30 = arith.maximumf %23, %29 : vector<16x32xf32>
      %c0_22 = arith.constant 0 : index
      %c0_23 = arith.constant 0 : index
      %31 = vector.load %arg9[%c0_22, %c0_23] : memref<16x32xf32, #tpu.memory_space<vmem>>, vector<16x32xf32>
      tpu.vector_store %arg9[%c0_22, %c0_23], %30 {strides = array<i32>} : memref<16x32xf32, #tpu.memory_space<vmem>>, vector<16x32xf32>,
    } else {
    }
    %c3_i32 = arith.constant 3 : i32
    %19 = arith.cmpi eq, %arg2, %c3_i32 : i32
    %20 = arith.andi %10, %19 : i1
    %21 = arith.extui %20 : i1 to i32
    %c0_i32_14 = arith.constant 0 : i32
    %22 = arith.cmpi ne, %21, %c0_i32_14 : i32
    scf.if %22 {
      %c0_15 = arith.constant 0 : index
      %c0_16 = arith.constant 0 : index
      %23 = vector.load %arg9[%c0_15, %c0_16] : memref<16x32xf32, #tpu.memory_space<vmem>>, vector<16x32xf32>
      %c0_17 = arith.constant 0 : index
      %c0_18 = arith.constant 0 : index
      %24 = vector.load %arg7[%c0_17, %c0_18] : memref<16x32xf32, #tpu.memory_space<vmem>>, vector<16x32xf32>
      tpu.vector_store %arg7[%c0_17, %c0_18], %23 {strides = array<i32>} : memref<16x32xf32, #tpu.memory_space<vmem>>, vector<16x32xf32>,
    } else {
    }
    return
  }
  func.func @transform_0(%arg0: i32, %arg1: i32, %arg2: i32, %arg3: i32) -> (i32, i32) {
    %c0_i32 = arith.constant 0 : i32
    return %arg0, %arg3 : i32, i32
  }
  func.func @transform_1(%arg0: i32, %arg1: i32, %arg2: i32, %arg3: i32) -> (i32, i32, i32) {
    %c0_i32 = arith.constant 0 : i32
    return %arg2, %arg3, %arg1 : i32, i32, i32
  }
  func.func @transform_2(%arg0: i32, %arg1: i32, %arg2: i32, %arg3: i32) -> (i32, i32) {
    %c0_i32 = arith.constant 0 : i32
    %c0_i32_0 = arith.constant 0 : i32
    return %arg0, %c0_i32 : i32, i32
  }
  func.func @transform_3(%arg0: i32, %arg1: i32, %arg2: i32, %arg3: i32) -> (i32, i32) {
    %c0_i32 = arith.constant 0 : i32
    return %arg0, %arg1 : i32, i32
  }
}

module attributes {stable_mosaic.version = 11 : i64} {
  func.func @_conv_pool_kernel(%arg0: i32, %arg1: i32, %arg2: i32, %arg3: i32, %arg4: memref<16x144xbf16, #tpu.memory_space<vmem>>, %arg5: memref<1x144x32xbf16, #tpu.memory_space<vmem>>, %arg6: memref<16x1xf32, #tpu.memory_space<vmem>>, %arg7: memref<16x32xf32, #tpu.memory_space<vmem>>, %arg8: memref<16x32xf32, #tpu.memory_space<vmem>>, %arg9: memref<16x32xf32, #tpu.memory_space<vmem>>) attributes {dimension_semantics = [#tpu.dimension_semantics<parallel>, #tpu.dimension_semantics<parallel>, #tpu.dimension_semantics<arbitrary>, #tpu.dimension_semantics<arbitrary>], iteration_bounds = array<i64: 1, 1, 1, 1>, scalar_prefetch = 0 : i64, scratch_operands = 2 : i64, tpu.core_type = #tpu.core_type<tc>, window_params = [{transform_indices = @transform_0, window_bounds = array<i64: 16, 144>}, {transform_indices = @transform_1, window_bounds = array<i64: 1, 144, 32>}, {transform_indices = @transform_2, window_bounds = array<i64: 16, 1>}, {transform_indices = @transform_3, window_bounds = array<i64: 16, 32>}]} {
    %c0_i32 = arith.constant 0 : i32
    %0 = arith.cmpi eq, %arg3, %c0_i32 : i32
    %1 = arith.extui %0 : i1 to i32
    %c0_i32_0 = arith.constant 0 : i32
    %2 = arith.cmpi ne, %1, %c0_i32_0 : i32
    scf.if %2 {
      %cst_11 = arith.constant 0.000000e+00 : f32
      %13 = vector.broadcast %cst_11 : f32 to vector<16x32xf32>
      %c0_12 = arith.constant 0 : index
      %c0_13 = arith.constant 0 : index
      %14 = vector.load %arg8[%c0_12, %c0_13] : memref<16x32xf32, #tpu.memory_space<vmem>>, vector<16x32xf32>
      tpu.vector_store %arg8[%c0_12, %c0_13], %13 {strides = array<i32>} : memref<16x32xf32, #tpu.memory_space<vmem>>, vector<16x32xf32>,
    } else {
    }
    %c0 = arith.constant 0 : index
    %c0_1 = arith.constant 0 : index
    %3 = vector.load %arg8[%c0, %c0_1] : memref<16x32xf32, #tpu.memory_space<vmem>>, vector<16x32xf32>
    %c0_2 = arith.constant 0 : index
    %c0_3 = arith.constant 0 : index
    %4 = vector.load %arg4[%c0_2, %c0_3] : memref<16x144xbf16, #tpu.memory_space<vmem>>, vector<16x144xbf16>
    %c0_4 = arith.constant 0 : index
    %c0_5 = arith.constant 0 : index
    %c0_6 = arith.constant 0 : index
    %5 = vector.load %arg5[%c0_4, %c0_5, %c0_6] : memref<1x144x32xbf16, #tpu.memory_space<vmem>>, vector<1x144x32xbf16>
    %6 = vector.shape_cast %5 : vector<1x144x32xbf16> to vector<144x32xbf16>
    %cst = arith.constant dense<0.000000e+00> : vector<16x32xf32>
    %7 = tpu.matmul %4, %6, %cst {dimension_numbers = #tpu.dot_dimension_numbers<[1], [0], [0], [1], [0, 0, 1, 1], [], []>} : vector<16x144xbf16>, vector<144x32xbf16>, vector<16x32xf32> -> vector<16x32xf32>
    %8 = arith.addf %3, %7 : vector<16x32xf32>
    %c0_7 = arith.constant 0 : index
    %c0_8 = arith.constant 0 : index
    %9 = vector.load %arg8[%c0_7, %c0_8] : memref<16x32xf32, #tpu.memory_space<vmem>>, vector<16x32xf32>
    tpu.vector_store %arg8[%c0_7, %c0_8], %8 {strides = array<i32>} : memref<16x32xf32, #tpu.memory_space<vmem>>, vector<16x32xf32>,
    %c0_i32_9 = arith.constant 0 : i32
    %10 = arith.cmpi eq, %arg3, %c0_i32_9 : i32
    %11 = arith.extui %10 : i1 to i32
    %c0_i32_10 = arith.constant 0 : i32
    %12 = arith.cmpi ne, %11, %c0_i32_10 : i32
    scf.if %12 {
      %c0_11 = arith.constant 0 : index
      %c0_12 = arith.constant 0 : index
      %13 = vector.load %arg8[%c0_11, %c0_12] : memref<16x32xf32, #tpu.memory_space<vmem>>, vector<16x32xf32>
      %c0_13 = arith.constant 0 : index
      %c0_14 = arith.constant 0 : index
      %14 = vector.load %arg6[%c0_13, %c0_14] : memref<16x1xf32, #tpu.memory_space<vmem>>, vector<16x1xf32>
      %15 = vector.broadcast %14 : vector<16x1xf32> to vector<16x32xf32>
      %16 = arith.addf %13, %15 : vector<16x32xf32>
      %cst_15 = arith.constant 0.000000e+00 : f32
      %17 = vector.broadcast %cst_15 : f32 to vector<16x32xf32>
      %18 = arith.maximumf %16, %17 : vector<16x32xf32>
      %c0_16 = arith.constant 0 : index
      %c0_17 = arith.constant 0 : index
      %19 = vector.load %arg7[%c0_16, %c0_17] : memref<16x32xf32, #tpu.memory_space<vmem>>, vector<16x32xf32>
      tpu.vector_store %arg7[%c0_16, %c0_17], %18 {strides = array<i32>} : memref<16x32xf32, #tpu.memory_space<vmem>>, vector<16x32xf32>,
    } else {
    }
    return
  }
  func.func @transform_0(%arg0: i32, %arg1: i32, %arg2: i32, %arg3: i32) -> (i32, i32) {
    %c0_i32 = arith.constant 0 : i32
    return %arg0, %arg3 : i32, i32
  }
  func.func @transform_1(%arg0: i32, %arg1: i32, %arg2: i32, %arg3: i32) -> (i32, i32, i32) {
    %c0_i32 = arith.constant 0 : i32
    return %arg2, %arg3, %arg1 : i32, i32, i32
  }
  func.func @transform_2(%arg0: i32, %arg1: i32, %arg2: i32, %arg3: i32) -> (i32, i32) {
    %c0_i32 = arith.constant 0 : i32
    %c0_i32_0 = arith.constant 0 : i32
    return %arg0, %c0_i32 : i32, i32
  }
  func.func @transform_3(%arg0: i32, %arg1: i32, %arg2: i32, %arg3: i32) -> (i32, i32) {
    %c0_i32 = arith.constant 0 : i32
    return %arg0, %arg1 : i32, i32
  }
}

module attributes {stable_mosaic.version = 11 : i64} {
  func.func @_conv_pool_kernel(%arg0: i32, %arg1: i32, %arg2: i32, %arg3: i32, %arg4: memref<16x144xbf16, #tpu.memory_space<vmem>>, %arg5: memref<1x144x8xbf16, #tpu.memory_space<vmem>>, %arg6: memref<16x1xf32, #tpu.memory_space<vmem>>, %arg7: memref<16x8xf32, #tpu.memory_space<vmem>>, %arg8: memref<16x8xf32, #tpu.memory_space<vmem>>, %arg9: memref<16x8xf32, #tpu.memory_space<vmem>>) attributes {dimension_semantics = [#tpu.dimension_semantics<parallel>, #tpu.dimension_semantics<parallel>, #tpu.dimension_semantics<arbitrary>, #tpu.dimension_semantics<arbitrary>], iteration_bounds = array<i64: 1, 1, 4, 1>, scalar_prefetch = 0 : i64, scratch_operands = 2 : i64, tpu.core_type = #tpu.core_type<tc>, window_params = [{transform_indices = @transform_0, window_bounds = array<i64: 16, 144>}, {transform_indices = @transform_1, window_bounds = array<i64: 1, 144, 8>}, {transform_indices = @transform_2, window_bounds = array<i64: 16, 1>}, {transform_indices = @transform_3, window_bounds = array<i64: 16, 8>}]} {
    %c0_i32 = arith.constant 0 : i32
    %0 = arith.cmpi eq, %arg3, %c0_i32 : i32
    %1 = arith.extui %0 : i1 to i32
    %c0_i32_0 = arith.constant 0 : i32
    %2 = arith.cmpi ne, %1, %c0_i32_0 : i32
    scf.if %2 {
      %cst_15 = arith.constant 0.000000e+00 : f32
      %23 = vector.broadcast %cst_15 : f32 to vector<16x8xf32>
      %c0_16 = arith.constant 0 : index
      %c0_17 = arith.constant 0 : index
      %24 = vector.load %arg8[%c0_16, %c0_17] : memref<16x8xf32, #tpu.memory_space<vmem>>, vector<16x8xf32>
      tpu.vector_store %arg8[%c0_16, %c0_17], %23 {strides = array<i32>} : memref<16x8xf32, #tpu.memory_space<vmem>>, vector<16x8xf32>,
    } else {
    }
    %c0 = arith.constant 0 : index
    %c0_1 = arith.constant 0 : index
    %3 = vector.load %arg8[%c0, %c0_1] : memref<16x8xf32, #tpu.memory_space<vmem>>, vector<16x8xf32>
    %c0_2 = arith.constant 0 : index
    %c0_3 = arith.constant 0 : index
    %4 = vector.load %arg4[%c0_2, %c0_3] : memref<16x144xbf16, #tpu.memory_space<vmem>>, vector<16x144xbf16>
    %c0_4 = arith.constant 0 : index
    %c0_5 = arith.constant 0 : index
    %c0_6 = arith.constant 0 : index
    %5 = vector.load %arg5[%c0_4, %c0_5, %c0_6] : memref<1x144x8xbf16, #tpu.memory_space<vmem>>, vector<1x144x8xbf16>
    %6 = vector.shape_cast %5 : vector<1x144x8xbf16> to vector<144x8xbf16>
    %cst = arith.constant dense<0.000000e+00> : vector<16x8xf32>
    %7 = tpu.matmul %4, %6, %cst {dimension_numbers = #tpu.dot_dimension_numbers<[1], [0], [0], [1], [0, 0, 1, 1], [], []>} : vector<16x144xbf16>, vector<144x8xbf16>, vector<16x8xf32> -> vector<16x8xf32>
    %8 = arith.addf %3, %7 : vector<16x8xf32>
    %c0_7 = arith.constant 0 : index
    %c0_8 = arith.constant 0 : index
    %9 = vector.load %arg8[%c0_7, %c0_8] : memref<16x8xf32, #tpu.memory_space<vmem>>, vector<16x8xf32>
    tpu.vector_store %arg8[%c0_7, %c0_8], %8 {strides = array<i32>} : memref<16x8xf32, #tpu.memory_space<vmem>>, vector<16x8xf32>,
    %c0_i32_9 = arith.constant 0 : i32
    %10 = arith.cmpi eq, %arg3, %c0_i32_9 : i32
    %c0_i32_10 = arith.constant 0 : i32
    %11 = arith.cmpi eq, %arg2, %c0_i32_10 : i32
    %12 = arith.andi %10, %11 : i1
    %13 = arith.extui %12 : i1 to i32
    %c0_i32_11 = arith.constant 0 : i32
    %14 = arith.cmpi ne, %13, %c0_i32_11 : i32
    scf.if %14 {
      %c0_15 = arith.constant 0 : index
      %c0_16 = arith.constant 0 : index
      %23 = vector.load %arg8[%c0_15, %c0_16] : memref<16x8xf32, #tpu.memory_space<vmem>>, vector<16x8xf32>
      %c0_17 = arith.constant 0 : index
      %c0_18 = arith.constant 0 : index
      %24 = vector.load %arg6[%c0_17, %c0_18] : memref<16x1xf32, #tpu.memory_space<vmem>>, vector<16x1xf32>
      %25 = vector.broadcast %24 : vector<16x1xf32> to vector<16x8xf32>
      %26 = arith.addf %23, %25 : vector<16x8xf32>
      %cst_19 = arith.constant 0.000000e+00 : f32
      %27 = vector.broadcast %cst_19 : f32 to vector<16x8xf32>
      %28 = arith.maximumf %26, %27 : vector<16x8xf32>
      %c0_20 = arith.constant 0 : index
      %c0_21 = arith.constant 0 : index
      %29 = vector.load %arg9[%c0_20, %c0_21] : memref<16x8xf32, #tpu.memory_space<vmem>>, vector<16x8xf32>
      tpu.vector_store %arg9[%c0_20, %c0_21], %28 {strides = array<i32>} : memref<16x8xf32, #tpu.memory_space<vmem>>, vector<16x8xf32>,
    } else {
    }
    %c0_i32_12 = arith.constant 0 : i32
    %15 = arith.cmpi sgt, %arg2, %c0_i32_12 : i32
    %16 = arith.andi %10, %15 : i1
    %17 = arith.extui %16 : i1 to i32
    %c0_i32_13 = arith.constant 0 : i32
    %18 = arith.cmpi ne, %17, %c0_i32_13 : i32
    scf.if %18 {
      %c0_15 = arith.constant 0 : index
      %c0_16 = arith.constant 0 : index
      %23 = vector.load %arg9[%c0_15, %c0_16] : memref<16x8xf32, #tpu.memory_space<vmem>>, vector<16x8xf32>
      %c0_17 = arith.constant 0 : index
      %c0_18 = arith.constant 0 : index
      %24 = vector.load %arg8[%c0_17, %c0_18] : memref<16x8xf32, #tpu.memory_space<vmem>>, vector<16x8xf32>
      %c0_19 = arith.constant 0 : index
      %c0_20 = arith.constant 0 : index
      %25 = vector.load %arg6[%c0_19, %c0_20] : memref<16x1xf32, #tpu.memory_space<vmem>>, vector<16x1xf32>
      %26 = vector.broadcast %25 : vector<16x1xf32> to vector<16x8xf32>
      %27 = arith.addf %24, %26 : vector<16x8xf32>
      %cst_21 = arith.constant 0.000000e+00 : f32
      %28 = vector.broadcast %cst_21 : f32 to vector<16x8xf32>
      %29 = arith.maximumf %27, %28 : vector<16x8xf32>
      %30 = arith.maximumf %23, %29 : vector<16x8xf32>
      %c0_22 = arith.constant 0 : index
      %c0_23 = arith.constant 0 : index
      %31 = vector.load %arg9[%c0_22, %c0_23] : memref<16x8xf32, #tpu.memory_space<vmem>>, vector<16x8xf32>
      tpu.vector_store %arg9[%c0_22, %c0_23], %30 {strides = array<i32>} : memref<16x8xf32, #tpu.memory_space<vmem>>, vector<16x8xf32>,
    } else {
    }
    %c3_i32 = arith.constant 3 : i32
    %19 = arith.cmpi eq, %arg2, %c3_i32 : i32
    %20 = arith.andi %10, %19 : i1
    %21 = arith.extui %20 : i1 to i32
    %c0_i32_14 = arith.constant 0 : i32
    %22 = arith.cmpi ne, %21, %c0_i32_14 : i32
    scf.if %22 {
      %c0_15 = arith.constant 0 : index
      %c0_16 = arith.constant 0 : index
      %23 = vector.load %arg9[%c0_15, %c0_16] : memref<16x8xf32, #tpu.memory_space<vmem>>, vector<16x8xf32>
      %c0_17 = arith.constant 0 : index
      %c0_18 = arith.constant 0 : index
      %24 = vector.load %arg7[%c0_17, %c0_18] : memref<16x8xf32, #tpu.memory_space<vmem>>, vector<16x8xf32>
      tpu.vector_store %arg7[%c0_17, %c0_18], %23 {strides = array<i32>} : memref<16x8xf32, #tpu.memory_space<vmem>>, vector<16x8xf32>,
    } else {
    }
    return
  }
  func.func @transform_0(%arg0: i32, %arg1: i32, %arg2: i32, %arg3: i32) -> (i32, i32) {
    %c0_i32 = arith.constant 0 : i32
    return %arg0, %arg3 : i32, i32
  }
  func.func @transform_1(%arg0: i32, %arg1: i32, %arg2: i32, %arg3: i32) -> (i32, i32, i32) {
    %c0_i32 = arith.constant 0 : i32
    return %arg2, %arg3, %arg1 : i32, i32, i32
  }
  func.func @transform_2(%arg0: i32, %arg1: i32, %arg2: i32, %arg3: i32) -> (i32, i32) {
    %c0_i32 = arith.constant 0 : i32
    %c0_i32_0 = arith.constant 0 : i32
    return %arg0, %c0_i32 : i32, i32
  }
  func.func @transform_3(%arg0: i32, %arg1: i32, %arg2: i32, %arg3: i32) -> (i32, i32) {
    %c0_i32 = arith.constant 0 : i32
    return %arg0, %arg1 : i32, i32
  }
}

module attributes {stable_mosaic.version = 11 : i64} {
  func.func @_conv_pool_kernel(%arg0: i32, %arg1: i32, %arg2: i32, %arg3: i32, %arg4: memref<16x144xbf16, #tpu.memory_space<vmem>>, %arg5: memref<1x144x8xbf16, #tpu.memory_space<vmem>>, %arg6: memref<16x1xf32, #tpu.memory_space<vmem>>, %arg7: memref<16x8xf32, #tpu.memory_space<vmem>>, %arg8: memref<16x8xf32, #tpu.memory_space<vmem>>, %arg9: memref<16x8xf32, #tpu.memory_space<vmem>>) attributes {dimension_semantics = [#tpu.dimension_semantics<parallel>, #tpu.dimension_semantics<parallel>, #tpu.dimension_semantics<arbitrary>, #tpu.dimension_semantics<arbitrary>], iteration_bounds = array<i64: 1, 1, 1, 1>, scalar_prefetch = 0 : i64, scratch_operands = 2 : i64, tpu.core_type = #tpu.core_type<tc>, window_params = [{transform_indices = @transform_0, window_bounds = array<i64: 16, 144>}, {transform_indices = @transform_1, window_bounds = array<i64: 1, 144, 8>}, {transform_indices = @transform_2, window_bounds = array<i64: 16, 1>}, {transform_indices = @transform_3, window_bounds = array<i64: 16, 8>}]} {
    %c0_i32 = arith.constant 0 : i32
    %0 = arith.cmpi eq, %arg3, %c0_i32 : i32
    %1 = arith.extui %0 : i1 to i32
    %c0_i32_0 = arith.constant 0 : i32
    %2 = arith.cmpi ne, %1, %c0_i32_0 : i32
    scf.if %2 {
      %cst_11 = arith.constant 0.000000e+00 : f32
      %13 = vector.broadcast %cst_11 : f32 to vector<16x8xf32>
      %c0_12 = arith.constant 0 : index
      %c0_13 = arith.constant 0 : index
      %14 = vector.load %arg8[%c0_12, %c0_13] : memref<16x8xf32, #tpu.memory_space<vmem>>, vector<16x8xf32>
      tpu.vector_store %arg8[%c0_12, %c0_13], %13 {strides = array<i32>} : memref<16x8xf32, #tpu.memory_space<vmem>>, vector<16x8xf32>,
    } else {
    }
    %c0 = arith.constant 0 : index
    %c0_1 = arith.constant 0 : index
    %3 = vector.load %arg8[%c0, %c0_1] : memref<16x8xf32, #tpu.memory_space<vmem>>, vector<16x8xf32>
    %c0_2 = arith.constant 0 : index
    %c0_3 = arith.constant 0 : index
    %4 = vector.load %arg4[%c0_2, %c0_3] : memref<16x144xbf16, #tpu.memory_space<vmem>>, vector<16x144xbf16>
    %c0_4 = arith.constant 0 : index
    %c0_5 = arith.constant 0 : index
    %c0_6 = arith.constant 0 : index
    %5 = vector.load %arg5[%c0_4, %c0_5, %c0_6] : memref<1x144x8xbf16, #tpu.memory_space<vmem>>, vector<1x144x8xbf16>
    %6 = vector.shape_cast %5 : vector<1x144x8xbf16> to vector<144x8xbf16>
    %cst = arith.constant dense<0.000000e+00> : vector<16x8xf32>
    %7 = tpu.matmul %4, %6, %cst {dimension_numbers = #tpu.dot_dimension_numbers<[1], [0], [0], [1], [0, 0, 1, 1], [], []>} : vector<16x144xbf16>, vector<144x8xbf16>, vector<16x8xf32> -> vector<16x8xf32>
    %8 = arith.addf %3, %7 : vector<16x8xf32>
    %c0_7 = arith.constant 0 : index
    %c0_8 = arith.constant 0 : index
    %9 = vector.load %arg8[%c0_7, %c0_8] : memref<16x8xf32, #tpu.memory_space<vmem>>, vector<16x8xf32>
    tpu.vector_store %arg8[%c0_7, %c0_8], %8 {strides = array<i32>} : memref<16x8xf32, #tpu.memory_space<vmem>>, vector<16x8xf32>,
    %c0_i32_9 = arith.constant 0 : i32
    %10 = arith.cmpi eq, %arg3, %c0_i32_9 : i32
    %11 = arith.extui %10 : i1 to i32
    %c0_i32_10 = arith.constant 0 : i32
    %12 = arith.cmpi ne, %11, %c0_i32_10 : i32
    scf.if %12 {
      %c0_11 = arith.constant 0 : index
      %c0_12 = arith.constant 0 : index
      %13 = vector.load %arg8[%c0_11, %c0_12] : memref<16x8xf32, #tpu.memory_space<vmem>>, vector<16x8xf32>
      %c0_13 = arith.constant 0 : index
      %c0_14 = arith.constant 0 : index
      %14 = vector.load %arg6[%c0_13, %c0_14] : memref<16x1xf32, #tpu.memory_space<vmem>>, vector<16x1xf32>
      %15 = vector.broadcast %14 : vector<16x1xf32> to vector<16x8xf32>
      %16 = arith.addf %13, %15 : vector<16x8xf32>
      %cst_15 = arith.constant 0.000000e+00 : f32
      %17 = vector.broadcast %cst_15 : f32 to vector<16x8xf32>
      %18 = arith.maximumf %16, %17 : vector<16x8xf32>
      %c0_16 = arith.constant 0 : index
      %c0_17 = arith.constant 0 : index
      %19 = vector.load %arg7[%c0_16, %c0_17] : memref<16x8xf32, #tpu.memory_space<vmem>>, vector<16x8xf32>
      tpu.vector_store %arg7[%c0_16, %c0_17], %18 {strides = array<i32>} : memref<16x8xf32, #tpu.memory_space<vmem>>, vector<16x8xf32>,
    } else {
    }
    return
  }
  func.func @transform_0(%arg0: i32, %arg1: i32, %arg2: i32, %arg3: i32) -> (i32, i32) {
    %c0_i32 = arith.constant 0 : i32
    return %arg0, %arg3 : i32, i32
  }
  func.func @transform_1(%arg0: i32, %arg1: i32, %arg2: i32, %arg3: i32) -> (i32, i32, i32) {
    %c0_i32 = arith.constant 0 : i32
    return %arg2, %arg3, %arg1 : i32, i32, i32
  }
  func.func @transform_2(%arg0: i32, %arg1: i32, %arg2: i32, %arg3: i32) -> (i32, i32) {
    %c0_i32 = arith.constant 0 : i32
    %c0_i32_0 = arith.constant 0 : i32
    return %arg0, %c0_i32 : i32, i32
  }
  func.func @transform_3(%arg0: i32, %arg1: i32, %arg2: i32, %arg3: i32) -> (i32, i32) {
    %c0_i32 = arith.constant 0 : i32
    return %arg0, %arg1 : i32, i32
  }
}

module attributes {stable_mosaic.version = 11 : i64} {
  func.func @_fc_head_kernel(%arg0: memref<8x16xbf16, #tpu.memory_space<vmem>>, %arg1: memref<16x32xbf16, #tpu.memory_space<vmem>>, %arg2: memref<1x32xf32, #tpu.memory_space<vmem>>, %arg3: memref<32x32xbf16, #tpu.memory_space<vmem>>, %arg4: memref<1x32xf32, #tpu.memory_space<vmem>>, %arg5: memref<8x32xf32, #tpu.memory_space<vmem>>) attributes {dimension_semantics = [], scalar_prefetch = 0 : i64, scratch_operands = 0 : i64, tpu.core_type = #tpu.core_type<tc>} {
    %c0 = arith.constant 0 : index
    %c0_0 = arith.constant 0 : index
    %0 = vector.load %arg0[%c0, %c0_0] : memref<8x16xbf16, #tpu.memory_space<vmem>>, vector<8x16xbf16>
    %c0_1 = arith.constant 0 : index
    %c0_2 = arith.constant 0 : index
    %1 = vector.load %arg1[%c0_1, %c0_2] : memref<16x32xbf16, #tpu.memory_space<vmem>>, vector<16x32xbf16>
    %cst = arith.constant dense<0.000000e+00> : vector<8x32xf32>
    %2 = tpu.matmul %0, %1, %cst {dimension_numbers = #tpu.dot_dimension_numbers<[1], [0], [0], [1], [0, 0, 1, 1], [], []>} : vector<8x16xbf16>, vector<16x32xbf16>, vector<8x32xf32> -> vector<8x32xf32>
    %c0_3 = arith.constant 0 : index
    %c0_4 = arith.constant 0 : index
    %3 = vector.load %arg2[%c0_3, %c0_4] : memref<1x32xf32, #tpu.memory_space<vmem>>, vector<1x32xf32>
    %4 = vector.broadcast %3 : vector<1x32xf32> to vector<8x32xf32>
    %5 = arith.addf %2, %4 : vector<8x32xf32>
    %cst_5 = arith.constant 0.000000e+00 : f32
    %6 = vector.broadcast %cst_5 : f32 to vector<8x32xf32>
    %7 = arith.maximumf %5, %6 : vector<8x32xf32>
    %8 = arith.truncf %7 : vector<8x32xf32> to vector<8x32xbf16>
    %c0_6 = arith.constant 0 : index
    %c0_7 = arith.constant 0 : index
    %9 = vector.load %arg3[%c0_6, %c0_7] : memref<32x32xbf16, #tpu.memory_space<vmem>>, vector<32x32xbf16>
    %cst_8 = arith.constant dense<0.000000e+00> : vector<8x32xf32>
    %10 = tpu.matmul %8, %9, %cst_8 {dimension_numbers = #tpu.dot_dimension_numbers<[1], [0], [0], [1], [0, 0, 1, 1], [], []>} : vector<8x32xbf16>, vector<32x32xbf16>, vector<8x32xf32> -> vector<8x32xf32>
    %c0_9 = arith.constant 0 : index
    %c0_10 = arith.constant 0 : index
    %11 = vector.load %arg4[%c0_9, %c0_10] : memref<1x32xf32, #tpu.memory_space<vmem>>, vector<1x32xf32>
    %12 = vector.broadcast %11 : vector<1x32xf32> to vector<8x32xf32>
    %13 = arith.addf %10, %12 : vector<8x32xf32>
    %cst_11 = arith.constant 0.000000e+00 : f32
    %14 = vector.broadcast %cst_11 : f32 to vector<8x32xf32>
    %15 = arith.maximumf %13, %14 : vector<8x32xf32>
    %c0_12 = arith.constant 0 : index
    %c0_13 = arith.constant 0 : index
    %16 = vector.load %arg5[%c0_12, %c0_13] : memref<8x32xf32, #tpu.memory_space<vmem>>, vector<8x32xf32>
    tpu.vector_store %arg5[%c0_12, %c0_13], %15 {strides = array<i32>} : memref<8x32xf32, #tpu.memory_space<vmem>>, vector<8x32xf32>,
    return
  }
}

module attributes {stable_mosaic.version = 11 : i64} {
  func.func @_conv_pool_kernel(%arg0: i32, %arg1: i32, %arg2: i32, %arg3: i32, %arg4: memref<16x144xbf16, #tpu.memory_space<vmem>>, %arg5: memref<1x144x2xbf16, #tpu.memory_space<vmem>>, %arg6: memref<16x1xf32, #tpu.memory_space<vmem>>, %arg7: memref<16x2xf32, #tpu.memory_space<vmem>>, %arg8: memref<16x2xf32, #tpu.memory_space<vmem>>, %arg9: memref<16x2xf32, #tpu.memory_space<vmem>>) attributes {dimension_semantics = [#tpu.dimension_semantics<parallel>, #tpu.dimension_semantics<parallel>, #tpu.dimension_semantics<arbitrary>, #tpu.dimension_semantics<arbitrary>], iteration_bounds = array<i64: 1, 1, 4, 1>, scalar_prefetch = 0 : i64, scratch_operands = 2 : i64, tpu.core_type = #tpu.core_type<tc>, window_params = [{transform_indices = @transform_0, window_bounds = array<i64: 16, 144>}, {transform_indices = @transform_1, window_bounds = array<i64: 1, 144, 2>}, {transform_indices = @transform_2, window_bounds = array<i64: 16, 1>}, {transform_indices = @transform_3, window_bounds = array<i64: 16, 2>}]} {
    %c0_i32 = arith.constant 0 : i32
    %0 = arith.cmpi eq, %arg3, %c0_i32 : i32
    %1 = arith.extui %0 : i1 to i32
    %c0_i32_0 = arith.constant 0 : i32
    %2 = arith.cmpi ne, %1, %c0_i32_0 : i32
    scf.if %2 {
      %cst_15 = arith.constant 0.000000e+00 : f32
      %23 = vector.broadcast %cst_15 : f32 to vector<16x2xf32>
      %c0_16 = arith.constant 0 : index
      %c0_17 = arith.constant 0 : index
      %24 = vector.load %arg8[%c0_16, %c0_17] : memref<16x2xf32, #tpu.memory_space<vmem>>, vector<16x2xf32>
      tpu.vector_store %arg8[%c0_16, %c0_17], %23 {strides = array<i32>} : memref<16x2xf32, #tpu.memory_space<vmem>>, vector<16x2xf32>,
    } else {
    }
    %c0 = arith.constant 0 : index
    %c0_1 = arith.constant 0 : index
    %3 = vector.load %arg8[%c0, %c0_1] : memref<16x2xf32, #tpu.memory_space<vmem>>, vector<16x2xf32>
    %c0_2 = arith.constant 0 : index
    %c0_3 = arith.constant 0 : index
    %4 = vector.load %arg4[%c0_2, %c0_3] : memref<16x144xbf16, #tpu.memory_space<vmem>>, vector<16x144xbf16>
    %c0_4 = arith.constant 0 : index
    %c0_5 = arith.constant 0 : index
    %c0_6 = arith.constant 0 : index
    %5 = vector.load %arg5[%c0_4, %c0_5, %c0_6] : memref<1x144x2xbf16, #tpu.memory_space<vmem>>, vector<1x144x2xbf16>
    %6 = vector.shape_cast %5 : vector<1x144x2xbf16> to vector<144x2xbf16>
    %cst = arith.constant dense<0.000000e+00> : vector<16x2xf32>
    %7 = tpu.matmul %4, %6, %cst {dimension_numbers = #tpu.dot_dimension_numbers<[1], [0], [0], [1], [0, 0, 1, 1], [], []>} : vector<16x144xbf16>, vector<144x2xbf16>, vector<16x2xf32> -> vector<16x2xf32>
    %8 = arith.addf %3, %7 : vector<16x2xf32>
    %c0_7 = arith.constant 0 : index
    %c0_8 = arith.constant 0 : index
    %9 = vector.load %arg8[%c0_7, %c0_8] : memref<16x2xf32, #tpu.memory_space<vmem>>, vector<16x2xf32>
    tpu.vector_store %arg8[%c0_7, %c0_8], %8 {strides = array<i32>} : memref<16x2xf32, #tpu.memory_space<vmem>>, vector<16x2xf32>,
    %c0_i32_9 = arith.constant 0 : i32
    %10 = arith.cmpi eq, %arg3, %c0_i32_9 : i32
    %c0_i32_10 = arith.constant 0 : i32
    %11 = arith.cmpi eq, %arg2, %c0_i32_10 : i32
    %12 = arith.andi %10, %11 : i1
    %13 = arith.extui %12 : i1 to i32
    %c0_i32_11 = arith.constant 0 : i32
    %14 = arith.cmpi ne, %13, %c0_i32_11 : i32
    scf.if %14 {
      %c0_15 = arith.constant 0 : index
      %c0_16 = arith.constant 0 : index
      %23 = vector.load %arg8[%c0_15, %c0_16] : memref<16x2xf32, #tpu.memory_space<vmem>>, vector<16x2xf32>
      %c0_17 = arith.constant 0 : index
      %c0_18 = arith.constant 0 : index
      %24 = vector.load %arg6[%c0_17, %c0_18] : memref<16x1xf32, #tpu.memory_space<vmem>>, vector<16x1xf32>
      %25 = vector.broadcast %24 : vector<16x1xf32> to vector<16x2xf32>
      %26 = arith.addf %23, %25 : vector<16x2xf32>
      %cst_19 = arith.constant 0.000000e+00 : f32
      %27 = vector.broadcast %cst_19 : f32 to vector<16x2xf32>
      %28 = arith.maximumf %26, %27 : vector<16x2xf32>
      %c0_20 = arith.constant 0 : index
      %c0_21 = arith.constant 0 : index
      %29 = vector.load %arg9[%c0_20, %c0_21] : memref<16x2xf32, #tpu.memory_space<vmem>>, vector<16x2xf32>
      tpu.vector_store %arg9[%c0_20, %c0_21], %28 {strides = array<i32>} : memref<16x2xf32, #tpu.memory_space<vmem>>, vector<16x2xf32>,
    } else {
    }
    %c0_i32_12 = arith.constant 0 : i32
    %15 = arith.cmpi sgt, %arg2, %c0_i32_12 : i32
    %16 = arith.andi %10, %15 : i1
    %17 = arith.extui %16 : i1 to i32
    %c0_i32_13 = arith.constant 0 : i32
    %18 = arith.cmpi ne, %17, %c0_i32_13 : i32
    scf.if %18 {
      %c0_15 = arith.constant 0 : index
      %c0_16 = arith.constant 0 : index
      %23 = vector.load %arg9[%c0_15, %c0_16] : memref<16x2xf32, #tpu.memory_space<vmem>>, vector<16x2xf32>
      %c0_17 = arith.constant 0 : index
      %c0_18 = arith.constant 0 : index
      %24 = vector.load %arg8[%c0_17, %c0_18] : memref<16x2xf32, #tpu.memory_space<vmem>>, vector<16x2xf32>
      %c0_19 = arith.constant 0 : index
      %c0_20 = arith.constant 0 : index
      %25 = vector.load %arg6[%c0_19, %c0_20] : memref<16x1xf32, #tpu.memory_space<vmem>>, vector<16x1xf32>
      %26 = vector.broadcast %25 : vector<16x1xf32> to vector<16x2xf32>
      %27 = arith.addf %24, %26 : vector<16x2xf32>
      %cst_21 = arith.constant 0.000000e+00 : f32
      %28 = vector.broadcast %cst_21 : f32 to vector<16x2xf32>
      %29 = arith.maximumf %27, %28 : vector<16x2xf32>
      %30 = arith.maximumf %23, %29 : vector<16x2xf32>
      %c0_22 = arith.constant 0 : index
      %c0_23 = arith.constant 0 : index
      %31 = vector.load %arg9[%c0_22, %c0_23] : memref<16x2xf32, #tpu.memory_space<vmem>>, vector<16x2xf32>
      tpu.vector_store %arg9[%c0_22, %c0_23], %30 {strides = array<i32>} : memref<16x2xf32, #tpu.memory_space<vmem>>, vector<16x2xf32>,
    } else {
    }
    %c3_i32 = arith.constant 3 : i32
    %19 = arith.cmpi eq, %arg2, %c3_i32 : i32
    %20 = arith.andi %10, %19 : i1
    %21 = arith.extui %20 : i1 to i32
    %c0_i32_14 = arith.constant 0 : i32
    %22 = arith.cmpi ne, %21, %c0_i32_14 : i32
    scf.if %22 {
      %c0_15 = arith.constant 0 : index
      %c0_16 = arith.constant 0 : index
      %23 = vector.load %arg9[%c0_15, %c0_16] : memref<16x2xf32, #tpu.memory_space<vmem>>, vector<16x2xf32>
      %c0_17 = arith.constant 0 : index
      %c0_18 = arith.constant 0 : index
      %24 = vector.load %arg7[%c0_17, %c0_18] : memref<16x2xf32, #tpu.memory_space<vmem>>, vector<16x2xf32>
      tpu.vector_store %arg7[%c0_17, %c0_18], %23 {strides = array<i32>} : memref<16x2xf32, #tpu.memory_space<vmem>>, vector<16x2xf32>,
    } else {
    }
    return
  }
  func.func @transform_0(%arg0: i32, %arg1: i32, %arg2: i32, %arg3: i32) -> (i32, i32) {
    %c0_i32 = arith.constant 0 : i32
    return %arg0, %arg3 : i32, i32
  }
  func.func @transform_1(%arg0: i32, %arg1: i32, %arg2: i32, %arg3: i32) -> (i32, i32, i32) {
    %c0_i32 = arith.constant 0 : i32
    return %arg2, %arg3, %arg1 : i32, i32, i32
  }
  func.func @transform_2(%arg0: i32, %arg1: i32, %arg2: i32, %arg3: i32) -> (i32, i32) {
    %c0_i32 = arith.constant 0 : i32
    %c0_i32_0 = arith.constant 0 : i32
    return %arg0, %c0_i32 : i32, i32
  }
  func.func @transform_3(%arg0: i32, %arg1: i32, %arg2: i32, %arg3: i32) -> (i32, i32) {
    %c0_i32 = arith.constant 0 : i32
    return %arg0, %arg1 : i32, i32
  }
}

</mosaic_0001>

<bundles_post_ra>
// kernel: vgg16_forward.14
= control target key start
LH: loop header
LB: loop body
LE: loop exit
PB: predicated region body
PF: predicated region fallthrough
CT: control target
= control target key end

     0   :  { %s680_s12 = smov 0   ;;  %s682_s13 = smov 0   ;;  %s751_s0 = inlined_call_operand.vmem [shape: bf16[4,27], index: 0, kind: input, shape index: {}]   ;;  %s752_s1 = inlined_call_operand.vmem [shape: bf16[1,27,2048], index: 1, kind: input, shape index: {}]   ;;  %s753_s2 = inlined_call_operand.vmem [shape: f32[4,1], index: 2, kind: input, shape index: {}]   ;;  %s754_s3 = inlined_call_operand.vmem [shape: f32[4,2048], index: 3, kind: output, shape index: {}]  }
   0x1   :  { %s684_s14 = smov 0   ;;  %s686_s15 = smov 0  }
   0x2   :  { %s688_s16 = smov 0  }
   0x3 LB: > { %s35_s17 = sadd.s32 1, %s651_s15  ;;  %p85_p1 = scmp.ne.s32.totalorder %s643_s13, %s639_s12  ;;  %s655_s16 = sphi %s688_s16, %s13_s16   ;;  %s651_s15 = sphi %s686_s15, %s758_s15   ;;  %s647_s14 = sphi %s684_s14, %s757_s14   ;;  %s643_s13 = sphi %s682_s13, %s756_s13   ;;  %s639_s12 = sphi %s680_s12, %s755_s12  }
   0x4   : > { %p37_p0 = scmp.ge.s32.totalorder %s35_s17, 8  ;;  %p86_p2 = scmp.eq.s32.totalorder %s655_s16, 0 }
   0x5   : > { %s78_s19 = sadd.s32 1, %s643_s13  ;;  %p540_p5 = scmp.ge.s32.totalorder %s655_s16, 8 }
   0x6   : > { %s760_s17 = smov (%p37_p0, %s35_s17), 0  ;;  %p87_p3 = por %p86_p2, %p85_p1 }
   0x7   : > { %s74_s18 = ssub.s32 %s651_s15, %s760_s17  ;;  %182 = sbr.rel (%p540_p5) target bundleno = 20 (0x14), region = 24 }
   0x8   : > { %p76_p4 = scmp.eq.s32.totalorder %s74_s18, 0 }
   0xa   : > { %s715_s20 = scalar_select %p76_p4, %s643_s13, %s78_s19  }
   0xc   : > { %185 = sbr.rel (!%p87_p3) target bundleno = 20 (0x14), region = 28  ;;  %s187_s21 = sand.u32 (%p87_p3), 1, %s643_s13  }
   0xd   : > { %s568_s22 = sshll.u32 (%p87_p3), %s651_s15, 3  ;;  %s541_s23 = sshll.u32 (%p87_p3), %s187_s21, 5 }
   0xe   : > { %s197_s26 = scalar_lea.vmem (%p87_p3), %s752_s1, %s568_s22  ;;  %s189_s27 = scalar_lea.vmem (%p87_p3), [#allocation4], %s541_s23 }
   0xf   : > { %v232_v0 = vld [vmem:[%s197_s26] sm:$0xff] (%p87_p3) }
  0x10   : > { %v234_v1 = vld [vmem:[%s197_s26 + $0x40] sm:$0xff] (%p87_p3)  ;;  %233 = vst [vmem:[%s189_s27] sm:$0xff] (%p87_p3), %v232_v0 }
  0x11   : > { %v236_v2 = vld [vmem:[%s197_s26 + $0x80] sm:$0xff]  ;;  %235 = vst [vmem:[%s189_s27 + $0x8] sm:$0xff] %v234_v1 }
  0x12   : > { %v238_v3 = vld [vmem:[%s197_s26 + $0xc0] sm:$0xff]  ;;  %237 = vst [vmem:[%s189_s27 + $0x10] sm:$0xff] %v236_v2 }
  0x13   : > { %239 = vst [vmem:[%s189_s27 + $0x18] sm:$0xff] %v238_v3 }
  0x14 PF: > { %p544_p6 = scmp.ge.s32.totalorder %s655_s16, 1  ;;  %p244_p7 = scmp.lt.s32.totalorder %s655_s16, 9 }
  0x16   : > { %p245_p8 = pnand %p544_p6, %p244_p7 }
  0x17   : > { %s251_s28 = sand.u32 (!%p245_p8), 1, %s639_s12   ;;  %s546_s8 = sshll.u32 (!%p245_p8), %s647_s14, 1 }
  0x18   : > { %248 = sbr.rel (%p245_p8) target bundleno = 177 (0xb1), region = 66  ;;  %s545_s29 = sshll.u32 (!%p245_p8), %s251_s28, 5 }
  0x19   : > { %s253_s5 = scalar_lea.vmem (!%p245_p8), [#allocation4], %s545_s29  ;;  %p305_p9 = scmp.lt.s32.totalorder (!%p245_p8), %s546_s8, 15 }
  0x1d   : > { %vm346_vm0 = vcmask 1044480   ;;  %vm347_vm1 = vcmask 1045504   ;;  %v657_v4 = vmov 65535   ;;  %v394_v6 = vld [vmem:[%s753_s2] sm:$0xf]  ;;  %v658_v8 = vmov 0  }
  0x1e   : > { %v348_v5 = vsel %vm346_vm0, 4294967295, %v657_v4  ;;  %616 = vset.pattern.permute.xlu0 %v658_v8  ;;  %v558_v9 = vld [vmem:[%s253_s5 + $0x10] sm:$0xf]  ;;  %v572_v10 = vld [vmem:[%s253_s5 + $0x14] sm:$0x30]  ;;  %vm342_vm2 = vcmask 220160  }
  0x1f   : > { %v349_v7 = vsel %vm347_vm1, %v348_v5, 0  ;;  %v571_v11 = vld [vmem:[%s253_s5 + $0x14] sm:$0xf]  ;;  %397 = vperm.xlu0 %616, %v394_v6   ;;  %v559_v12 = vor.u32 %v572_v10, %v558_v9  ;;  %v560_v13 = vld [vmem:[%s253_s5 + $0x18] sm:$0x30]  ;;  %s762_s8 = smov (!%p305_p9, %s546_s8), 15 }
  0x20   : > { %v563_v14 = vor.u32 %v571_v11, %v560_v13  ;;  %v550_v15 = vld [vmem:[%s253_s5] sm:$0xf]  ;;  %v570_v16 = vld [vmem:[%s253_s5 + $0x4] sm:$0xf0]  ;;  %v569_v18 = vld [vmem:[%s253_s5 + $0x4] sm:$0xf] }
  0x21   : > { %v351_v17 = vand.u32 %v559_v12, %v349_v7  ;;  %v552_v19 = vld [vmem:[%s253_s5 + $0x8] sm:$0xf0]  ;;  %v551_v21 = vor.u32 %v570_v16, %v550_v15  ;;  %v319_v23 = vld [vmem:[%s751_s0] sm:$0x3]  ;;  %v659_v24 = vmov 839922192  }
  0x22   : > { %v354_v20 = vand.u32 %v563_v14, %v349_v7  ;;  %v555_v22 = vor.u32 %v569_v18, %v552_v19  ;;  %v400_v25 = vunpack.c.l.s4 %v659_v24  ;;  %vm385_vm3 = vcmask 1043456   ;;  %s547_s9 = sshll.u32 %s762_s8, 2 }
  0x23   : > { %362 = vmatpush.bf16.msra.mxu0 %v351_v17  ;;  %s310_s12 = scalar_lea.vmem %s754_s3, %s547_s9 }
  0x24   : > { %375 = vmatpush.bf16.msra.mxu1 %v354_v20  ;;  %v401_v26 = vunpack.c.0.s8 %v400_v25 }
  0x27   : > { %363 = vmatpush.bf16.msra.mxu0 %v551_v21 }
  0x28   : > { %376 = vmatpush.bf16.msra.mxu1 %v555_v22 }
  0x2a   : > { %564 = vmatmul.msk.bf16.vlgmr.msra.gmra.mxu0 %vm342_vm2, %v319_v23 }
  0x2b   : > { %565 = vmatmul.msk.bf16.vlgmr.msra.gmra.mxu1 %vm342_vm2, %v319_v23 }
  0x91   : > { %v398_v27 = vpop.permute.xlu0 %397 }
  0x92   : > { %v402_v30 = vperm.slane %v398_v27, %v401_v26 }
  0xa7   : > { %v365_v28 = vpop.f32.mrf.mxu0 }
  0xa8   : > { %v378_v29 = vpop.f32.mrf.mxu1 }
  0xa9   : > { %v384_v31 = vrot.slane %v378_v29, 4 }
  0xab   : > { %v386_v32 = vsel %vm385_vm3, %v365_v28, %v384_v31 }
  0xac   : > { %v404_v33 = vadd.f32 %v402_v30, %v386_v32 }
  0xae   : > { %v405_v34 = vmax.f32 %v404_v33, 0.0 }
  0xaf   : > { %v367_v35 = vpop.f32.mrf.mxu0 }
  0xb0   : > { %406 = vst [vmem:[%s310_s12] sm:$0xff] %v405_v34  ;;  %v380_v36 = vpop.f32.mrf.mxu1 }
  0xb1 PF: > { %s13_s16 = sadd.s32 1, %s655_s16   ;;  %s755_s12 = smov %s643_s13 }
  0xb2   : > { %p10_p10 = scmp.ge.s32.totalorder %s13_s16, 10   ;;  %s756_s13 = smov %s715_s20 }
  0xb3   : > { %s757_s14 = smov %s651_s15  ;;  %s758_s15 = smov %s760_s17 }
  0xb4   :  { %12 = sbr.rel (!%p10_p10) target bundleno = 3 (0x3), region = 119 }

// kernel: vgg16_forward.15
= control target key start
LH: loop header
LB: loop body
LE: loop exit
PB: predicated region body
PF: predicated region fallthrough
CT: control target
= control target key end

     0   :  { %s767_s12 = smov 0   ;;  %s769_s13 = smov 0   ;;  %s870_s0 = inlined_call_operand.vmem [shape: bf16[4,36], index: 0, kind: input, shape index: {}]   ;;  %s871_s1 = inlined_call_operand.vmem [shape: bf16[4,36,512], index: 1, kind: input, shape index: {}]   ;;  %s872_s2 = inlined_call_operand.vmem [shape: f32[4,1], index: 2, kind: input, shape index: {}]   ;;  %s873_s3 = inlined_call_operand.vmem [shape: f32[4,512], index: 3, kind: output, shape index: {}]  }
   0x1   :  { %s771_s14 = smov 0   ;;  %s773_s15 = smov 0  }
   0x2   :  { %s775_s16 = smov 0   ;;  %s777_s17 = smov 0  }
   0x3   :  { %s779_s18 = smov 0  }
   0x4 LB: > { %s31_s19 = sadd.s32 1, %s733_s16  ;;  %s35_s20 = sadd.s32 1, %s737_s17  ;;  %s741_s18 = sphi %s779_s18, %s13_s18   ;;  %s737_s17 = sphi %s777_s17, %s879_s17   ;;  %s733_s16 = sphi %s775_s16, %s878_s16   ;;  %s729_s15 = sphi %s773_s15, %s877_s15   ;;  %s725_s14 = sphi %s771_s14, %s876_s14   ;;  %s721_s13 = sphi %s769_s13, %s875_s13   ;;  %s717_s12 = sphi %s767_s12, %s874_s12  }
   0x5   : > { %p33_p0 = scmp.ge.s32.totalorder %s31_s19, 4  ;;  %p85_p1 = scmp.ne.s32.totalorder %s721_s13, %s717_s12 }
   0x6   : > { %p86_p2 = scmp.eq.s32.totalorder %s741_s18, 0  ;;  %s78_s24 = sadd.s32 1, %s721_s13 }
   0x7   : > { %s881_s19 = smov (%p33_p0, %s31_s19), 0  ;;  %s883_s20 = smov (!%p33_p0, %s35_s20), %s737_s17 }
   0x8   : > { %p87_p3 = por %p86_p2, %p85_p1  ;;  %p37_p4 = scmp.ge.s32.totalorder %s883_s20, 2 }
   0x9   : > { %s71_s21 = ssub.s32 %s733_s16, %s881_s19  ;;  %p585_p6 = scmp.ge.s32.totalorder %s741_s18, 8 }
   0xa   : > { %s885_s20 = smov (%p37_p4, %s883_s20), 0 }
   0xb   : > { %s74_s22 = ssub.s32 %s737_s17, %s885_s20  ;;  %182 = sbr.rel (%p585_p6) target bundleno = 29 (0x1d), region = 24 }
   0xc   : > { %s75_s23 = sor.u32 %s74_s22, %s71_s21 }
   0xd   : > { %p76_p5 = scmp.eq.s32.totalorder %s75_s23, 0 }
   0xf   : > { %s818_s25 = scalar_select %p76_p5, %s721_s13, %s78_s24  }
  0x10   : > { %185 = sbr.rel (!%p87_p3) target bundleno = 29 (0x1d), region = 28  ;;  %s187_s26 = sand.u32 (%p87_p3), 1, %s721_s13  }
  0x11   : > { %s621_s27 = smul.u32 (%p87_p3), 40, %s187_s26  ;;  %s586_s28 = sshll.u32 (%p87_p3), %s737_s17, 1 }
  0x12   : > { %s622_s29 = smul.u32 (%p87_p3), 20, %s733_s16 }
  0x13   : > { %s189_s8 = scalar_lea.vmem (%p87_p3), [#allocation4], %s621_s27 }
  0x14   : > { %s195_s30 = sadd.s32 (%p87_p3), %s622_s29, %s586_s28 }
  0x15   : > { %s587_s4 = sshll.u32 %s195_s30, 2 }
  0x16   : > { %s197_s7 = scalar_lea.vmem %s871_s1, %s587_s4 }
  0x17   : > { %v234_v0 = vld [vmem:[%s197_s7] sm:$0xff]  ;;  %v236_v1 = vld [vmem:[%s197_s7 + $0x10] sm:$0xff] }
  0x18   : > { %v238_v2 = vld [vmem:[%s197_s7 + $0x20] sm:$0xff]  ;;  %235 = vst [vmem:[%s189_s8] sm:$0xff] %v234_v0  ;;  %v240_v3 = vld [vmem:[%s197_s7 + $0x30] sm:$0xff] }
  0x19   : > { %237 = vst [vmem:[%s189_s8 + $0x8] sm:$0xff] %v236_v1  ;;  %v242_v4 = vld [vmem:[%s197_s7 + $0x40] sm:$0xff] }
  0x1a   : > { %239 = vst [vmem:[%s189_s8 + $0x10] sm:$0xff] %v238_v2 }
  0x1b   : > { %241 = vst [vmem:[%s189_s8 + $0x18] sm:$0xff] %v240_v3 }
  0x1c   : > { %243 = vst [vmem:[%s189_s8 + $0x20] sm:$0xff] %v242_v4 }
  0x1d PF: > { %p588_p7 = scmp.ge.s32.totalorder %s741_s18, 1  ;;  %p248_p8 = scmp.lt.s32.totalorder %s741_s18, 9 }
  0x1f   : > { %p249_p9 = pnand %p588_p7, %p248_p8 }
  0x20   : > { %s255_s9 = sand.u32 (!%p249_p9), 1, %s717_s12   ;;  %s589_s10 = sshll.u32 (!%p249_p9), %s729_s15, 1 }
  0x21   : > { %252 = sbr.rel (%p249_p9) target bundleno = 332 (0x14c), region = 66  ;;  %p309_p10 = scmp.lt.s32.totalorder (!%p249_p9), %s589_s10, 3 }
  0x22   : > { %s623_s11 = smul.u32 (!%p249_p9), 40, %s255_s9  ;;  %p399_p11 = scmp.eq.s32.totalorder (!%p249_p9), %s725_s14, 0 }
  0x24   : > { %s257_s21 = scalar_lea.vmem (!%p249_p9), [#allocation4], %s623_s11 }
  0x26   : > { %s887_s10 = smov (!%p309_p10, %s589_s10), 3  ;;  %v328_v5 = vld [vmem:[%s257_s21 + $0x20] sm:$0x33]  ;;  %vm358_vm0 = vcmask 1041408   ;;  %v601_v8 = vld [vmem:[%s257_s21 + $0x10] sm:$0xf] }
  0x27   : > { %v342_v6 = vunpack.c.l.b16 %v328_v5  ;;  %v343_v7 = vunpack.c.h.b16 %v328_v5  ;;  %s590_s22 = sshll.u32 %s887_s10, 2  ;;  %v617_v11 = vld [vmem:[%s257_s21 + $0x14] sm:$0xf0]  ;;  %v616_v12 = vld [vmem:[%s257_s21 + $0x14] sm:$0xf]  ;;  %vm354_vm1 = vcmask 293888  }
  0x28   : > { %s834_s26 = scalar_lea.vmem %s873_s3, %s590_s22  ;;  %v603_v13 = vld [vmem:[%s257_s21 + $0x18] sm:$0xf0]  ;;  %v602_v16 = vor.u32 %v617_v11, %v601_v8  ;;  %v593_v18 = vld [vmem:[%s257_s21] sm:$0xf]  ;;  %v615_v19 = vld [vmem:[%s257_s21 + $0x4] sm:$0xf0] }
  0x29   : > { %v348_v9 = vpack.c.b16 %v342_v6, %v342_v6  ;;  %v349_v10 = vpack.c.b16 %v343_v7, %v343_v7  ;;  %v606_v17 = vor.u32 %v616_v12, %v603_v13  ;;  %v614_v20 = vld [vmem:[%s257_s21 + $0x4] sm:$0xf]  ;;  %v595_v21 = vld [vmem:[%s257_s21 + $0x8] sm:$0xf0]  ;;  %v594_v22 = vor.u32 %v615_v19, %v593_v18  ;;  %v323_v24 = vld [vmem:[%s870_s0] sm:$0x3] }
  0x2a   : > { %v598_v23 = vor.u32 %v614_v20, %v595_v21  ;;  %vm394_vm2 = vcmask 1043456   ;;  %v405_v31 = vld [vmem:[%s872_s2] sm:$0xf] (%p399_p11)  ;;  %v743_v32 = vmov (%p399_p11), 0   ;;  %v744_v33 = vmov (%p399_p11), 839922192  }
  0x2b   : > { %v360_v14 = vsel %vm358_vm0, %v348_v9, 0  ;;  %v363_v15 = vsel %vm358_vm0, %v349_v10, 0  ;;  %685 = vset.pattern.permute.xlu0 (%p399_p11), %v743_v32  ;;  %v411_v34 = vunpack.c.l.s4 (%p399_p11), %v744_v33 }
  0x2c   : > { %370 = vmatpush.bf16.msra.mxu0 %v360_v14  ;;  %383 = vmatpush.bf16.msra.mxu1 %v363_v15 }
  0x2d   : > { %408 = vperm.xlu0 (%p399_p11), %685, %v405_v31   ;;  %v412_v35 = vunpack.c.0.s8 (%p399_p11), %v411_v34 }
  0x30   : > { %371 = vmatpush.bf16.msra.mxu0 %v602_v16  ;;  %384 = vmatpush.bf16.msra.mxu1 %v606_v17 }
  0x34   : > { %372 = vmatpush.bf16.msra.mxu0 %v594_v22  ;;  %385 = vmatpush.bf16.msra.mxu1 %v598_v23 }
  0x37   : > { %607 = vmatmul.msk.bf16.vlgmr.msra.gmra.mxu0 %vm354_vm1, %v323_v24  ;;  %608 = vmatmul.msk.bf16.vlgmr.msra.gmra.mxu1 %vm354_vm1, %v323_v24 }
  0x9f   : > { %v409_v36 = vpop.permute.xlu0 (%p399_p11), %408 }
  0xa0   : > { %v413_v38 = vperm.slane (%p399_p11), %v409_v36, %v412_v35 }
  0xb4   : > { %v374_v25 = vpop.f32.mrf.mxu0  ;;  %v387_v26 = vpop.f32.mrf.mxu1 }
  0xb5   : > { %v393_v27 = vrot.slane %v387_v26, 4 }
  0xb7   : > { %v395_v28 = vsel %vm394_vm2, %v374_v25, %v393_v27 }
  0xb8   : > { %398 = vst [vmem:[#allocation2] sm:$0xff] %v395_v28  ;;  %403 = sbr.rel (!%p399_p11) target bundleno = 197 (0xc5), region = 78 }
  0xbc   : > { %v376_v29 = vpop.f32.mrf.mxu0  ;;  %v389_v30 = vpop.f32.mrf.mxu1 }
  0xbf   : > { %v404_v37 = vld [vmem:[#allocation2] sm:$0xff] }
  0xc0   : > { %v415_v39 = vadd.f32 %v413_v38, %v404_v37 }
  0xc2   : > { %v416_v40 = vmax.f32 %v415_v39, 0.0 }
  0xc4   : > { %417 = vst [vmem:[#allocation3] sm:$0xff] %v416_v40 }
  0xc5 PF: > { %p418_p12 = scmp.gt.s32.totalorder %s725_s14, 0 }
  0xc6   : > { %v425_v41 = vld [vmem:[%s872_s2] sm:$0xf] (%p418_p12)  ;;  %v745_v42 = vmov (%p418_p12), 0   ;;  %v746_v43 = vmov (%p418_p12), 839922192  }
  0xc7   : > { %422 = sbr.rel (!%p418_p12) target bundleno = 324 (0x144), region = 82  ;;  %686 = vset.pattern.permute.xlu0 (%p418_p12), %v745_v42  ;;  %v431_v44 = vunpack.c.l.s4 (%p418_p12), %v746_v43  ;;  %v424_v47 = vld [vmem:[#allocation2] sm:$0xff] (%p418_p12) }
  0xc8   : > { %428 = vperm.xlu0 (%p418_p12), %686, %v425_v41  }
  0xc9   : > { %v432_v45 = vunpack.c.0.s8 (%p418_p12), %v431_v44 }
  0xcb   : > { %v423_v50 = vld [vmem:[#allocation3] sm:$0xff] (%p418_p12) }
 0x13a   : > { %v429_v46 = vpop.permute.xlu0 %428 }
 0x13b   : > { %v433_v48 = vperm.slane %v429_v46, %v432_v45 }
 0x13d   : > { %v435_v49 = vadd.f32 %v433_v48, %v424_v47 }
 0x13f   : > { %v436_v51 = vmax.f32 %v435_v49, 0.0 }
 0x141   : > { %v437_v52 = vmax.f32 %v423_v50, %v436_v51 }
 0x143   : > { %438 = vst [vmem:[#allocation3] sm:$0xff] %v437_v52 }
 0x144 PF: > { %p439_p13 = scmp.eq.s32.totalorder %s725_s14, 3 }
 0x146   : > { %443 = sbr.rel (!%p439_p13) target bundleno = 332 (0x14c), region = 86 }
 0x14a   : > { %v444_v53 = vld [vmem:[#allocation3] sm:$0xff] (%p439_p13) }
 0x14b   : > { %445 = vst [vmem:[%s834_s26] sm:$0xff] %v444_v53 }
 0x14c PF: > { %s13_s18 = sadd.s32 1, %s741_s18   ;;  %s874_s12 = smov %s721_s13 }
 0x14d   : > { %p10_p0 = scmp.ge.s32.totalorder %s13_s18, 10   ;;  %s875_s13 = smov %s818_s25 }
 0x14e   : > { %s876_s14 = smov %s733_s16  ;;  %s877_s15 = smov %s737_s17 }
 0x14f   : > { %s878_s16 = smov %s881_s19  ;;  %s879_s17 = smov %s885_s20 }
 0x150   :  { %12 = sbr.rel (!%p10_p0) target bundleno = 4 (0x4), region = 127 }

// kernel: vgg16_forward.16
= control target key start
LH: loop header
LB: loop body
LE: loop exit
PB: predicated region body
PF: predicated region fallthrough
CT: control target
= control target key end

     0   :  { %s683_s12 = smov 0   ;;  %s685_s13 = smov 0   ;;  %s754_s0 = inlined_call_operand.vmem [shape: bf16[8,36], index: 0, kind: input, shape index: {}]   ;;  %s755_s1 = inlined_call_operand.vmem [shape: bf16[1,36,512], index: 1, kind: input, shape index: {}]   ;;  %s756_s2 = inlined_call_operand.vmem [shape: f32[8,1], index: 2, kind: input, shape index: {}]   ;;  %s757_s3 = inlined_call_operand.vmem [shape: f32[8,512], index: 3, kind: output, shape index: {}]  }
   0x1   :  { %s687_s14 = smov 0   ;;  %s689_s15 = smov 0  }
   0x2   :  { %s691_s16 = smov 0  }
   0x3 LB: > { %s35_s17 = sadd.s32 1, %s656_s15  ;;  %p85_p1 = scmp.ne.s32.totalorder %s648_s13, %s644_s12  ;;  %s660_s16 = sphi %s691_s16, %s13_s16   ;;  %s656_s15 = sphi %s689_s15, %s761_s15   ;;  %s652_s14 = sphi %s687_s14, %s760_s14   ;;  %s648_s13 = sphi %s685_s13, %s759_s13   ;;  %s644_s12 = sphi %s683_s12, %s758_s12  }
   0x4   : > { %p37_p0 = scmp.ge.s32.totalorder %s35_s17, 2  ;;  %p86_p2 = scmp.eq.s32.totalorder %s660_s16, 0 }
   0x5   : > { %s78_s19 = sadd.s32 1, %s648_s13  ;;  %p547_p5 = scmp.ge.s32.totalorder %s660_s16, 2 }
   0x6   : > { %s763_s17 = smov (%p37_p0, %s35_s17), 0  ;;  %p87_p3 = por %p86_p2, %p85_p1 }
   0x7   : > { %s74_s18 = ssub.s32 %s656_s15, %s763_s17  ;;  %182 = sbr.rel (%p547_p5) target bundleno = 21 (0x15), region = 24 }
   0x8   : > { %p76_p4 = scmp.eq.s32.totalorder %s74_s18, 0 }
   0xa   : > { %s718_s20 = scalar_select %p76_p4, %s648_s13, %s78_s19  }
   0xc   : > { %185 = sbr.rel (!%p87_p3) target bundleno = 21 (0x15), region = 28  ;;  %s187_s21 = sand.u32 (%p87_p3), 1, %s648_s13  }
   0xd   : > { %s573_s22 = sshll.u32 (%p87_p3), %s656_s15, 3  ;;  %s578_s23 = smul.u32 (%p87_p3), 40, %s187_s21 }
   0xe   : > { %s197_s26 = scalar_lea.vmem (%p87_p3), %s755_s1, %s573_s22 }
   0xf   : > { %v234_v0 = vld [vmem:[%s197_s26] sm:$0xff] (%p87_p3)  ;;  %v236_v1 = vld [vmem:[%s197_s26 + $0x10] sm:$0xff] (%p87_p3)  ;;  %s189_s27 = scalar_lea.vmem (%p87_p3), [#allocation4], %s578_s23 }
  0x10   : > { %v238_v2 = vld [vmem:[%s197_s26 + $0x20] sm:$0xff] (%p87_p3)  ;;  %235 = vst [vmem:[%s189_s27] sm:$0xff] (%p87_p3), %v234_v0  ;;  %v240_v3 = vld [vmem:[%s197_s26 + $0x30] sm:$0xff] (%p87_p3) }
  0x11   : > { %237 = vst [vmem:[%s189_s27 + $0x8] sm:$0xff] %v236_v1  ;;  %v242_v4 = vld [vmem:[%s197_s26 + $0x40] sm:$0xff] }
  0x12   : > { %239 = vst [vmem:[%s189_s27 + $0x10] sm:$0xff] %v238_v2 }
  0x13   : > { %241 = vst [vmem:[%s189_s27 + $0x18] sm:$0xff] %v240_v3 }
  0x14   : > { %243 = vst [vmem:[%s189_s27 + $0x20] sm:$0xff] %v242_v4 }
  0x15 PF: > { %p550_p6 = scmp.ge.s32.totalorder %s660_s16, 1  ;;  %p248_p7 = scmp.lt.s32.totalorder %s660_s16, 3 }
  0x17   : > { %p249_p8 = pnand %p550_p6, %p248_p7 }
  0x18   : > { %s255_s28 = sand.u32 (!%p249_p8), 1, %s644_s12   ;;  %s551_s8 = sshll.u32 (!%p249_p8), %s652_s14, 1 }
  0x19   : > { %252 = sbr.rel (%p249_p8) target bundleno = 182 (0xb6), region = 66  ;;  %p309_p9 = scmp.lt.s32.totalorder (!%p249_p8), %s551_s8, 3 }
  0x1a   : > { %s579_s29 = smul.u32 (!%p249_p8), 40, %s255_s28 }
  0x1c   : > { %s257_s5 = scalar_lea.vmem (!%p249_p8), [#allocation4], %s579_s29 }
  0x1e   : > { %v662_v5 = vmov 0   ;;  %v402_v6 = vld [vmem:[%s756_s2] sm:$0xff]  ;;  %vm360_vm0 = vcmask 1041408   ;;  %v563_v10 = vld [vmem:[%s257_s5 + $0x10] sm:$0xf]  ;;  %vm356_vm1 = vcmask 293888  }
  0x1f   : > { %621 = vset.pattern.permute.xlu0 %v662_v5  ;;  %v330_v7 = vld [vmem:[%s257_s5 + $0x20] sm:$0x33]  ;;  %v577_v13 = vld [vmem:[%s257_s5 + $0x14] sm:$0xf0]  ;;  %v576_v14 = vld [vmem:[%s257_s5 + $0x14] sm:$0xf] }
  0x20   : > { %405 = vperm.xlu0 %621, %v402_v6   ;;  %v344_v8 = vunpack.c.l.b16 %v330_v7  ;;  %v345_v9 = vunpack.c.h.b16 %v330_v7  ;;  %v565_v15 = vld [vmem:[%s257_s5 + $0x18] sm:$0xf0]  ;;  %v564_v18 = vor.u32 %v577_v13, %v563_v10  ;;  %v555_v20 = vld [vmem:[%s257_s5] sm:$0xf]  ;;  %v575_v21 = vld [vmem:[%s257_s5 + $0x4] sm:$0xf0] }
  0x21   : > { %v568_v19 = vor.u32 %v576_v14, %v565_v15  ;;  %v574_v22 = vld [vmem:[%s257_s5 + $0x4] sm:$0xf]  ;;  %v557_v23 = vld [vmem:[%s257_s5 + $0x8] sm:$0xf0]  ;;  %v556_v24 = vor.u32 %v575_v21, %v555_v20  ;;  %v325_v26 = vld [vmem:[%s754_s0] sm:$0xf] }
  0x22   : > { %v350_v11 = vpack.c.b16 %v344_v8, %v344_v8  ;;  %v351_v12 = vpack.c.b16 %v345_v9, %v345_v9  ;;  %v560_v25 = vor.u32 %v574_v22, %v557_v23  ;;  %s765_s8 = smov (!%p309_p9, %s551_s8), 3 }
  0x23   : > { %s552_s9 = sshll.u32 %s765_s8, 3 }
  0x24   : > { %v362_v16 = vsel %vm360_vm0, %v350_v11, 0  ;;  %v365_v17 = vsel %vm360_vm0, %v351_v12, 0  ;;  %s314_s12 = scalar_lea.vmem %s757_s3, %s552_s9 }
  0x25   : > { %372 = vmatpush.bf16.msra.mxu0 %v362_v16  ;;  %385 = vmatpush.bf16.msra.mxu1 %v365_v17 }
  0x29   : > { %373 = vmatpush.bf16.msra.mxu0 %v564_v18  ;;  %386 = vmatpush.bf16.msra.mxu1 %v568_v19 }
  0x2d   : > { %374 = vmatpush.bf16.msra.mxu0 %v556_v24  ;;  %387 = vmatpush.bf16.msra.mxu1 %v560_v25 }
  0x30   : > { %569 = vmatmul.msk.bf16.vlgmr.msra.gmra.mxu0 %vm356_vm1, %v325_v26  ;;  %570 = vmatmul.msk.bf16.vlgmr.msra.gmra.mxu1 %vm356_vm1, %v325_v26 }
  0x92   : > { %v406_v27 = vpop.permute.xlu0 %405 }
  0xad   : > { %v376_v28 = vpop.f32.mrf.mxu0  ;;  %v389_v29 = vpop.f32.mrf.mxu1 }
  0xae   : > { %v408_v30 = vadd.f32 %v406_v27, %v376_v28  ;;  %v409_v31 = vadd.f32 %v406_v27, %v389_v29 }
  0xb0   : > { %v410_v32 = vmax.f32 %v408_v30, 0.0  ;;  %v411_v33 = vmax.f32 %v409_v31, 0.0 }
  0xb2   : > { %412 = vst [vmem:[%s314_s12] sm:$0xff] %v410_v32 }
  0xb3   : > { %413 = vst [vmem:[%s314_s12 + $0x8] sm:$0xff] %v411_v33 }
  0xb5   : > { %v378_v34 = vpop.f32.mrf.mxu0  ;;  %v391_v35 = vpop.f32.mrf.mxu1 }
  0xb6 PF: > { %s13_s16 = sadd.s32 1, %s660_s16   ;;  %s758_s12 = smov %s648_s13 }
  0xb7   : > { %p10_p10 = scmp.ge.s32.totalorder %s13_s16, 4   ;;  %s759_s13 = smov %s718_s20 }
  0xb8   : > { %s760_s14 = smov %s656_s15  ;;  %s761_s15 = smov %s763_s17 }
  0xb9   :  { %12 = sbr.rel (!%p10_p10) target bundleno = 3 (0x3), region = 119 }

// kernel: vgg16_forward.17
= control target key start
LH: loop header
LB: loop body
LE: loop exit
PB: predicated region body
PF: predicated region fallthrough
CT: control target
= control target key end

     0   :  { %s611_s12 = smov 0   ;;  %s613_s13 = smov 0   ;;  %s660_s0 = inlined_call_operand.vmem [shape: bf16[8,72], index: 0, kind: input, shape index: {}]   ;;  %s661_s1 = inlined_call_operand.vmem [shape: bf16[4,72,128], index: 1, kind: input, shape index: {}]   ;;  %s662_s2 = inlined_call_operand.vmem [shape: f32[8,1], index: 2, kind: input, shape index: {}]   ;;  %s663_s3 = inlined_call_operand.vmem [shape: f32[8,128], index: 3, kind: output, shape index: {}]  }
   0x1   :  { %s615_s14 = smov 0  }
   0x2 LB: > { %s31_s15 = sadd.s32 1, %s583_s13  ;;  %p503_p0 = scmp.ge.s32.totalorder %s587_s14, 1  ;;  %s587_s14 = sphi %s615_s14, %s13_s14   ;;  %s583_s13 = sphi %s613_s13, %s665_s13   ;;  %s579_s12 = sphi %s611_s12, %s664_s12  }
   0x3   : > { %p33_p1 = scmp.ge.s32.totalorder %s31_s15, 4  ;;  %p200_p2 = scmp.lt.s32.totalorder %s587_s14, 5 }
   0x5   : > { %s667_s15 = smov (%p33_p1, %s31_s15), 0  ;;  %p201_p3 = pnand %p503_p0, %p200_p2 }
   0x6   : > { %p252_p4 = scmp.lt.s32.totalorder (!%p201_p3), %s579_s12, 3  ;;  %p342_p5 = scmp.eq.s32.totalorder (!%p201_p3), %s579_s12, 0 }
   0x7   : > { %204 = sbr.rel (%p201_p3) target bundleno = 314 (0x13a), region = 32 }
   0xc   : > { %s253_s16 = scalar_select %p252_p4, %s579_s12, 3  ;;  %vm323_vm0 = vcmask 1043456   ;;  %v282_v8 = vld [vmem:[%s660_s0] sm:$0xf]  ;;  %vm319_vm1 = vcmask 588800   ;;  %v589_v12 = vmov (%p342_p5), 0  }
   0xd   : > { %v348_v11 = vld [vmem:[%s662_s2] sm:$0xff] (%p342_p5)  ;;  %563 = vset.pattern.permute.xlu0 (%p342_p5), %v589_v12 }
   0xe   : > { %s535_s17 = smul.u32 36, %s253_s16  ;;  %351 = vperm.xlu0 (%p342_p5), %563, %v348_v11  }
  0x10   : > { %s262_s20 = scalar_lea.vmem %s661_s1, %s535_s17 }
  0x11   : > { %v291_v0 = vld [vmem:[%s262_s20 + $0x20] sm:$0xf]  ;;  %v531_v4 = vld [vmem:[%s262_s20 + $0x18] sm:$0xff]  ;;  %v530_v5 = vld [vmem:[%s262_s20 + $0x10] sm:$0xff] }
  0x12   : > { %v309_v1 = vunpack.c.l.b16 %v291_v0  ;;  %v529_v6 = vld [vmem:[%s262_s20 + $0x8] sm:$0xff]  ;;  %v528_v7 = vld [vmem:[%s262_s20] sm:$0xff] }
  0x14   : > { %v314_v2 = vpack.c.b16 %v309_v1, %v309_v1 }
  0x16   : > { %v325_v3 = vsel %vm323_vm0, %v314_v2, 0 }
  0x17   : > { %330 = vmatpush.bf16.msra.mxu0 %v325_v3 }
  0x1b   : > { %331 = vmatpush.bf16.msra.mxu0 %v531_v4 }
  0x1f   : > { %332 = vmatpush.bf16.msra.mxu0 %v530_v5 }
  0x23   : > { %333 = vmatpush.bf16.msra.mxu0 %v529_v6 }
  0x27   : > { %334 = vmatpush.bf16.msra.mxu0 %v528_v7 }
  0x2a   : > { %521 = vmatmul.msk.bf16.vlgmr.msra.gmra.mxu0 %vm319_vm1, %v282_v8 }
  0x80   : > { %v352_v14 = vpop.permute.xlu0 (%p342_p5), %351 }
  0xa7   : > { %v336_v9 = vpop.f32.mrf.mxu0 }
  0xa8   : > { %341 = vst [vmem:[#allocation2] sm:$0xff] %v336_v9 }
  0xab   : > { %346 = sbr.rel (!%p342_p5) target bundleno = 181 (0xb5), region = 40 }
  0xaf   : > { %v338_v10 = vpop.f32.mrf.mxu0  ;;  %v347_v13 = vld [vmem:[#allocation2] sm:$0xff] (%p342_p5) }
  0xb0   : > { %v354_v15 = vadd.f32 %v352_v14, %v347_v13 }
  0xb2   : > { %v355_v16 = vmax.f32 %v354_v15, 0.0 }
  0xb4   : > { %356 = vst [vmem:[#allocation3] sm:$0xff] %v355_v16 }
  0xb5 PF: > { %p357_p6 = scmp.gt.s32.totalorder %s579_s12, 0 }
  0xb6   : > { %v364_v17 = vld [vmem:[%s662_s2] sm:$0xff] (%p357_p6)  ;;  %v590_v18 = vmov (%p357_p6), 0  }
  0xb7   : > { %361 = sbr.rel (!%p357_p6) target bundleno = 306 (0x132), region = 44  ;;  %564 = vset.pattern.permute.xlu0 (%p357_p6), %v590_v18  ;;  %v363_v19 = vld [vmem:[#allocation2] sm:$0xff] (%p357_p6) }
  0xb8   : > { %367 = vperm.xlu0 (%p357_p6), %564, %v364_v17  }
  0xbb   : > { %v362_v22 = vld [vmem:[#allocation3] sm:$0xff] (%p357_p6) }
 0x12a   : > { %v368_v20 = vpop.permute.xlu0 %367 }
 0x12b   : > { %v370_v21 = vadd.f32 %v368_v20, %v363_v19 }
 0x12d   : > { %v371_v23 = vmax.f32 %v370_v21, 0.0 }
 0x12f   : > { %v372_v24 = vmax.f32 %v362_v22, %v371_v23 }
 0x131   : > { %373 = vst [vmem:[#allocation3] sm:$0xff] %v372_v24 }
 0x132 PF: > { %p374_p7 = scmp.eq.s32.totalorder %s579_s12, 3 }
 0x134   : > { %378 = sbr.rel (!%p374_p7) target bundleno = 314 (0x13a), region = 48 }
 0x138   : > { %v379_v25 = vld [vmem:[#allocation3] sm:$0xff] (%p374_p7) }
 0x139   : > { %380 = vst [vmem:[%s663_s3] sm:$0xff] %v379_v25 }
 0x13a PF: > { %s13_s14 = sadd.s32 1, %s587_s14   ;;  %s664_s12 = smov %s583_s13 }
 0x13b   : > { %p10_p8 = scmp.ge.s32.totalorder %s13_s14, 6   ;;  %s665_s13 = smov %s667_s15 }
 0x13d   :  { %12 = sbr.rel (!%p10_p8) target bundleno = 2 (0x2), region = 84 }

// kernel: vgg16_forward.18
= control target key start
LH: loop header
LB: loop body
LE: loop exit
PB: predicated region body
PF: predicated region fallthrough
CT: control target
= control target key end

     0   :  { %v147_v1 = vmov 0   ;;  %vm70_vm0 = vcmask 1043456   ;;  %vm66_vm1 = vcmask 588800   ;;  %s198_s1 = inlined_call_operand.vmem [shape: bf16[1,72,128], index: 1, kind: input, shape index: {}]   ;;  %s199_s2 = inlined_call_operand.vmem [shape: f32[16,1], index: 2, kind: input, shape index: {}]   ;;  %s200_s0 = inlined_call_operand.vmem [shape: bf16[16,72], index: 0, kind: input, shape index: {}]   ;;  %s201_s3 = inlined_call_operand.vmem [shape: f32[16,128], index: 3, kind: output, shape index: {}]  }
   0x1   :  { %v33_v0 = vld [vmem:[%s198_s1 + $0x20] sm:$0xf]  ;;  %146 = vset.pattern.permute.xlu0 %v147_v1  ;;  %v144_v6 = vld [vmem:[%s198_s1 + $0x18] sm:$0xff]  ;;  %v98_v7 = vld [vmem:[%s199_s2 + $0x8] sm:$0xff] }
   0x2   :  { %v56_v2 = vunpack.c.l.b16 %v33_v0  ;;  %v97_v3 = vld [vmem:[%s199_s2] sm:$0xff]  ;;  %v143_v8 = vld [vmem:[%s198_s1 + $0x10] sm:$0xff]  ;;  %v142_v9 = vld [vmem:[%s198_s1 + $0x8] sm:$0xff] }
   0x3   :  { %101 = vperm.xlu0 %146, %v97_v3   ;;  %v141_v10 = vld [vmem:[%s198_s1] sm:$0xff] }
   0x4   :  { %v61_v4 = vpack.c.b16 %v56_v2, %v56_v2  ;;  %v140_v11 = vld [vmem:[%s200_s0] sm:$0xff] }
   0x6   :  { %v72_v5 = vsel %vm70_vm0, %v61_v4, 0 }
   0x7   :  { %77 = vmatpush.bf16.msra.mxu0 %v72_v5 }
   0xb   :  { %78 = vmatpush.bf16.msra.mxu0 %v144_v6  ;;  %106 = vperm.xlu0 %146, %v98_v7  }
   0xf   :  { %79 = vmatpush.bf16.msra.mxu0 %v143_v8 }
  0x13   :  { %80 = vmatpush.bf16.msra.mxu0 %v142_v9 }
  0x17   :  { %81 = vmatpush.bf16.msra.mxu0 %v141_v10 }
  0x1a   :  { %139 = vmatmul.msk.bf16.vlgmr.msra.gmra.mxu0 %vm66_vm1, %v140_v11 }
  0x75   :  { %v102_v12 = vpop.permute.xlu0 %101 }
  0x7d   :  { %v107_v16 = vpop.permute.xlu0 %106 }
  0x97   :  { %v83_v13 = vpop.f32.mrf.mxu0 }
  0x98   :  { %v109_v14 = vadd.f32 %v102_v12, %v83_v13 }
  0x9a   :  { %v111_v15 = vmax.f32 %v109_v14, 0.0 }
  0x9c   :  { %113 = vst [vmem:[%s201_s3] sm:$0xff] %v111_v15 }
  0x9f   :  { %v85_v17 = vpop.f32.mrf.mxu0 }
  0xa0   :  { %v110_v18 = vadd.f32 %v107_v16, %v85_v17 }
  0xa2   :  { %v112_v19 = vmax.f32 %v110_v18, 0.0 }
  0xa4   :  { %114 = vst [vmem:[%s201_s3 + $0x8] sm:$0xff] %v112_v19 }

// kernel: vgg16_forward.19
= control target key start
LH: loop header
LB: loop body
LE: loop exit
PB: predicated region body
PF: predicated region fallthrough
CT: control target
= control target key end

     0   :  { %v227_v5 = vmov 0   ;;  %vm106_vm0 = vcmask 130048   ;;  %s299_s1 = inlined_call_operand.vmem [shape: bf16[1,144,128], index: 1, kind: input, shape index: {}]   ;;  %s300_s0 = inlined_call_operand.vmem [shape: bf16[16,144], index: 0, kind: input, shape index: {}]   ;;  %s301_s2 = inlined_call_operand.vmem [shape: f32[16,1], index: 2, kind: input, shape index: {}]   ;;  %s302_s3 = inlined_call_operand.vmem [shape: f32[16,128], index: 3, kind: output, shape index: {}]  }
   0x1   :  { %v223_v0 = vld [vmem:[%s299_s1 + $0x38] sm:$0xff]  ;;  %v222_v1 = vld [vmem:[%s299_s1 + $0x30] sm:$0xff]  ;;  %v224_v2 = vld [vmem:[%s299_s1 + $0x40] sm:$0xff]  ;;  %226 = vset.pattern.permute.xlu0 %v227_v5 }
   0x2   :  { %110 = vmatpush.bf16.msra.mxu0 %v223_v0  ;;  %v214_v3 = vld [vmem:[%s300_s0 + $0x4] sm:$0xf]  ;;  %v173_v4 = vld [vmem:[%s300_s0 + $0x8] sm:$0xf0]  ;;  %131 = vmatpush.bf16.msra.mxu1 %v224_v2  ;;  %v219_v11 = vld [vmem:[%s299_s1 + $0x18] sm:$0xff] }
   0x3   :  { %v176_v6 = vor.u32 %v214_v3, %v173_v4  ;;  %v147_v7 = vld [vmem:[%s301_s2] sm:$0xff]  ;;  %v221_v8 = vld [vmem:[%s299_s1 + $0x28] sm:$0xff]  ;;  %v218_v12 = vld [vmem:[%s299_s1 + $0x10] sm:$0xff] }
   0x4   :  { %151 = vperm.xlu0 %226, %v147_v7   ;;  %v220_v9 = vld [vmem:[%s299_s1 + $0x20] sm:$0xff]  ;;  %v148_v10 = vld [vmem:[%s301_s2 + $0x8] sm:$0xff] }
   0x5   :  { %213 = vmatmul.msk.bf16.vlgmr.msra.gmra.mxu1 %vm106_vm0, %v176_v6  ;;  %v217_v13 = vld [vmem:[%s299_s1 + $0x8] sm:$0xff]  ;;  %v216_v14 = vld [vmem:[%s299_s1] sm:$0xff] }
   0x6   :  { %111 = vmatpush.bf16.msra.mxu0 %v222_v1  ;;  %v171_v15 = vld [vmem:[%s300_s0] sm:$0xf]  ;;  %v215_v16 = vld [vmem:[%s300_s0 + $0x4] sm:$0xf0] }
   0x7   :  { %v172_v17 = vor.u32 %v215_v16, %v171_v15 }
   0xa   :  { %112 = vmatpush.bf16.msra.mxu0 %v221_v8 }
   0xc   :  { %156 = vperm.xlu0 %226, %v148_v10  }
   0xe   :  { %113 = vmatpush.bf16.msra.mxu0 %v220_v9 }
  0x12   :  { %114 = vmatpush.bf16.msra.mxu0 %v219_v11 }
  0x16   :  { %115 = vmatpush.bf16.msra.mxu0 %v218_v12 }
  0x1a   :  { %116 = vmatpush.bf16.msra.mxu0 %v217_v13 }
  0x1e   :  { %117 = vmatpush.bf16.msra.mxu0 %v216_v14 }
  0x21   :  { %118 = vmatmul.bf16.vlgmr.msra.gmra.mxu0 %v172_v17 }
  0x76   :  { %v152_v19 = vpop.permute.xlu0 %151 }
  0x7e   :  { %v157_v27 = vpop.permute.xlu0 %156 }
  0x82   :  { %v133_v18 = vpop.f32.mrf.mxu1 }
  0x8a   :  { %v135_v24 = vpop.f32.mrf.mxu1 }
  0x9e   :  { %v119_v20 = vpop.f32.mrf.mxu0 }
  0x9f   :  { %v134_v21 = vadd.f32 %v133_v18, %v119_v20 }
  0xa1   :  { %v159_v22 = vadd.f32 %v152_v19, %v134_v21 }
  0xa3   :  { %v161_v23 = vmax.f32 %v159_v22, 0.0 }
  0xa5   :  { %163 = vst [vmem:[%s302_s3] sm:$0xff] %v161_v23 }
  0xa6   :  { %v121_v25 = vpop.f32.mrf.mxu0 }
  0xa7   :  { %v136_v26 = vadd.f32 %v135_v24, %v121_v25 }
  0xa9   :  { %v160_v28 = vadd.f32 %v157_v27, %v136_v26 }
  0xab   :  { %v162_v29 = vmax.f32 %v160_v28, 0.0 }
  0xad   :  { %164 = vst [vmem:[%s302_s3 + $0x8] sm:$0xff] %v162_v29 }

// kernel: vgg16_forward.20
= control target key start
LH: loop header
LB: loop body
LE: loop exit
PB: predicated region body
PF: predicated region fallthrough
CT: control target
= control target key end

     0   :  { %s762_s12 = smov 0   ;;  %s764_s13 = smov 0   ;;  %s841_s0 = inlined_call_operand.vmem [shape: bf16[16,144], index: 0, kind: input, shape index: {}]   ;;  %s842_s1 = inlined_call_operand.vmem [shape: bf16[4,144,32], index: 1, kind: input, shape index: {}]   ;;  %s843_s2 = inlined_call_operand.vmem [shape: f32[16,1], index: 2, kind: input, shape index: {}]   ;;  %s844_s3 = inlined_call_operand.vmem [shape: f32[16,32], index: 3, kind: output, shape index: {}]  }
   0x1   :  { %s766_s14 = smov 0  }
   0x2 LB: > { %s31_s15 = sadd.s32 1, %s733_s13  ;;  %p617_p0 = scmp.ge.s32.totalorder %s737_s14, 1  ;;  %s737_s14 = sphi %s766_s14, %s13_s14   ;;  %s733_s13 = sphi %s764_s13, %s846_s13   ;;  %s729_s12 = sphi %s762_s12, %s845_s12  }
   0x3   : > { %p33_p1 = scmp.ge.s32.totalorder %s31_s15, 4  ;;  %p207_p2 = scmp.lt.s32.totalorder %s737_s14, 5 }
   0x5   : > { %s848_s15 = smov (%p33_p1, %s31_s15), 0  ;;  %p208_p3 = pnand %p617_p0, %p207_p2 }
   0x6   : > { %p269_p4 = scmp.lt.s32.totalorder (!%p208_p3), %s729_s12, 3  ;;  %p426_p5 = scmp.eq.s32.totalorder (!%p208_p3), %s729_s12, 0 }
   0x7   : > { %211 = sbr.rel (%p208_p3) target bundleno = 341 (0x155), region = 32 }
   0xc   : > { %s270_s16 = scalar_select %p269_p4, %s729_s12, 3  ;;  %v671_v1 = vld [vmem:[%s841_s0 + $0x4] sm:$0xf]  ;;  %v623_v2 = vld [vmem:[%s841_s0 + $0x8] sm:$0xf0]  ;;  %vm389_vm0 = vcmask 130048  }
   0xd   : > { %v626_v5 = vor.u32 %v671_v1, %v623_v2  ;;  %v621_v12 = vld [vmem:[%s841_s0] sm:$0xf]  ;;  %v672_v13 = vld [vmem:[%s841_s0 + $0x4] sm:$0xf0]  ;;  %vm301_vm1 = vcmask 261120   ;;  %v739_v15 = vmov 0.0  }
   0xe   : > { %s685_s17 = smul.u32 72, %s270_s16  ;;  %v622_v14 = vor.u32 %v672_v13, %v621_v12  ;;  %302 = vst.msk [vmem:[#allocation2] sm:$0xff] %vm301_vm1, %v739_v15  ;;  %v433_v26 = vld [vmem:[%s843_s2] sm:$0xff] (%p426_p5)  ;;  %v740_v27 = vmov (%p426_p5), 0   ;;  %v434_v28 = vld [vmem:[%s843_s2 + $0x8] sm:$0xff] (%p426_p5) }
   0xf   : > { %303 = vst.msk [vmem:[#allocation2 + $0x8] sm:$0xff] %vm301_vm1, %v739_v15  ;;  %713 = vset.pattern.permute.xlu0 (%p426_p5), %v740_v27 }
  0x10   : > { %s279_s20 = scalar_lea.vmem %s842_s1, %s685_s17  ;;  %437 = vperm.xlu0 (%p426_p5), %713, %v433_v26  }
  0x11   : > { %v680_v0 = vld [vmem:[%s279_s20 + $0x38] sm:$0xff]  ;;  %v679_v3 = vld [vmem:[%s279_s20 + $0x30] sm:$0xff]  ;;  %v681_v4 = vld [vmem:[%s279_s20 + $0x40] sm:$0xff] }
  0x12   : > { %393 = vmatpush.bf16.msra.mxu0 %v680_v0  ;;  %414 = vmatpush.bf16.msra.mxu1 %v681_v4  ;;  %v678_v6 = vld [vmem:[%s279_s20 + $0x28] sm:$0xff]  ;;  %v677_v7 = vld [vmem:[%s279_s20 + $0x20] sm:$0xff]  ;;  %v676_v8 = vld [vmem:[%s279_s20 + $0x18] sm:$0xff] }
  0x13   : > { %v675_v9 = vld [vmem:[%s279_s20 + $0x10] sm:$0xff]  ;;  %v674_v10 = vld [vmem:[%s279_s20 + $0x8] sm:$0xff]  ;;  %v673_v11 = vld [vmem:[%s279_s20] sm:$0xff] }
  0x15   : > { %663 = vmatmul.msk.bf16.vlgmr.msra.gmra.mxu1 %vm389_vm0, %v626_v5  ;;  %v304_v17 = vld [vmem:[#allocation2] sm:$0xff] }
  0x16   : > { %394 = vmatpush.bf16.msra.mxu0 %v679_v3  ;;  %v305_v22 = vld [vmem:[#allocation2 + $0x8] sm:$0xff] }
  0x18   : > { %442 = vperm.xlu0 (%p426_p5), %713, %v434_v28  }
  0x1a   : > { %395 = vmatpush.bf16.msra.mxu0 %v678_v6 }
  0x1e   : > { %396 = vmatpush.bf16.msra.mxu0 %v677_v7 }
  0x22   : > { %397 = vmatpush.bf16.msra.mxu0 %v676_v8 }
  0x26   : > { %398 = vmatpush.bf16.msra.mxu0 %v675_v9 }
  0x2a   : > { %399 = vmatpush.bf16.msra.mxu0 %v674_v10 }
  0x2e   : > { %400 = vmatpush.bf16.msra.mxu0 %v673_v11 }
  0x31   : > { %401 = vmatmul.bf16.vlgmr.msra.gmra.mxu0 %v622_v14 }
  0x82   : > { %v438_v30 = vpop.permute.xlu0 (%p426_p5), %437 }
  0x8a   : > { %v443_v34 = vpop.permute.xlu0 (%p426_p5), %442 }
  0x92   : > { %v416_v16 = vpop.f32.mrf.mxu1 }
  0x9a   : > { %v418_v21 = vpop.f32.mrf.mxu1 }
  0xae   : > { %v402_v18 = vpop.f32.mrf.mxu0 }
  0xaf   : > { %v417_v19 = vadd.f32 %v416_v16, %v402_v18 }
  0xb1   : > { %v421_v20 = vadd.f32 %v417_v19, %v304_v17 }
  0xb3   : > { %424 = vst.msk [vmem:[#allocation2] sm:$0xff] %vm301_vm1, %v421_v20 }
  0xb6   : > { %v404_v23 = vpop.f32.mrf.mxu0 }
  0xb7   : > { %v419_v24 = vadd.f32 %v418_v21, %v404_v23  ;;  %430 = sbr.rel (!%p426_p5) target bundleno = 200 (0xc8), region = 40 }
  0xb9   : > { %v422_v25 = vadd.f32 %v419_v24, %v305_v22 }
  0xba   : > { %v431_v29 = vld [vmem:[#allocation2] sm:$0xff] (%p426_p5) }
  0xbb   : > { %425 = vst.msk [vmem:[#allocation2 + $0x8] sm:$0xff] %vm301_vm1, %v422_v25  ;;  %v445_v31 = vadd.f32 (%p426_p5), %v438_v30, %v431_v29 }
  0xbd   : > { %v447_v32 = vmax.f32 %v445_v31, 0.0 }
  0xbf   : > { %449 = vst.msk [vmem:[#allocation3] sm:$0xff] %vm301_vm1, %v447_v32 }
  0xc2   : > { %v432_v33 = vld [vmem:[#allocation2 + $0x8] sm:$0xff] }
  0xc3   : > { %v446_v35 = vadd.f32 %v443_v34, %v432_v33 }
  0xc5   : > { %v448_v36 = vmax.f32 %v446_v35, 0.0 }
  0xc7   : > { %450 = vst.msk [vmem:[#allocation3 + $0x8] sm:$0xff] %vm301_vm1, %v448_v36 }
  0xc8 PF: > { %p451_p6 = scmp.gt.s32.totalorder %s729_s12, 0 }
  0xc9   : > { %v460_v37 = vld [vmem:[%s843_s2] sm:$0xff] (%p451_p6)  ;;  %v741_v38 = vmov (%p451_p6), 0   ;;  %v461_v39 = vld [vmem:[%s843_s2 + $0x8] sm:$0xff] (%p451_p6)  ;;  %v456_v43 = vld [vmem:[#allocation3] sm:$0xff] (%p451_p6) }
  0xca   : > { %455 = sbr.rel (!%p451_p6) target bundleno = 333 (0x14d), region = 44  ;;  %714 = vset.pattern.permute.xlu0 (%p451_p6), %v741_v38  ;;  %v458_v40 = vld [vmem:[#allocation2] sm:$0xff] (%p451_p6) }
  0xcb   : > { %464 = vperm.xlu0 (%p451_p6), %714, %v460_v37  }
  0xce   : > { %v459_v46 = vld [vmem:[#allocation2 + $0x8] sm:$0xff] (%p451_p6)  ;;  %v457_v49 = vld [vmem:[#allocation3 + $0x8] sm:$0xff] (%p451_p6) }
  0xd3   : > { %469 = vperm.xlu0 %714, %v461_v39  }
 0x13d   : > { %v465_v41 = vpop.permute.xlu0 %464 }
 0x13e   : > { %v472_v42 = vadd.f32 %v465_v41, %v458_v40 }
 0x140   : > { %v474_v44 = vmax.f32 %v472_v42, 0.0 }
 0x142   : > { %v476_v45 = vmax.f32 %v456_v43, %v474_v44 }
 0x144   : > { %478 = vst.msk [vmem:[#allocation3] sm:$0xff] %vm301_vm1, %v476_v45 }
 0x145   : > { %v470_v47 = vpop.permute.xlu0 %469 }
 0x146   : > { %v473_v48 = vadd.f32 %v470_v47, %v459_v46 }
 0x148   : > { %v475_v50 = vmax.f32 %v473_v48, 0.0 }
 0x14a   : > { %v477_v51 = vmax.f32 %v457_v49, %v475_v50 }
 0x14c   : > { %479 = vst.msk [vmem:[#allocation3 + $0x8] sm:$0xff] %vm301_vm1, %v477_v51 }
 0x14d PF: > { %p480_p7 = scmp.eq.s32.totalorder %s729_s12, 3 }
 0x14e   : > { %v485_v52 = vld [vmem:[#allocation3] sm:$0xff] (%p480_p7) }
 0x14f   : > { %484 = sbr.rel (!%p480_p7) target bundleno = 341 (0x155), region = 48  ;;  %487 = vst.msk [vmem:[%s844_s3] sm:$0xff] (%p480_p7), %vm301_vm1, %v485_v52 }
 0x153   : > { %v486_v53 = vld [vmem:[#allocation3 + $0x8] sm:$0xff] (%p480_p7) }
 0x154   : > { %488 = vst.msk [vmem:[%s844_s3 + $0x8] sm:$0xff] %vm301_vm1, %v486_v53 }
 0x155 PF: > { %s13_s14 = sadd.s32 1, %s737_s14   ;;  %s845_s12 = smov %s733_s13 }
 0x156   : > { %p10_p8 = scmp.ge.s32.totalorder %s13_s14, 6   ;;  %s846_s13 = smov %s848_s15 }
 0x158   :  { %12 = sbr.rel (!%p10_p8) target bundleno = 2 (0x2), region = 84 }

// kernel: vgg16_forward.21
= control target key start
LH: loop header
LB: loop body
LE: loop exit
PB: predicated region body
PF: predicated region fallthrough
CT: control target
= control target key end

     0   :  { %v230_v5 = vmov 0   ;;  %vm107_vm0 = vcmask 130048   ;;  %vm19_vm1 = vcmask 261120   ;;  %v231_v18 = vmov 0.0   ;;  %s309_s1 = inlined_call_operand.vmem [shape: bf16[1,144,32], index: 1, kind: input, shape index: {}]   ;;  %s310_s0 = inlined_call_operand.vmem [shape: bf16[16,144], index: 0, kind: input, shape index: {}]   ;;  %s311_s2 = inlined_call_operand.vmem [shape: f32[16,1], index: 2, kind: input, shape index: {}]   ;;  %s312_s3 = inlined_call_operand.vmem [shape: f32[16,32], index: 3, kind: output, shape index: {}]  }
   0x1   :  { %v225_v0 = vld [vmem:[%s309_s1 + $0x38] sm:$0xff]  ;;  %v224_v1 = vld [vmem:[%s309_s1 + $0x30] sm:$0xff]  ;;  %v226_v2 = vld [vmem:[%s309_s1 + $0x40] sm:$0xff]  ;;  %229 = vset.pattern.permute.xlu0 %v230_v5  ;;  %20 = vst.msk [vmem:[#allocation2] sm:$0xff] %vm19_vm1, %v231_v18 }
   0x2   :  { %111 = vmatpush.bf16.msra.mxu0 %v225_v0  ;;  %v216_v3 = vld [vmem:[%s310_s0 + $0x4] sm:$0xf]  ;;  %v175_v4 = vld [vmem:[%s310_s0 + $0x8] sm:$0xf0]  ;;  %132 = vmatpush.bf16.msra.mxu1 %v226_v2  ;;  %v221_v11 = vld [vmem:[%s309_s1 + $0x18] sm:$0xff]  ;;  %21 = vst.msk [vmem:[#allocation2 + $0x8] sm:$0xff] %vm19_vm1, %v231_v18 }
   0x3   :  { %v178_v6 = vor.u32 %v216_v3, %v175_v4  ;;  %v149_v7 = vld [vmem:[%s311_s2] sm:$0xff]  ;;  %v223_v8 = vld [vmem:[%s309_s1 + $0x28] sm:$0xff]  ;;  %v220_v12 = vld [vmem:[%s309_s1 + $0x10] sm:$0xff] }
   0x4   :  { %153 = vperm.xlu0 %229, %v149_v7   ;;  %v222_v9 = vld [vmem:[%s309_s1 + $0x20] sm:$0xff]  ;;  %v150_v10 = vld [vmem:[%s311_s2 + $0x8] sm:$0xff] }
   0x5   :  { %215 = vmatmul.msk.bf16.vlgmr.msra.gmra.mxu1 %vm107_vm0, %v178_v6  ;;  %v219_v13 = vld [vmem:[%s309_s1 + $0x8] sm:$0xff]  ;;  %v218_v14 = vld [vmem:[%s309_s1] sm:$0xff] }
   0x6   :  { %112 = vmatpush.bf16.msra.mxu0 %v224_v1  ;;  %v173_v15 = vld [vmem:[%s310_s0] sm:$0xf]  ;;  %v217_v16 = vld [vmem:[%s310_s0 + $0x4] sm:$0xf0] }
   0x7   :  { %v174_v17 = vor.u32 %v217_v16, %v173_v15 }
   0x8   :  { %v22_v20 = vld [vmem:[#allocation2] sm:$0xff] }
   0x9   :  { %v23_v25 = vld [vmem:[#allocation2 + $0x8] sm:$0xff] }
   0xa   :  { %113 = vmatpush.bf16.msra.mxu0 %v223_v8 }
   0xc   :  { %158 = vperm.xlu0 %229, %v150_v10  }
   0xe   :  { %114 = vmatpush.bf16.msra.mxu0 %v222_v9 }
  0x12   :  { %115 = vmatpush.bf16.msra.mxu0 %v221_v11 }
  0x16   :  { %116 = vmatpush.bf16.msra.mxu0 %v220_v12 }
  0x1a   :  { %117 = vmatpush.bf16.msra.mxu0 %v219_v13 }
  0x1e   :  { %118 = vmatpush.bf16.msra.mxu0 %v218_v14 }
  0x21   :  { %119 = vmatmul.bf16.vlgmr.msra.gmra.mxu0 %v174_v17 }
  0x76   :  { %v154_v28 = vpop.permute.xlu0 %153 }
  0x7e   :  { %v159_v33 = vpop.permute.xlu0 %158 }
  0x82   :  { %v134_v19 = vpop.f32.mrf.mxu1 }
  0x8a   :  { %v136_v24 = vpop.f32.mrf.mxu1 }
  0x9e   :  { %v120_v21 = vpop.f32.mrf.mxu0 }
  0x9f   :  { %v135_v22 = vadd.f32 %v134_v19, %v120_v21 }
  0xa1   :  { %v139_v23 = vadd.f32 %v135_v22, %v22_v20 }
  0xa3   :  { %142 = vst.msk [vmem:[#allocation2] sm:$0xff] %vm19_vm1, %v139_v23 }
  0xa6   :  { %v122_v26 = vpop.f32.mrf.mxu0 }
  0xa7   :  { %v137_v27 = vadd.f32 %v136_v24, %v122_v26 }
  0xa9   :  { %v140_v29 = vadd.f32 %v137_v27, %v23_v25 }
  0xaa   :  { %v147_v30 = vld [vmem:[#allocation2] sm:$0xff] }
  0xab   :  { %v161_v31 = vadd.f32 %v154_v28, %v147_v30  ;;  %143 = vst.msk [vmem:[#allocation2 + $0x8] sm:$0xff] %vm19_vm1, %v140_v29 }
  0xad   :  { %v163_v32 = vmax.f32 %v161_v31, 0.0 }
  0xaf   :  { %165 = vst.msk [vmem:[%s312_s3] sm:$0xff] %vm19_vm1, %v163_v32 }
  0xb2   :  { %v148_v34 = vld [vmem:[#allocation2 + $0x8] sm:$0xff] }
  0xb3   :  { %v162_v35 = vadd.f32 %v159_v33, %v148_v34 }
  0xb5   :  { %v164_v36 = vmax.f32 %v162_v35, 0.0 }
  0xb7   :  { %166 = vst.msk [vmem:[%s312_s3 + $0x8] sm:$0xff] %vm19_vm1, %v164_v36 }

// kernel: vgg16_forward.23
= control target key start
LH: loop header
LB: loop body
LE: loop exit
PB: predicated region body
PF: predicated region fallthrough
CT: control target
= control target key end

     0   :  { %s762_s12 = smov 0   ;;  %s764_s13 = smov 0   ;;  %s841_s0 = inlined_call_operand.vmem [shape: bf16[16,144], index: 0, kind: input, shape index: {}]   ;;  %s842_s1 = inlined_call_operand.vmem [shape: bf16[4,144,8], index: 1, kind: input, shape index: {}]   ;;  %s843_s2 = inlined_call_operand.vmem [shape: f32[16,1], index: 2, kind: input, shape index: {}]   ;;  %s844_s3 = inlined_call_operand.vmem [shape: f32[16,8], index: 3, kind: output, shape index: {}]  }
   0x1   :  { %s766_s14 = smov 0  }
   0x2 LB: > { %s31_s15 = sadd.s32 1, %s733_s13  ;;  %p617_p0 = scmp.ge.s32.totalorder %s737_s14, 1  ;;  %s737_s14 = sphi %s766_s14, %s13_s14   ;;  %s733_s13 = sphi %s764_s13, %s846_s13   ;;  %s729_s12 = sphi %s762_s12, %s845_s12  }
   0x3   : > { %p33_p1 = scmp.ge.s32.totalorder %s31_s15, 4  ;;  %p207_p2 = scmp.lt.s32.totalorder %s737_s14, 5 }
   0x5   : > { %s848_s15 = smov (%p33_p1, %s31_s15), 0  ;;  %p208_p3 = pnand %p617_p0, %p207_p2 }
   0x6   : > { %p269_p4 = scmp.lt.s32.totalorder (!%p208_p3), %s729_s12, 3  ;;  %p426_p5 = scmp.eq.s32.totalorder (!%p208_p3), %s729_s12, 0 }
   0x7   : > { %211 = sbr.rel (%p208_p3) target bundleno = 341 (0x155), region = 32 }
   0xc   : > { %s270_s16 = scalar_select %p269_p4, %s729_s12, 3  ;;  %v671_v1 = vld [vmem:[%s841_s0 + $0x4] sm:$0xf]  ;;  %v623_v2 = vld [vmem:[%s841_s0 + $0x8] sm:$0xf0]  ;;  %vm389_vm0 = vcmask 130048  }
   0xd   : > { %v626_v5 = vor.u32 %v671_v1, %v623_v2  ;;  %v621_v12 = vld [vmem:[%s841_s0] sm:$0xf]  ;;  %v672_v13 = vld [vmem:[%s841_s0 + $0x4] sm:$0xf0]  ;;  %vm301_vm1 = vcmask 64512   ;;  %v739_v15 = vmov 0.0  }
   0xe   : > { %s685_s17 = smul.u32 72, %s270_s16  ;;  %v622_v14 = vor.u32 %v672_v13, %v621_v12  ;;  %302 = vst.msk [vmem:[#allocation2] sm:$0xff] %vm301_vm1, %v739_v15  ;;  %v433_v26 = vld [vmem:[%s843_s2] sm:$0xff] (%p426_p5)  ;;  %v740_v27 = vmov (%p426_p5), 0   ;;  %v434_v28 = vld [vmem:[%s843_s2 + $0x8] sm:$0xff] (%p426_p5) }
   0xf   : > { %303 = vst.msk [vmem:[#allocation2 + $0x8] sm:$0xff] %vm301_vm1, %v739_v15  ;;  %713 = vset.pattern.permute.xlu0 (%p426_p5), %v740_v27 }
  0x10   : > { %s279_s20 = scalar_lea.vmem %s842_s1, %s685_s17  ;;  %437 = vperm.xlu0 (%p426_p5), %713, %v433_v26  }
  0x11   : > { %v680_v0 = vld [vmem:[%s279_s20 + $0x38] sm:$0xff]  ;;  %v679_v3 = vld [vmem:[%s279_s20 + $0x30] sm:$0xff]  ;;  %v681_v4 = vld [vmem:[%s279_s20 + $0x40] sm:$0xff] }
  0x12   : > { %393 = vmatpush.bf16.msra.mxu0 %v680_v0  ;;  %414 = vmatpush.bf16.msra.mxu1 %v681_v4  ;;  %v678_v6 = vld [vmem:[%s279_s20 + $0x28] sm:$0xff]  ;;  %v677_v7 = vld [vmem:[%s279_s20 + $0x20] sm:$0xff]  ;;  %v676_v8 = vld [vmem:[%s279_s20 + $0x18] sm:$0xff] }
  0x13   : > { %v675_v9 = vld [vmem:[%s279_s20 + $0x10] sm:$0xff]  ;;  %v674_v10 = vld [vmem:[%s279_s20 + $0x8] sm:$0xff]  ;;  %v673_v11 = vld [vmem:[%s279_s20] sm:$0xff] }
  0x15   : > { %663 = vmatmul.msk.bf16.vlgmr.msra.gmra.mxu1 %vm389_vm0, %v626_v5  ;;  %v304_v17 = vld [vmem:[#allocation2] sm:$0xff] }
  0x16   : > { %394 = vmatpush.bf16.msra.mxu0 %v679_v3  ;;  %v305_v22 = vld [vmem:[#allocation2 + $0x8] sm:$0xff] }
  0x18   : > { %442 = vperm.xlu0 (%p426_p5), %713, %v434_v28  }
  0x1a   : > { %395 = vmatpush.bf16.msra.mxu0 %v678_v6 }
  0x1e   : > { %396 = vmatpush.bf16.msra.mxu0 %v677_v7 }
  0x22   : > { %397 = vmatpush.bf16.msra.mxu0 %v676_v8 }
  0x26   : > { %398 = vmatpush.bf16.msra.mxu0 %v675_v9 }
  0x2a   : > { %399 = vmatpush.bf16.msra.mxu0 %v674_v10 }
  0x2e   : > { %400 = vmatpush.bf16.msra.mxu0 %v673_v11 }
  0x31   : > { %401 = vmatmul.bf16.vlgmr.msra.gmra.mxu0 %v622_v14 }
  0x82   : > { %v438_v30 = vpop.permute.xlu0 (%p426_p5), %437 }
  0x8a   : > { %v443_v34 = vpop.permute.xlu0 (%p426_p5), %442 }
  0x92   : > { %v416_v16 = vpop.f32.mrf.mxu1 }
  0x9a   : > { %v418_v21 = vpop.f32.mrf.mxu1 }
  0xae   : > { %v402_v18 = vpop.f32.mrf.mxu0 }
  0xaf   : > { %v417_v19 = vadd.f32 %v416_v16, %v402_v18 }
  0xb1   : > { %v421_v20 = vadd.f32 %v417_v19, %v304_v17 }
  0xb3   : > { %424 = vst.msk [vmem:[#allocation2] sm:$0xff] %vm301_vm1, %v421_v20 }
  0xb6   : > { %v404_v23 = vpop.f32.mrf.mxu0 }
  0xb7   : > { %v419_v24 = vadd.f32 %v418_v21, %v404_v23  ;;  %430 = sbr.rel (!%p426_p5) target bundleno = 200 (0xc8), region = 40 }
  0xb9   : > { %v422_v25 = vadd.f32 %v419_v24, %v305_v22 }
  0xba   : > { %v431_v29 = vld [vmem:[#allocation2] sm:$0xff] (%p426_p5) }
  0xbb   : > { %425 = vst.msk [vmem:[#allocation2 + $0x8] sm:$0xff] %vm301_vm1, %v422_v25  ;;  %v445_v31 = vadd.f32 (%p426_p5), %v438_v30, %v431_v29 }
  0xbd   : > { %v447_v32 = vmax.f32 %v445_v31, 0.0 }
  0xbf   : > { %449 = vst.msk [vmem:[#allocation3] sm:$0xff] %vm301_vm1, %v447_v32 }
  0xc2   : > { %v432_v33 = vld [vmem:[#allocation2 + $0x8] sm:$0xff] }
  0xc3   : > { %v446_v35 = vadd.f32 %v443_v34, %v432_v33 }
  0xc5   : > { %v448_v36 = vmax.f32 %v446_v35, 0.0 }
  0xc7   : > { %450 = vst.msk [vmem:[#allocation3 + $0x8] sm:$0xff] %vm301_vm1, %v448_v36 }
  0xc8 PF: > { %p451_p6 = scmp.gt.s32.totalorder %s729_s12, 0 }
  0xc9   : > { %v460_v37 = vld [vmem:[%s843_s2] sm:$0xff] (%p451_p6)  ;;  %v741_v38 = vmov (%p451_p6), 0   ;;  %v461_v39 = vld [vmem:[%s843_s2 + $0x8] sm:$0xff] (%p451_p6)  ;;  %v456_v43 = vld [vmem:[#allocation3] sm:$0xff] (%p451_p6) }
  0xca   : > { %455 = sbr.rel (!%p451_p6) target bundleno = 333 (0x14d), region = 44  ;;  %714 = vset.pattern.permute.xlu0 (%p451_p6), %v741_v38  ;;  %v458_v40 = vld [vmem:[#allocation2] sm:$0xff] (%p451_p6) }
  0xcb   : > { %464 = vperm.xlu0 (%p451_p6), %714, %v460_v37  }
  0xce   : > { %v459_v46 = vld [vmem:[#allocation2 + $0x8] sm:$0xff] (%p451_p6)  ;;  %v457_v49 = vld [vmem:[#allocation3 + $0x8] sm:$0xff] (%p451_p6) }
  0xd3   : > { %469 = vperm.xlu0 %714, %v461_v39  }
 0x13d   : > { %v465_v41 = vpop.permute.xlu0 %464 }
 0x13e   : > { %v472_v42 = vadd.f32 %v465_v41, %v458_v40 }
 0x140   : > { %v474_v44 = vmax.f32 %v472_v42, 0.0 }
 0x142   : > { %v476_v45 = vmax.f32 %v456_v43, %v474_v44 }
 0x144   : > { %478 = vst.msk [vmem:[#allocation3] sm:$0xff] %vm301_vm1, %v476_v45 }
 0x145   : > { %v470_v47 = vpop.permute.xlu0 %469 }
 0x146   : > { %v473_v48 = vadd.f32 %v470_v47, %v459_v46 }
 0x148   : > { %v475_v50 = vmax.f32 %v473_v48, 0.0 }
 0x14a   : > { %v477_v51 = vmax.f32 %v457_v49, %v475_v50 }
 0x14c   : > { %479 = vst.msk [vmem:[#allocation3 + $0x8] sm:$0xff] %vm301_vm1, %v477_v51 }
 0x14d PF: > { %p480_p7 = scmp.eq.s32.totalorder %s729_s12, 3 }
 0x14e   : > { %v485_v52 = vld [vmem:[#allocation3] sm:$0xff] (%p480_p7) }
 0x14f   : > { %484 = sbr.rel (!%p480_p7) target bundleno = 341 (0x155), region = 48  ;;  %487 = vst.msk [vmem:[%s844_s3] sm:$0xff] (%p480_p7), %vm301_vm1, %v485_v52 }
 0x153   : > { %v486_v53 = vld [vmem:[#allocation3 + $0x8] sm:$0xff] (%p480_p7) }
 0x154   : > { %488 = vst.msk [vmem:[%s844_s3 + $0x8] sm:$0xff] %vm301_vm1, %v486_v53 }
 0x155 PF: > { %s13_s14 = sadd.s32 1, %s737_s14   ;;  %s845_s12 = smov %s733_s13 }
 0x156   : > { %p10_p8 = scmp.ge.s32.totalorder %s13_s14, 6   ;;  %s846_s13 = smov %s848_s15 }
 0x158   :  { %12 = sbr.rel (!%p10_p8) target bundleno = 2 (0x2), region = 84 }

// kernel: vgg16_forward.24
= control target key start
LH: loop header
LB: loop body
LE: loop exit
PB: predicated region body
PF: predicated region fallthrough
CT: control target
= control target key end

     0   :  { %v230_v5 = vmov 0   ;;  %vm107_vm0 = vcmask 130048   ;;  %vm19_vm1 = vcmask 64512   ;;  %v231_v18 = vmov 0.0   ;;  %s309_s1 = inlined_call_operand.vmem [shape: bf16[1,144,8], index: 1, kind: input, shape index: {}]   ;;  %s310_s0 = inlined_call_operand.vmem [shape: bf16[16,144], index: 0, kind: input, shape index: {}]   ;;  %s311_s2 = inlined_call_operand.vmem [shape: f32[16,1], index: 2, kind: input, shape index: {}]   ;;  %s312_s3 = inlined_call_operand.vmem [shape: f32[16,8], index: 3, kind: output, shape index: {}]  }
   0x1   :  { %v225_v0 = vld [vmem:[%s309_s1 + $0x38] sm:$0xff]  ;;  %v224_v1 = vld [vmem:[%s309_s1 + $0x30] sm:$0xff]  ;;  %v226_v2 = vld [vmem:[%s309_s1 + $0x40] sm:$0xff]  ;;  %229 = vset.pattern.permute.xlu0 %v230_v5  ;;  %20 = vst.msk [vmem:[#allocation2] sm:$0xff] %vm19_vm1, %v231_v18 }
   0x2   :  { %111 = vmatpush.bf16.msra.mxu0 %v225_v0  ;;  %v216_v3 = vld [vmem:[%s310_s0 + $0x4] sm:$0xf]  ;;  %v175_v4 = vld [vmem:[%s310_s0 + $0x8] sm:$0xf0]  ;;  %132 = vmatpush.bf16.msra.mxu1 %v226_v2  ;;  %v221_v11 = vld [vmem:[%s309_s1 + $0x18] sm:$0xff]  ;;  %21 = vst.msk [vmem:[#allocation2 + $0x8] sm:$0xff] %vm19_vm1, %v231_v18 }
   0x3   :  { %v178_v6 = vor.u32 %v216_v3, %v175_v4  ;;  %v149_v7 = vld [vmem:[%s311_s2] sm:$0xff]  ;;  %v223_v8 = vld [vmem:[%s309_s1 + $0x28] sm:$0xff]  ;;  %v220_v12 = vld [vmem:[%s309_s1 + $0x10] sm:$0xff] }
   0x4   :  { %153 = vperm.xlu0 %229, %v149_v7   ;;  %v222_v9 = vld [vmem:[%s309_s1 + $0x20] sm:$0xff]  ;;  %v150_v10 = vld [vmem:[%s311_s2 + $0x8] sm:$0xff] }
   0x5   :  { %215 = vmatmul.msk.bf16.vlgmr.msra.gmra.mxu1 %vm107_vm0, %v178_v6  ;;  %v219_v13 = vld [vmem:[%s309_s1 + $0x8] sm:$0xff]  ;;  %v218_v14 = vld [vmem:[%s309_s1] sm:$0xff] }
   0x6   :  { %112 = vmatpush.bf16.msra.mxu0 %v224_v1  ;;  %v173_v15 = vld [vmem:[%s310_s0] sm:$0xf]  ;;  %v217_v16 = vld [vmem:[%s310_s0 + $0x4] sm:$0xf0] }
   0x7   :  { %v174_v17 = vor.u32 %v217_v16, %v173_v15 }
   0x8   :  { %v22_v20 = vld [vmem:[#allocation2] sm:$0xff] }
   0x9   :  { %v23_v25 = vld [vmem:[#allocation2 + $0x8] sm:$0xff] }
   0xa   :  { %113 = vmatpush.bf16.msra.mxu0 %v223_v8 }
   0xc   :  { %158 = vperm.xlu0 %229, %v150_v10  }
   0xe   :  { %114 = vmatpush.bf16.msra.mxu0 %v222_v9 }
  0x12   :  { %115 = vmatpush.bf16.msra.mxu0 %v221_v11 }
  0x16   :  { %116 = vmatpush.bf16.msra.mxu0 %v220_v12 }
  0x1a   :  { %117 = vmatpush.bf16.msra.mxu0 %v219_v13 }
  0x1e   :  { %118 = vmatpush.bf16.msra.mxu0 %v218_v14 }
  0x21   :  { %119 = vmatmul.bf16.vlgmr.msra.gmra.mxu0 %v174_v17 }
  0x76   :  { %v154_v28 = vpop.permute.xlu0 %153 }
  0x7e   :  { %v159_v33 = vpop.permute.xlu0 %158 }
  0x82   :  { %v134_v19 = vpop.f32.mrf.mxu1 }
  0x8a   :  { %v136_v24 = vpop.f32.mrf.mxu1 }
  0x9e   :  { %v120_v21 = vpop.f32.mrf.mxu0 }
  0x9f   :  { %v135_v22 = vadd.f32 %v134_v19, %v120_v21 }
  0xa1   :  { %v139_v23 = vadd.f32 %v135_v22, %v22_v20 }
  0xa3   :  { %142 = vst.msk [vmem:[#allocation2] sm:$0xff] %vm19_vm1, %v139_v23 }
  0xa6   :  { %v122_v26 = vpop.f32.mrf.mxu0 }
  0xa7   :  { %v137_v27 = vadd.f32 %v136_v24, %v122_v26 }
  0xa9   :  { %v140_v29 = vadd.f32 %v137_v27, %v23_v25 }
  0xaa   :  { %v147_v30 = vld [vmem:[#allocation2] sm:$0xff] }
  0xab   :  { %v161_v31 = vadd.f32 %v154_v28, %v147_v30  ;;  %143 = vst.msk [vmem:[#allocation2 + $0x8] sm:$0xff] %vm19_vm1, %v140_v29 }
  0xad   :  { %v163_v32 = vmax.f32 %v161_v31, 0.0 }
  0xaf   :  { %165 = vst.msk [vmem:[%s312_s3] sm:$0xff] %vm19_vm1, %v163_v32 }
  0xb2   :  { %v148_v34 = vld [vmem:[#allocation2 + $0x8] sm:$0xff] }
  0xb3   :  { %v162_v35 = vadd.f32 %v159_v33, %v148_v34 }
  0xb5   :  { %v164_v36 = vmax.f32 %v162_v35, 0.0 }
  0xb7   :  { %166 = vst.msk [vmem:[%s312_s3 + $0x8] sm:$0xff] %vm19_vm1, %v164_v36 }

// kernel: vgg16_forward.27
= control target key start
LH: loop header
LB: loop body
LE: loop exit
PB: predicated region body
PF: predicated region fallthrough
CT: control target
= control target key end

     0   :  { %vm34_vm0 = vcmask 130048   ;;  %vm73_vm1 = vcmask 261120   ;;  %s166_s1 = inlined_call_operand.vmem [shape: bf16[16,32], index: 1, kind: input, shape index: {}]   ;;  %s167_s0 = inlined_call_operand.vmem [shape: bf16[8,16], index: 0, kind: input, shape index: {}]   ;;  %s168_s2 = inlined_call_operand.vmem [shape: f32[1,32], index: 2, kind: input, shape index: {}]   ;;  %s169_s4 = inlined_call_operand.vmem [shape: f32[1,32], index: 4, kind: input, shape index: {}]   ;;  %s170_s3 = inlined_call_operand.vmem [shape: bf16[32,32], index: 3, kind: input, shape index: {}]   ;;  %s171_s5 = inlined_call_operand.vmem [shape: f32[8,32], index: 5, kind: output, shape index: {}]  }
   0x1   :  { %v110_v0 = vld [vmem:[%s166_s1] sm:$0xff]  ;;  %v112_v2 = vld [vmem:[%s170_s3 + $0x8] sm:$0xff] }
   0x2   :  { %45 = vmatpush.bf16.msra.mxu0 %v110_v0  ;;  %v21_v1 = vld [vmem:[%s167_s0] sm:$0xf]  ;;  %83 = vmatpush.bf16.msra.mxu1 %v112_v2 }
   0x3   :  { %v111_v3 = vld [vmem:[%s170_s3] sm:$0xff] }
   0x4   :  { %v113_v4 = vld [vmem:[%s168_s2] ss:$0 sm:$0xff] }
   0x5   :  { %100 = vmatmul.msk.bf16.vlgmr.msra.gmra.mxu0 %vm34_vm0, %v21_v1  ;;  %v114_v10 = vld [vmem:[%s169_s4] ss:$0 sm:$0xff] }
   0x6   :  { %84 = vmatpush.bf16.msra.mxu1 %v111_v3 }
  0x82   :  { %v47_v5 = vpop.f32.mrf.mxu0 }
  0x83   :  { %v48_v6 = vadd.f32 %v113_v4, %v47_v5 }
  0x85   :  { %v51_v7 = vmax.f32 %v48_v6, 0.0 }
  0x87   :  { %v52_v8 = vpack.c.bf16 %v51_v7, %v51_v7 }
  0x89   :  { %109 = vmatmul.msk.bf16.vlgmr.msra.gmra.mxu1 %vm73_vm1, %v52_v8 }
  0x8a   :  { %v49_v9 = vpop.f32.mrf.mxu0 }
 0x106   :  { %v86_v11 = vpop.f32.mrf.mxu1 }
 0x107   :  { %v87_v12 = vadd.f32 %v114_v10, %v86_v11 }
 0x109   :  { %v90_v13 = vmax.f32 %v87_v12, 0.0 }
 0x10b   :  { %91 = vst.msk [vmem:[%s171_s5] sm:$0xff] %vm73_vm1, %v90_v13 }
 0x10e   :  { %v88_v14 = vpop.f32.mrf.mxu1 }

// kernel: vgg16_forward.26
= control target key start
LH: loop header
LB: loop body
LE: loop exit
PB: predicated region body
PF: predicated region fallthrough
CT: control target
= control target key end

     0   :  { %s762_s12 = smov 0   ;;  %s764_s13 = smov 0   ;;  %s841_s0 = inlined_call_operand.vmem [shape: bf16[16,144], index: 0, kind: input, shape index: {}]   ;;  %s842_s1 = inlined_call_operand.vmem [shape: bf16[4,144,2], index: 1, kind: input, shape index: {}]   ;;  %s843_s2 = inlined_call_operand.vmem [shape: f32[16,1], index: 2, kind: input, shape index: {}]   ;;  %s844_s3 = inlined_call_operand.vmem [shape: f32[16,2], index: 3, kind: output, shape index: {}]  }
   0x1   :  { %s766_s14 = smov 0  }
   0x2 LB: > { %s31_s15 = sadd.s32 1, %s733_s13  ;;  %p617_p0 = scmp.ge.s32.totalorder %s737_s14, 1  ;;  %s737_s14 = sphi %s766_s14, %s13_s14   ;;  %s733_s13 = sphi %s764_s13, %s846_s13   ;;  %s729_s12 = sphi %s762_s12, %s845_s12  }
   0x3   : > { %p33_p1 = scmp.ge.s32.totalorder %s31_s15, 4  ;;  %p207_p2 = scmp.lt.s32.totalorder %s737_s14, 5 }
   0x5   : > { %s848_s15 = smov (%p33_p1, %s31_s15), 0  ;;  %p208_p3 = pnand %p617_p0, %p207_p2 }
   0x6   : > { %p269_p4 = scmp.lt.s32.totalorder (!%p208_p3), %s729_s12, 3  ;;  %p426_p5 = scmp.eq.s32.totalorder (!%p208_p3), %s729_s12, 0 }
   0x7   : > { %211 = sbr.rel (%p208_p3) target bundleno = 341 (0x155), region = 32 }
   0xc   : > { %s270_s16 = scalar_select %p269_p4, %s729_s12, 3  ;;  %v671_v1 = vld [vmem:[%s841_s0 + $0x4] sm:$0xf]  ;;  %v623_v2 = vld [vmem:[%s841_s0 + $0x8] sm:$0xf0]  ;;  %vm389_vm0 = vcmask 130048  }
   0xd   : > { %v626_v5 = vor.u32 %v671_v1, %v623_v2  ;;  %v621_v12 = vld [vmem:[%s841_s0] sm:$0xf]  ;;  %v672_v13 = vld [vmem:[%s841_s0 + $0x4] sm:$0xf0]  ;;  %vm301_vm1 = vcmask 15360   ;;  %v739_v15 = vmov 0.0  }
   0xe   : > { %s685_s17 = smul.u32 72, %s270_s16  ;;  %v622_v14 = vor.u32 %v672_v13, %v621_v12  ;;  %302 = vst.msk [vmem:[#allocation2] sm:$0xff] %vm301_vm1, %v739_v15  ;;  %v433_v26 = vld [vmem:[%s843_s2] sm:$0xff] (%p426_p5)  ;;  %v740_v27 = vmov (%p426_p5), 0   ;;  %v434_v28 = vld [vmem:[%s843_s2 + $0x8] sm:$0xff] (%p426_p5) }
   0xf   : > { %303 = vst.msk [vmem:[#allocation2 + $0x8] sm:$0xff] %vm301_vm1, %v739_v15  ;;  %713 = vset.pattern.permute.xlu0 (%p426_p5), %v740_v27 }
  0x10   : > { %s279_s20 = scalar_lea.vmem %s842_s1, %s685_s17  ;;  %437 = vperm.xlu0 (%p426_p5), %713, %v433_v26  }
  0x11   : > { %v680_v0 = vld [vmem:[%s279_s20 + $0x38] sm:$0xff]  ;;  %v679_v3 = vld [vmem:[%s279_s20 + $0x30] sm:$0xff]  ;;  %v681_v4 = vld [vmem:[%s279_s20 + $0x40] sm:$0xff] }
  0x12   : > { %393 = vmatpush.bf16.msra.mxu0 %v680_v0  ;;  %414 = vmatpush.bf16.msra.mxu1 %v681_v4  ;;  %v678_v6 = vld [vmem:[%s279_s20 + $0x28] sm:$0xff]  ;;  %v677_v7 = vld [vmem:[%s279_s20 + $0x20] sm:$0xff]  ;;  %v676_v8 = vld [vmem:[%s279_s20 + $0x18] sm:$0xff] }
  0x13   : > { %v675_v9 = vld [vmem:[%s279_s20 + $0x10] sm:$0xff]  ;;  %v674_v10 = vld [vmem:[%s279_s20 + $0x8] sm:$0xff]  ;;  %v673_v11 = vld [vmem:[%s279_s20] sm:$0xff] }
  0x15   : > { %663 = vmatmul.msk.bf16.vlgmr.msra.gmra.mxu1 %vm389_vm0, %v626_v5  ;;  %v304_v17 = vld [vmem:[#allocation2] sm:$0xff] }
  0x16   : > { %394 = vmatpush.bf16.msra.mxu0 %v679_v3  ;;  %v305_v22 = vld [vmem:[#allocation2 + $0x8] sm:$0xff] }
  0x18   : > { %442 = vperm.xlu0 (%p426_p5), %713, %v434_v28  }
  0x1a   : > { %395 = vmatpush.bf16.msra.mxu0 %v678_v6 }
  0x1e   : > { %396 = vmatpush.bf16.msra.mxu0 %v677_v7 }
  0x22   : > { %397 = vmatpush.bf16.msra.mxu0 %v676_v8 }
  0x26   : > { %398 = vmatpush.bf16.msra.mxu0 %v675_v9 }
  0x2a   : > { %399 = vmatpush.bf16.msra.mxu0 %v674_v10 }
  0x2e   : > { %400 = vmatpush.bf16.msra.mxu0 %v673_v11 }
  0x31   : > { %401 = vmatmul.bf16.vlgmr.msra.gmra.mxu0 %v622_v14 }
  0x82   : > { %v438_v30 = vpop.permute.xlu0 (%p426_p5), %437 }
  0x8a   : > { %v443_v34 = vpop.permute.xlu0 (%p426_p5), %442 }
  0x92   : > { %v416_v16 = vpop.f32.mrf.mxu1 }
  0x9a   : > { %v418_v21 = vpop.f32.mrf.mxu1 }
  0xae   : > { %v402_v18 = vpop.f32.mrf.mxu0 }
  0xaf   : > { %v417_v19 = vadd.f32 %v416_v16, %v402_v18 }
  0xb1   : > { %v421_v20 = vadd.f32 %v417_v19, %v304_v17 }
  0xb3   : > { %424 = vst.msk [vmem:[#allocation2] sm:$0xff] %vm301_vm1, %v421_v20 }
  0xb6   : > { %v404_v23 = vpop.f32.mrf.mxu0 }
  0xb7   : > { %v419_v24 = vadd.f32 %v418_v21, %v404_v23  ;;  %430 = sbr.rel (!%p426_p5) target bundleno = 200 (0xc8), region = 40 }
  0xb9   : > { %v422_v25 = vadd.f32 %v419_v24, %v305_v22 }
  0xba   : > { %v431_v29 = vld [vmem:[#allocation2] sm:$0xff] (%p426_p5) }
  0xbb   : > { %425 = vst.msk [vmem:[#allocation2 + $0x8] sm:$0xff] %vm301_vm1, %v422_v25  ;;  %v445_v31 = vadd.f32 (%p426_p5), %v438_v30, %v431_v29 }
  0xbd   : > { %v447_v32 = vmax.f32 %v445_v31, 0.0 }
  0xbf   : > { %449 = vst.msk [vmem:[#allocation3] sm:$0xff] %vm301_vm1, %v447_v32 }
  0xc2   : > { %v432_v33 = vld [vmem:[#allocation2 + $0x8] sm:$0xff] }
  0xc3   : > { %v446_v35 = vadd.f32 %v443_v34, %v432_v33 }
  0xc5   : > { %v448_v36 = vmax.f32 %v446_v35, 0.0 }
  0xc7   : > { %450 = vst.msk [vmem:[#allocation3 + $0x8] sm:$0xff] %vm301_vm1, %v448_v36 }
  0xc8 PF: > { %p451_p6 = scmp.gt.s32.totalorder %s729_s12, 0 }
  0xc9   : > { %v460_v37 = vld [vmem:[%s843_s2] sm:$0xff] (%p451_p6)  ;;  %v741_v38 = vmov (%p451_p6), 0   ;;  %v461_v39 = vld [vmem:[%s843_s2 + $0x8] sm:$0xff] (%p451_p6)  ;;  %v456_v43 = vld [vmem:[#allocation3] sm:$0xff] (%p451_p6) }
  0xca   : > { %455 = sbr.rel (!%p451_p6) target bundleno = 333 (0x14d), region = 44  ;;  %714 = vset.pattern.permute.xlu0 (%p451_p6), %v741_v38  ;;  %v458_v40 = vld [vmem:[#allocation2] sm:$0xff] (%p451_p6) }
  0xcb   : > { %464 = vperm.xlu0 (%p451_p6), %714, %v460_v37  }
  0xce   : > { %v459_v46 = vld [vmem:[#allocation2 + $0x8] sm:$0xff] (%p451_p6)  ;;  %v457_v49 = vld [vmem:[#allocation3 + $0x8] sm:$0xff] (%p451_p6) }
  0xd3   : > { %469 = vperm.xlu0 %714, %v461_v39  }
 0x13d   : > { %v465_v41 = vpop.permute.xlu0 %464 }
 0x13e   : > { %v472_v42 = vadd.f32 %v465_v41, %v458_v40 }
 0x140   : > { %v474_v44 = vmax.f32 %v472_v42, 0.0 }
 0x142   : > { %v476_v45 = vmax.f32 %v456_v43, %v474_v44 }
 0x144   : > { %478 = vst.msk [vmem:[#allocation3] sm:$0xff] %vm301_vm1, %v476_v45 }
 0x145   : > { %v470_v47 = vpop.permute.xlu0 %469 }
 0x146   : > { %v473_v48 = vadd.f32 %v470_v47, %v459_v46 }
 0x148   : > { %v475_v50 = vmax.f32 %v473_v48, 0.0 }
 0x14a   : > { %v477_v51 = vmax.f32 %v457_v49, %v475_v50 }
 0x14c   : > { %479 = vst.msk [vmem:[#allocation3 + $0x8] sm:$0xff] %vm301_vm1, %v477_v51 }
 0x14d PF: > { %p480_p7 = scmp.eq.s32.totalorder %s729_s12, 3 }
 0x14e   : > { %v485_v52 = vld [vmem:[#allocation3] sm:$0xff] (%p480_p7) }
 0x14f   : > { %484 = sbr.rel (!%p480_p7) target bundleno = 341 (0x155), region = 48  ;;  %487 = vst.msk [vmem:[%s844_s3] sm:$0xff] (%p480_p7), %vm301_vm1, %v485_v52 }
 0x153   : > { %v486_v53 = vld [vmem:[#allocation3 + $0x8] sm:$0xff] (%p480_p7) }
 0x154   : > { %488 = vst.msk [vmem:[%s844_s3 + $0x8] sm:$0xff] %vm301_vm1, %v486_v53 }
 0x155 PF: > { %s13_s14 = sadd.s32 1, %s737_s14   ;;  %s845_s12 = smov %s733_s13 }
 0x156   : > { %p10_p8 = scmp.ge.s32.totalorder %s13_s14, 6   ;;  %s846_s13 = smov %s848_s15 }
 0x158   :  { %12 = sbr.rel (!%p10_p8) target bundleno = 2 (0x2), region = 84 }

</bundles_post_ra>
